<compile_context>
chip_gen: v5e
topology: v5e:2x2
jax: 0.10.0
libtpu: 0.0.40
codegen_flags: <defaults>
</compile_context>

<pallas_src>
from functools import partial

import jax
import jax.numpy as jnp
from jax.experimental import pallas as pl
from jax.experimental.pallas import tpu as pltpu

LANE = 128


def _round_up(x, m):
    return (x + m - 1) // m * m


# ---------------------------------------------------------------------------
# Pallas kernels
# ---------------------------------------------------------------------------
def _conv_gemm_kernel(x_ref, w_ref, b_ref, o_ref):
    # o = relu(x @ w + b); x:(bm,Kp) bf16, w:(Kp,128) bf16, b:(1,128) f32.
    acc = jnp.dot(x_ref[...], w_ref[...], preferred_element_type=jnp.float32)
    o_ref[...] = jnp.maximum(acc + b_ref[...], 0.0).astype(o_ref.dtype)


def _mlp_kernel(x_ref, w1_ref, b1_ref, w2_ref, b2_ref, o_ref):
    # Fused fc1 + fc2 (each followed by ReLU) over the whole batch: (B,K)->(B,N).
    h = jnp.dot(x_ref[...], w1_ref[...], preferred_element_type=jnp.float32)
    h = jnp.maximum(h + b1_ref[...], 0.0)
    o = jnp.dot(h.astype(w2_ref.dtype), w2_ref[...],
                preferred_element_type=jnp.float32)
    o_ref[...] = jnp.maximum(o + b2_ref[...], 0.0).astype(o_ref.dtype)


# ---------------------------------------------------------------------------
# Pallas wrappers
# ---------------------------------------------------------------------------
def _pick_rows_per_block(batch, rows_per_img, bytes_per_img,
                         max_imgs=16, max_block_bytes=8 << 20):
    """Images per grid step: a divisor of batch, M block multiple of 8 (or the
    full array), block bytes under a budget that keeps double-buffered blocks
    well inside every generation's scoped-VMEM default (incl. v7x 64 MiB)."""
    valid = [d for d in range(1, batch + 1)
             if batch % d == 0 and (d == batch or (d * rows_per_img) % 8 == 0)]
    fitting = [d for d in valid
               if d <= max_imgs and d * bytes_per_img <= max_block_bytes]
    d = max(fitting) if fitting else min(valid)
    return d * rows_per_img


def conv_gemm_bias_relu(patches, w, b, *, batch, rows_per_img):
    """relu(patches @ w + b) with the batch folded into the GEMM M dim.

    patches: (B*P, Kp) bf16   w: (Kp, 128) bf16   b: (1, 128) f32
    -> (B*P, 128) float32 (padded output channels; caller slices them off).
    """
    M, K = patches.shape
    Kw, N = w.shape
    assert K == Kw and b.shape == (1, N) and M == batch * rows_per_img
    bytes_per_img = rows_per_img * (K * 2 + N * 4)
    bm = _pick_rows_per_block(batch, rows_per_img, bytes_per_img)
    grid = (M // bm,)
    cost = pl.CostEstimate(
        flops=2 * M * K * N,
        transcendentals=0,
        bytes_accessed=M * K * 2 + K * N * 2 + N * 4 + M * N * 4,
    )
    return pl.pallas_call(
        _conv_gemm_kernel,
        out_shape=jax.ShapeDtypeStruct((M, N), jnp.float32),
        grid_spec=pltpu.PrefetchScalarGridSpec(
            num_scalar_prefetch=0,
            grid=grid,
            in_specs=[
                pl.BlockSpec((bm, K), lambda m: (m, 0)),
                pl.BlockSpec((K, N), lambda m: (0, 0)),   # weight stays resident
                pl.BlockSpec((1, N), lambda m: (0, 0)),   # bias stays resident
            ],
            out_specs=pl.BlockSpec((bm, N), lambda m: (m, 0)),
        ),
        compiler_params=pltpu.CompilerParams(dimension_semantics=("parallel",)),
        cost_estimate=cost,
    )(patches, w, b)


def mlp_bias_relu(x, w1, b1, w2, b2):
    """relu(relu(x @ w1 + b1) @ w2 + b2), whole batch in one grid step.

    x: (B, K) bf16   w1: (K, H) bf16   b1: (1, H) f32
    w2: (H, N) bf16  b2: (1, N) f32    -> (B, N) float32.
    """
    B, K = x.shape
    Kw, H = w1.shape
    Hw, N = w2.shape
    assert K == Kw and H == Hw
    cost = pl.CostEstimate(
        flops=2 * B * (K * H + H * N),
        transcendentals=0,
        bytes_accessed=B * K * 2 + (K * H + H * N) * 2 + (H + N) * 4 + B * N * 4,
    )
    return pl.pallas_call(
        _mlp_kernel,
        out_shape=jax.ShapeDtypeStruct((B, N), jnp.float32),
        grid_spec=pltpu.PrefetchScalarGridSpec(
            num_scalar_prefetch=0,
            grid=(1,),
            in_specs=[
                pl.BlockSpec((B, K), lambda m: (0, 0)),
                pl.BlockSpec((K, H), lambda m: (0, 0)),
                pl.BlockSpec((1, H), lambda m: (0, 0)),
                pl.BlockSpec((H, N), lambda m: (0, 0)),
                pl.BlockSpec((1, N), lambda m: (0, 0)),
            ],
            out_specs=pl.BlockSpec((B, N), lambda m: (0, 0)),
        ),
        compiler_params=pltpu.CompilerParams(dimension_semantics=("arbitrary",)),
        cost_estimate=cost,
    )(x, w1, b1, w2, b2)


# ---------------------------------------------------------------------------
# Host-side glue
# ---------------------------------------------------------------------------
def im2col(x, kh, kw, stride, pad, k_pad):
    """x: (B,H,W,C) f32 -> (B*OH*OW, k_pad) bf16 patch matrix.

    Feature order per patch is (ki, kj, c); K is zero-padded to k_pad (multiple
    of 128) and cast to bf16 for lane-dense MXU operands.
    """
    xp = jnp.pad(x, ((0, 0), (pad, pad), (pad, pad), (0, 0)))
    B, H, W, C = xp.shape
    oh = (H - kh) // stride + 1
    ow = (W - kw) // stride + 1
    cols = []
    for i in range(kh):
        for j in range(kw):
            cols.append(
                xp[:, i: i + oh * stride: stride, j: j + ow * stride: stride, :]
            )
    p = jnp.stack(cols, axis=3).reshape(B, oh * ow, kh * kw * C)
    k = kh * kw * C
    if k_pad > k:
        p = jnp.pad(p, ((0, 0), (0, 0), (0, k_pad - k)))
    return p.reshape(B * oh * ow, k_pad).astype(jnp.bfloat16), oh, ow


def conv_weight_to_mat(w, b, k_pad, n_pad=LANE):
    """PyTorch conv weight (O,C,kh,kw) + bias -> ((k_pad,n_pad) bf16, (1,n_pad) f32).

    Rows ordered (ki, kj, c) to match im2col; K padded with zero rows, output
    channels padded to a full 128-lane width with zero columns.
    """
    O, C, kh, kw = w.shape
    wm = jnp.transpose(w, (2, 3, 1, 0)).reshape(kh * kw * C, O)
    wm = jnp.pad(wm, ((0, k_pad - kh * kw * C), (0, n_pad - O)))
    bm = jnp.pad(b.reshape(1, -1), ((0, 0), (0, n_pad - O)))
    return wm.astype(jnp.bfloat16), bm.astype(jnp.float32)


def prepare_params(p):
    """One-time re-layout of torch-style params into padded kernel layout."""
    p = jax.tree_util.tree_map(lambda a: a.astype(jnp.float32), p)
    in_ch = p["conv1_w"].shape[1]
    n_out = p["fc2_w"].shape[0]
    k1 = _round_up(25 * in_ch, LANE)
    k2 = _round_up(9 * 32, LANE)
    k3 = _round_up(9 * 64, LANE)
    kfc = _round_up(64 * 7 * 7, LANE)
    hfc = _round_up(50, LANE)
    nfc = _round_up(n_out, LANE)

    w1, b1 = conv_weight_to_mat(p["conv1_w"], p["conv1_b"], k1)
    w2, b2 = conv_weight_to_mat(p["conv2_w"], p["conv2_b"], k2)
    w3, b3 = conv_weight_to_mat(p["conv3_w"], p["conv3_b"], k3)

    # fc1 weight rows are in torch NCHW-flatten order (c, i, j); permute them
    # to (i, j, c) so the pixel-major / channel-minor conv3 GEMM output feeds
    # fc1 with no transpose in the forward pass.
    fw1 = jnp.transpose(p["fc1_w"].reshape(-1, 64, 7, 7), (2, 3, 1, 0))
    fw1 = fw1.reshape(64 * 7 * 7, -1)
    fw1 = jnp.pad(fw1, ((0, kfc - 64 * 7 * 7), (0, hfc - 50))).astype(jnp.bfloat16)
    fb1 = jnp.pad(p["fc1_b"].reshape(1, -1), ((0, 0), (0, hfc - 50)))
    fw2 = jnp.pad(p["fc2_w"].T, ((0, hfc - 50), (0, nfc - n_out))).astype(jnp.bfloat16)
    fb2 = jnp.pad(p["fc2_b"].reshape(1, -1), ((0, 0), (0, nfc - n_out)))

    return {
        "w1": w1, "b1": b1, "w2": w2, "b2": b2, "w3": w3, "b3": b3,
        "fw1": fw1, "fb1": fb1.astype(jnp.float32),
        "fw2": fw2, "fb2": fb2.astype(jnp.float32),
    }


# ---------------------------------------------------------------------------
# Parameter init (deterministic, synthetic, torch layout)
# ---------------------------------------------------------------------------
def init_params(key, in_channels, n_outputs):
    ks = jax.random.split(key, 10)
    s = 0.05
    return {
        "conv1_w": s * jax.random.normal(ks[0], (32, in_channels, 5, 5), jnp.float32),
        "conv1_b": s * jax.random.normal(ks[1], (32,), jnp.float32),
        "conv2_w": s * jax.random.normal(ks[2], (64, 32, 3, 3), jnp.float32),
        "conv2_b": s * jax.random.normal(ks[3], (64,), jnp.float32),
        "conv3_w": s * jax.random.normal(ks[4], (64, 64, 3, 3), jnp.float32),
        "conv3_b": s * jax.random.normal(ks[5], (64,), jnp.float32),
        "fc1_w": s * jax.random.normal(ks[6], (50, 64 * 7 * 7), jnp.float32),
        "fc1_b": s * jax.random.normal(ks[7], (50,), jnp.float32),
        "fc2_w": s * jax.random.normal(ks[8], (n_outputs, 50), jnp.float32),
        "fc2_b": s * jax.random.normal(ks[9], (n_outputs,), jnp.float32),
    }


# ---------------------------------------------------------------------------
# Forward pass (4 Pallas calls: conv1, conv2, conv3, fused fc1+fc2)
# ---------------------------------------------------------------------------
@partial(jax.jit, static_argnames=("n_outputs",))
def cnn_forward(x, kp, *, n_outputs):
    """x: (B, 84, 84, C) NHWC (the torch module permutes to NCHW itself)."""
    B = x.shape[0]
    x = x.astype(jnp.float32)

    # conv1: 5x5 s3 p2, 84 -> 28
    patches, oh, ow = im2col(x, 5, 5, 3, 2, k_pad=kp["w1"].shape[0])
    h = conv_gemm_bias_relu(patches, kp["w1"], kp["b1"], batch=B, rows_per_img=oh * ow)
    h = h[:, :32].reshape(B, oh, ow, 32)   # drop padded channels before next im2col

    # conv2: 3x3 s2 p1, 28 -> 14
    patches, oh, ow = im2col(h, 3, 3, 2, 1, k_pad=kp["w2"].shape[0])
    h = conv_gemm_bias_relu(patches, kp["w2"], kp["b2"], batch=B, rows_per_img=oh * ow)
    h = h[:, :64].reshape(B, oh, ow, 64)

    # conv3: 3x3 s2 p1, 14 -> 7
    patches, oh, ow = im2col(h, 3, 3, 2, 1, k_pad=kp["w3"].shape[0])
    h = conv_gemm_bias_relu(patches, kp["w3"], kp["b3"], batch=B, rows_per_img=oh * ow)

    # Flatten: rows are already (image, pixel)-major with channels minor, which
    # matches the (i, j, c)-permuted fc1 weight; pad K to the lane-aligned fc1 K.
    flat = h[:, :64].reshape(B, oh * ow * 64)                      # (B, 3136)
    flat = jnp.pad(flat, ((0, 0), (0, kp["fw1"].shape[0] - flat.shape[1])))
    flat = flat.astype(jnp.bfloat16)

    out = mlp_bias_relu(flat, kp["fw1"], kp["fb1"], kp["fw2"], kp["fb2"])
    return out[:, :n_outputs]


# ---------------------------------------------------------------------------
# Pure-JAX reference: same mixed-precision contract as the kernels
# (bf16 operands, f32 accumulate / bias / ReLU), torch-layout params.
# ---------------------------------------------------------------------------
def _bf16_round(a):
    return a.astype(jnp.bfloat16).astype(jnp.float32)


def cnn_forward_ref(x, params):
    def conv(h, w, b, stride, pad):
        w_hwio = jnp.transpose(w, (2, 3, 1, 0))
        y = jax.lax.conv_general_dilated(
            _bf16_round(h), _bf16_round(w_hwio),
            window_strides=(stride, stride),
            padding=[(pad, pad), (pad, pad)],
            dimension_numbers=("NHWC", "HWIO", "NHWC"),
            preferred_element_type=jnp.float32,
        )
        return jax.nn.relu(y + b)

    B = x.shape[0]
    h = conv(x.astype(jnp.float32), params["conv1_w"], params["conv1_b"], 3, 2)
    h = conv(h, params["conv2_w"], params["conv2_b"], 2, 1)
    h = conv(h, params["conv3_w"], params["conv3_b"], 2, 1)
    h = jnp.transpose(h, (0, 3, 1, 2)).reshape(B, 64 * 7 * 7)  # torch NCHW flatten
    h = jax.nn.relu(_bf16_round(h) @ _bf16_round(params["fc1_w"].T) + params["fc1_b"])
    return jax.nn.relu(_bf16_round(h) @ _bf16_round(params["fc2_w"].T) + params["fc2_b"])


if __name__ == "__main__":
    # fc1 expects a 7x7 spatial map, which the conv stack only produces from
    # 84x84 inputs, so spatial size is fixed by the architecture.
    batch_size = 2
    n_outputs = 10
    state_size = (84, 84, 4)  # (H, W, C) -> state_size[-1] = in_channels

    key = jax.random.PRNGKey(0)
    kx, kparam = jax.random.split(key)
    x = jax.random.normal(kx, (batch_size, *state_size), jnp.float32)
    params = init_params(kparam, state_size[-1], n_outputs)
    kparams = prepare_params(params)  # one-time padded/bf16 weight re-layout

    out = jax.block_until_ready(cnn_forward(x, kparams, n_outputs=n_outputs))
    assert out.shape == (batch_size, n_outputs), out.shape

    ref = jax.block_until_ready(cnn_forward_ref(x, params))
    max_err = float(jnp.max(jnp.abs(out - ref)))
    assert jnp.allclose(out, ref, atol=3e-3, rtol=3e-2), max_err

    print("KERNEL_OK")
</pallas_src>

<mosaic_0001>
module attributes {stable_mosaic.version = 11 : i64} {
  func.func @_conv_gemm_kernel(%arg0: i32, %arg1: memref<1568x128xbf16, #tpu.memory_space<vmem>>, %arg2: memref<128x128xbf16, #tpu.memory_space<vmem>>, %arg3: memref<1x128xf32, #tpu.memory_space<vmem>>, %arg4: memref<1568x128xf32, #tpu.memory_space<vmem>>) attributes {dimension_semantics = [#tpu.dimension_semantics<parallel>], iteration_bounds = array<i64: 1>, scalar_prefetch = 0 : i64, scratch_operands = 0 : i64, tpu.core_type = #tpu.core_type<tc>, window_params = [{transform_indices = @transform_0, window_bounds = array<i64: 1568, 128>}, {pipeline_mode = #tpu.pipeline_mode<synchronous>, transform_indices = @transform_1, window_bounds = array<i64: 128, 128>}, {pipeline_mode = #tpu.pipeline_mode<synchronous>, transform_indices = @transform_2, window_bounds = array<i64: 1, 128>}, {transform_indices = @transform_3, window_bounds = array<i64: 1568, 128>}]} {
    %c0 = arith.constant 0 : index
    %c0_0 = arith.constant 0 : index
    %0 = vector.load %arg1[%c0, %c0_0] : memref<1568x128xbf16, #tpu.memory_space<vmem>>, vector<1568x128xbf16>
    %c0_1 = arith.constant 0 : index
    %c0_2 = arith.constant 0 : index
    %1 = vector.load %arg2[%c0_1, %c0_2] : memref<128x128xbf16, #tpu.memory_space<vmem>>, vector<128x128xbf16>
    %cst = arith.constant dense<0.000000e+00> : vector<1568x128xf32>
    %2 = tpu.matmul %0, %1, %cst {dimension_numbers = #tpu.dot_dimension_numbers<[1], [0], [0], [1], [0, 0, 1, 1], [], []>} : vector<1568x128xbf16>, vector<128x128xbf16>, vector<1568x128xf32> -> vector<1568x128xf32>
    %c0_3 = arith.constant 0 : index
    %c0_4 = arith.constant 0 : index
    %3 = vector.load %arg3[%c0_3, %c0_4] : memref<1x128xf32, #tpu.memory_space<vmem>>, vector<1x128xf32>
    %4 = vector.broadcast %3 : vector<1x128xf32> to vector<1568x128xf32>
    %5 = arith.addf %2, %4 : vector<1568x128xf32>
    %cst_5 = arith.constant 0.000000e+00 : f32
    %6 = vector.broadcast %cst_5 : f32 to vector<1568x128xf32>
    %7 = arith.maximumf %5, %6 : vector<1568x128xf32>
    %c0_6 = arith.constant 0 : index
    %c0_7 = arith.constant 0 : index
    %8 = vector.load %arg4[%c0_6, %c0_7] : memref<1568x128xf32, #tpu.memory_space<vmem>>, vector<1568x128xf32>
    tpu.vector_store %arg4[%c0_6, %c0_7], %7 {strides = array<i32>} : memref<1568x128xf32, #tpu.memory_space<vmem>>, vector<1568x128xf32>,
    return
  }
  func.func @transform_0(%arg0: i32) -> (i32, i32) {
    %c0_i32 = arith.constant 0 : i32
    %c0_i32_0 = arith.constant 0 : i32
    return %arg0, %c0_i32 : i32, i32
  }
  func.func @transform_1(%arg0: i32) -> (i32, i32) {
    %c0_i32 = arith.constant 0 : i32
    %c0_i32_0 = arith.constant 0 : i32
    %c0_i32_1 = arith.constant 0 : i32
    return %c0_i32, %c0_i32_0 : i32, i32
  }
  func.func @transform_2(%arg0: i32) -> (i32, i32) {
    %c0_i32 = arith.constant 0 : i32
    %c0_i32_0 = arith.constant 0 : i32
    %c0_i32_1 = arith.constant 0 : i32
    return %c0_i32, %c0_i32_0 : i32, i32
  }
  func.func @transform_3(%arg0: i32) -> (i32, i32) {
    %c0_i32 = arith.constant 0 : i32
    %c0_i32_0 = arith.constant 0 : i32
    return %arg0, %c0_i32 : i32, i32
  }
}

module attributes {stable_mosaic.version = 11 : i64} {
  func.func @_conv_gemm_kernel(%arg0: i32, %arg1: memref<392x384xbf16, #tpu.memory_space<vmem>>, %arg2: memref<384x128xbf16, #tpu.memory_space<vmem>>, %arg3: memref<1x128xf32, #tpu.memory_space<vmem>>, %arg4: memref<392x128xf32, #tpu.memory_space<vmem>>) attributes {dimension_semantics = [#tpu.dimension_semantics<parallel>], iteration_bounds = array<i64: 1>, scalar_prefetch = 0 : i64, scratch_operands = 0 : i64, tpu.core_type = #tpu.core_type<tc>, window_params = [{transform_indices = @transform_0, window_bounds = array<i64: 392, 384>}, {pipeline_mode = #tpu.pipeline_mode<synchronous>, transform_indices = @transform_1, window_bounds = array<i64: 384, 128>}, {pipeline_mode = #tpu.pipeline_mode<synchronous>, transform_indices = @transform_2, window_bounds = array<i64: 1, 128>}, {transform_indices = @transform_3, window_bounds = array<i64: 392, 128>}]} {
    %c0 = arith.constant 0 : index
    %c0_0 = arith.constant 0 : index
    %0 = vector.load %arg1[%c0, %c0_0] : memref<392x384xbf16, #tpu.memory_space<vmem>>, vector<392x384xbf16>
    %c0_1 = arith.constant 0 : index
    %c0_2 = arith.constant 0 : index
    %1 = vector.load %arg2[%c0_1, %c0_2] : memref<384x128xbf16, #tpu.memory_space<vmem>>, vector<384x128xbf16>
    %cst = arith.constant dense<0.000000e+00> : vector<392x128xf32>
    %2 = tpu.matmul %0, %1, %cst {dimension_numbers = #tpu.dot_dimension_numbers<[1], [0], [0], [1], [0, 0, 1, 1], [], []>} : vector<392x384xbf16>, vector<384x128xbf16>, vector<392x128xf32> -> vector<392x128xf32>
    %c0_3 = arith.constant 0 : index
    %c0_4 = arith.constant 0 : index
    %3 = vector.load %arg3[%c0_3, %c0_4] : memref<1x128xf32, #tpu.memory_space<vmem>>, vector<1x128xf32>
    %4 = vector.broadcast %3 : vector<1x128xf32> to vector<392x128xf32>
    %5 = arith.addf %2, %4 : vector<392x128xf32>
    %cst_5 = arith.constant 0.000000e+00 : f32
    %6 = vector.broadcast %cst_5 : f32 to vector<392x128xf32>
    %7 = arith.maximumf %5, %6 : vector<392x128xf32>
    %c0_6 = arith.constant 0 : index
    %c0_7 = arith.constant 0 : index
    %8 = vector.load %arg4[%c0_6, %c0_7] : memref<392x128xf32, #tpu.memory_space<vmem>>, vector<392x128xf32>
    tpu.vector_store %arg4[%c0_6, %c0_7], %7 {strides = array<i32>} : memref<392x128xf32, #tpu.memory_space<vmem>>, vector<392x128xf32>,
    return
  }
  func.func @transform_0(%arg0: i32) -> (i32, i32) {
    %c0_i32 = arith.constant 0 : i32
    %c0_i32_0 = arith.constant 0 : i32
    return %arg0, %c0_i32 : i32, i32
  }
  func.func @transform_1(%arg0: i32) -> (i32, i32) {
    %c0_i32 = arith.constant 0 : i32
    %c0_i32_0 = arith.constant 0 : i32
    %c0_i32_1 = arith.constant 0 : i32
    return %c0_i32, %c0_i32_0 : i32, i32
  }
  func.func @transform_2(%arg0: i32) -> (i32, i32) {
    %c0_i32 = arith.constant 0 : i32
    %c0_i32_0 = arith.constant 0 : i32
    %c0_i32_1 = arith.constant 0 : i32
    return %c0_i32, %c0_i32_0 : i32, i32
  }
  func.func @transform_3(%arg0: i32) -> (i32, i32) {
    %c0_i32 = arith.constant 0 : i32
    %c0_i32_0 = arith.constant 0 : i32
    return %arg0, %c0_i32 : i32, i32
  }
}

module attributes {stable_mosaic.version = 11 : i64} {
  func.func @_conv_gemm_kernel(%arg0: i32, %arg1: memref<98x640xbf16, #tpu.memory_space<vmem>>, %arg2: memref<640x128xbf16, #tpu.memory_space<vmem>>, %arg3: memref<1x128xf32, #tpu.memory_space<vmem>>, %arg4: memref<98x128xf32, #tpu.memory_space<vmem>>) attributes {dimension_semantics = [#tpu.dimension_semantics<parallel>], iteration_bounds = array<i64: 1>, scalar_prefetch = 0 : i64, scratch_operands = 0 : i64, tpu.core_type = #tpu.core_type<tc>, window_params = [{transform_indices = @transform_0, window_bounds = array<i64: 98, 640>}, {pipeline_mode = #tpu.pipeline_mode<synchronous>, transform_indices = @transform_1, window_bounds = array<i64: 640, 128>}, {pipeline_mode = #tpu.pipeline_mode<synchronous>, transform_indices = @transform_2, window_bounds = array<i64: 1, 128>}, {transform_indices = @transform_3, window_bounds = array<i64: 98, 128>}]} {
    %c0 = arith.constant 0 : index
    %c0_0 = arith.constant 0 : index
    %0 = vector.load %arg1[%c0, %c0_0] : memref<98x640xbf16, #tpu.memory_space<vmem>>, vector<98x640xbf16>
    %c0_1 = arith.constant 0 : index
    %c0_2 = arith.constant 0 : index
    %1 = vector.load %arg2[%c0_1, %c0_2] : memref<640x128xbf16, #tpu.memory_space<vmem>>, vector<640x128xbf16>
    %cst = arith.constant dense<0.000000e+00> : vector<98x128xf32>
    %2 = tpu.matmul %0, %1, %cst {dimension_numbers = #tpu.dot_dimension_numbers<[1], [0], [0], [1], [0, 0, 1, 1], [], []>} : vector<98x640xbf16>, vector<640x128xbf16>, vector<98x128xf32> -> vector<98x128xf32>
    %c0_3 = arith.constant 0 : index
    %c0_4 = arith.constant 0 : index
    %3 = vector.load %arg3[%c0_3, %c0_4] : memref<1x128xf32, #tpu.memory_space<vmem>>, vector<1x128xf32>
    %4 = vector.broadcast %3 : vector<1x128xf32> to vector<98x128xf32>
    %5 = arith.addf %2, %4 : vector<98x128xf32>
    %cst_5 = arith.constant 0.000000e+00 : f32
    %6 = vector.broadcast %cst_5 : f32 to vector<98x128xf32>
    %7 = arith.maximumf %5, %6 : vector<98x128xf32>
    %c0_6 = arith.constant 0 : index
    %c0_7 = arith.constant 0 : index
    %8 = vector.load %arg4[%c0_6, %c0_7] : memref<98x128xf32, #tpu.memory_space<vmem>>, vector<98x128xf32>
    tpu.vector_store %arg4[%c0_6, %c0_7], %7 {strides = array<i32>} : memref<98x128xf32, #tpu.memory_space<vmem>>, vector<98x128xf32>,
    return
  }
  func.func @transform_0(%arg0: i32) -> (i32, i32) {
    %c0_i32 = arith.constant 0 : i32
    %c0_i32_0 = arith.constant 0 : i32
    return %arg0, %c0_i32 : i32, i32
  }
  func.func @transform_1(%arg0: i32) -> (i32, i32) {
    %c0_i32 = arith.constant 0 : i32
    %c0_i32_0 = arith.constant 0 : i32
    %c0_i32_1 = arith.constant 0 : i32
    return %c0_i32, %c0_i32_0 : i32, i32
  }
  func.func @transform_2(%arg0: i32) -> (i32, i32) {
    %c0_i32 = arith.constant 0 : i32
    %c0_i32_0 = arith.constant 0 : i32
    %c0_i32_1 = arith.constant 0 : i32
    return %c0_i32, %c0_i32_0 : i32, i32
  }
  func.func @transform_3(%arg0: i32) -> (i32, i32) {
    %c0_i32 = arith.constant 0 : i32
    %c0_i32_0 = arith.constant 0 : i32
    return %arg0, %c0_i32 : i32, i32
  }
}

module attributes {stable_mosaic.version = 11 : i64} {
  func.func @_mlp_kernel(%arg0: i32, %arg1: memref<2x3200xbf16, #tpu.memory_space<vmem>>, %arg2: memref<3200x128xbf16, #tpu.memory_space<vmem>>, %arg3: memref<1x128xf32, #tpu.memory_space<vmem>>, %arg4: memref<128x128xbf16, #tpu.memory_space<vmem>>, %arg5: memref<1x128xf32, #tpu.memory_space<vmem>>, %arg6: memref<2x128xf32, #tpu.memory_space<vmem>>) attributes {dimension_semantics = [#tpu.dimension_semantics<arbitrary>], iteration_bounds = array<i64: 1>, scalar_prefetch = 0 : i64, scratch_operands = 0 : i64, tpu.core_type = #tpu.core_type<tc>, window_params = [{pipeline_mode = #tpu.pipeline_mode<synchronous>, transform_indices = @transform_0, window_bounds = array<i64: 2, 3200>}, {pipeline_mode = #tpu.pipeline_mode<synchronous>, transform_indices = @transform_1, window_bounds = array<i64: 3200, 128>}, {pipeline_mode = #tpu.pipeline_mode<synchronous>, transform_indices = @transform_2, window_bounds = array<i64: 1, 128>}, {pipeline_mode = #tpu.pipeline_mode<synchronous>, transform_indices = @transform_3, window_bounds = array<i64: 128, 128>}, {pipeline_mode = #tpu.pipeline_mode<synchronous>, transform_indices = @transform_4, window_bounds = array<i64: 1, 128>}, {pipeline_mode = #tpu.pipeline_mode<synchronous>, transform_indices = @transform_5, window_bounds = array<i64: 2, 128>}]} {
    %c0 = arith.constant 0 : index
    %c0_0 = arith.constant 0 : index
    %0 = vector.load %arg1[%c0, %c0_0] : memref<2x3200xbf16, #tpu.memory_space<vmem>>, vector<2x3200xbf16>
    %c0_1 = arith.constant 0 : index
    %c0_2 = arith.constant 0 : index
    %1 = vector.load %arg2[%c0_1, %c0_2] : memref<3200x128xbf16, #tpu.memory_space<vmem>>, vector<3200x128xbf16>
    %cst = arith.constant dense<0.000000e+00> : vector<2x128xf32>
    %2 = tpu.matmul %0, %1, %cst {dimension_numbers = #tpu.dot_dimension_numbers<[1], [0], [0], [1], [0, 0, 1, 1], [], []>} : vector<2x3200xbf16>, vector<3200x128xbf16>, vector<2x128xf32> -> vector<2x128xf32>
    %c0_3 = arith.constant 0 : index
    %c0_4 = arith.constant 0 : index
    %3 = vector.load %arg3[%c0_3, %c0_4] : memref<1x128xf32, #tpu.memory_space<vmem>>, vector<1x128xf32>
    %4 = vector.broadcast %3 : vector<1x128xf32> to vector<2x128xf32>
    %5 = arith.addf %2, %4 : vector<2x128xf32>
    %cst_5 = arith.constant 0.000000e+00 : f32
    %6 = vector.broadcast %cst_5 : f32 to vector<2x128xf32>
    %7 = arith.maximumf %5, %6 : vector<2x128xf32>
    %8 = arith.truncf %7 : vector<2x128xf32> to vector<2x128xbf16>
    %c0_6 = arith.constant 0 : index
    %c0_7 = arith.constant 0 : index
    %9 = vector.load %arg4[%c0_6, %c0_7] : memref<128x128xbf16, #tpu.memory_space<vmem>>, vector<128x128xbf16>
    %cst_8 = arith.constant dense<0.000000e+00> : vector<2x128xf32>
    %10 = tpu.matmul %8, %9, %cst_8 {dimension_numbers = #tpu.dot_dimension_numbers<[1], [0], [0], [1], [0, 0, 1, 1], [], []>} : vector<2x128xbf16>, vector<128x128xbf16>, vector<2x128xf32> -> vector<2x128xf32>
    %c0_9 = arith.constant 0 : index
    %c0_10 = arith.constant 0 : index
    %11 = vector.load %arg5[%c0_9, %c0_10] : memref<1x128xf32, #tpu.memory_space<vmem>>, vector<1x128xf32>
    %12 = vector.broadcast %11 : vector<1x128xf32> to vector<2x128xf32>
    %13 = arith.addf %10, %12 : vector<2x128xf32>
    %cst_11 = arith.constant 0.000000e+00 : f32
    %14 = vector.broadcast %cst_11 : f32 to vector<2x128xf32>
    %15 = arith.maximumf %13, %14 : vector<2x128xf32>
    %c0_12 = arith.constant 0 : index
    %c0_13 = arith.constant 0 : index
    %16 = vector.load %arg6[%c0_12, %c0_13] : memref<2x128xf32, #tpu.memory_space<vmem>>, vector<2x128xf32>
    tpu.vector_store %arg6[%c0_12, %c0_13], %15 {strides = array<i32>} : memref<2x128xf32, #tpu.memory_space<vmem>>, vector<2x128xf32>,
    return
  }
  func.func @transform_0(%arg0: i32) -> (i32, i32) {
    %c0_i32 = arith.constant 0 : i32
    %c0_i32_0 = arith.constant 0 : i32
    %c0_i32_1 = arith.constant 0 : i32
    return %c0_i32, %c0_i32_0 : i32, i32
  }
  func.func @transform_1(%arg0: i32) -> (i32, i32) {
    %c0_i32 = arith.constant 0 : i32
    %c0_i32_0 = arith.constant 0 : i32
    %c0_i32_1 = arith.constant 0 : i32
    return %c0_i32, %c0_i32_0 : i32, i32
  }
  func.func @transform_2(%arg0: i32) -> (i32, i32) {
    %c0_i32 = arith.constant 0 : i32
    %c0_i32_0 = arith.constant 0 : i32
    %c0_i32_1 = arith.constant 0 : i32
    return %c0_i32, %c0_i32_0 : i32, i32
  }
  func.func @transform_3(%arg0: i32) -> (i32, i32) {
    %c0_i32 = arith.constant 0 : i32
    %c0_i32_0 = arith.constant 0 : i32
    %c0_i32_1 = arith.constant 0 : i32
    return %c0_i32, %c0_i32_0 : i32, i32
  }
  func.func @transform_4(%arg0: i32) -> (i32, i32) {
    %c0_i32 = arith.constant 0 : i32
    %c0_i32_0 = arith.constant 0 : i32
    %c0_i32_1 = arith.constant 0 : i32
    return %c0_i32, %c0_i32_0 : i32, i32
  }
  func.func @transform_5(%arg0: i32) -> (i32, i32) {
    %c0_i32 = arith.constant 0 : i32
    %c0_i32_0 = arith.constant 0 : i32
    %c0_i32_1 = arith.constant 0 : i32
    return %c0_i32, %c0_i32_0 : i32, i32
  }
}

</mosaic_0001>

<bundles_post_ra>
// kernel: cnn_forward.4
= control target key start
LH: loop header
LB: loop body
LE: loop exit
PB: predicated region body
PF: predicated region fallthrough
CT: control target
= control target key end

     0   :  { %s3449_s1 = inlined_call_operand.vmem [shape: bf16[128,128], index: 1, kind: input, shape index: {}]   ;;  %s3450_s0 = inlined_call_operand.vmem [shape: bf16[1568,128], index: 0, kind: input, shape index: {}]   ;;  %s3451_s2 = inlined_call_operand.vmem [shape: f32[1,128], index: 2, kind: input, shape index: {}]   ;;  %s3452_s3 = inlined_call_operand.vmem [shape: f32[1568,128], index: 3, kind: output, shape index: {}]  }
   0x1   :  { %v2290_v0 = vld [vmem:[%s3449_s1 + $0x38] sm:$0xff]  ;;  %v2289_v1 = vld [vmem:[%s3449_s1 + $0x30] sm:$0xff]  ;;  %v2288_v2 = vld [vmem:[%s3449_s1 + $0x28] sm:$0xff] }
   0x2   :  { %2292 = vmatpush.bf16.msra.mxu2 %v2290_v0  ;;  %2293 = vmatpush.bf16.msra.mxu3 %v2290_v0  ;;  %v2287_v3 = vld [vmem:[%s3449_s1 + $0x20] sm:$0xff]  ;;  %v2286_v4 = vld [vmem:[%s3449_s1 + $0x18] sm:$0xff]  ;;  %v2285_v5 = vld [vmem:[%s3449_s1 + $0x10] sm:$0xff] }
   0x3   :  { %866 = vmatpush.bf16.msra.mxu0 %v2290_v0  ;;  %2291 = vmatpush.bf16.msra.mxu1 %v2290_v0  ;;  %v2284_v6 = vld [vmem:[%s3449_s1 + $0x8] sm:$0xff]  ;;  %v2283_v7 = vld [vmem:[%s3449_s1] sm:$0xff]  ;;  %v2259_v13 = vld [vmem:[%s3450_s0 + $0x250] sm:$0xff] }
   0x4   :  { %v2233_v8 = vld [vmem:[%s3450_s0 + $0x180] sm:$0xff]  ;;  %v2258_v9 = vld [vmem:[%s3450_s0 + $0x248] sm:$0xff]  ;;  %v2235_v16 = vld [vmem:[%s3450_s0 + $0x190] sm:$0xff] }
   0x5   :  { %v2185_v10 = vld [vmem:[%s3450_s0] sm:$0xff]  ;;  %v2234_v12 = vld [vmem:[%s3450_s0 + $0x188] sm:$0xff]  ;;  %v2260_v17 = vld [vmem:[%s3450_s0 + $0x258] sm:$0xff] }
   0x6   :  { %2295 = vmatpush.bf16.msra.mxu2 %v2289_v1  ;;  %2296 = vmatpush.bf16.msra.mxu3 %v2289_v1  ;;  %v2209_v11 = vld [vmem:[%s3450_s0 + $0xc0] sm:$0xff]  ;;  %v2186_v14 = vld [vmem:[%s3450_s0 + $0x8] sm:$0xff]  ;;  %v2187_v18 = vld [vmem:[%s3450_s0 + $0x10] sm:$0xff] }
   0x7   :  { %867 = vmatpush.bf16.msra.mxu0 %v2289_v1  ;;  %2294 = vmatpush.bf16.msra.mxu1 %v2289_v1  ;;  %v2210_v15 = vld [vmem:[%s3450_s0 + $0xc8] sm:$0xff]  ;;  %v2211_v19 = vld [vmem:[%s3450_s0 + $0xd0] sm:$0xff]  ;;  %v2236_v20 = vld [vmem:[%s3450_s0 + $0x198] sm:$0xff] }
   0x8   :  { %v2261_v21 = vld [vmem:[%s3450_s0 + $0x260] sm:$0xff]  ;;  %v2188_v22 = vld [vmem:[%s3450_s0 + $0x18] sm:$0xff]  ;;  %v2262_v25 = vld [vmem:[%s3450_s0 + $0x268] sm:$0xff] }
   0x9   :  { %v2212_v23 = vld [vmem:[%s3450_s0 + $0xd8] sm:$0xff]  ;;  %v2237_v24 = vld [vmem:[%s3450_s0 + $0x1a0] sm:$0xff]  ;;  %v2238_v28 = vld [vmem:[%s3450_s0 + $0x1a8] sm:$0xff] }
   0xa   :  { %2298 = vmatpush.bf16.msra.mxu2 %v2288_v2  ;;  %2299 = vmatpush.bf16.msra.mxu3 %v2288_v2  ;;  %v2189_v26 = vld [vmem:[%s3450_s0 + $0x20] sm:$0xff]  ;;  %v2263_v29 = vld [vmem:[%s3450_s0 + $0x270] sm:$0xff]  ;;  %v2190_v30 = vld [vmem:[%s3450_s0 + $0x28] sm:$0xff] }
   0xb   :  { %868 = vmatpush.bf16.msra.mxu0 %v2288_v2  ;;  %2297 = vmatpush.bf16.msra.mxu1 %v2288_v2  ;;  %v2213_v27 = vld [vmem:[%s3450_s0 + $0xe0] sm:$0xff]  ;;  %v2214_v31 = vld [vmem:[%s3450_s0 + $0xe8] sm:$0xff]  ;;  %v2239_v32 = vld [vmem:[%s3450_s0 + $0x1b0] sm:$0xff] }
   0xc   :  { %v2264_v33 = vld [vmem:[%s3450_s0 + $0x278] sm:$0xff]  ;;  %v2191_v34 = vld [vmem:[%s3450_s0 + $0x30] sm:$0xff]  ;;  %v2265_v37 = vld [vmem:[%s3450_s0 + $0x280] sm:$0xff] }
   0xd   :  { %v2215_v35 = vld [vmem:[%s3450_s0 + $0xf0] sm:$0xff]  ;;  %v2240_v36 = vld [vmem:[%s3450_s0 + $0x1b8] sm:$0xff]  ;;  %v2241_v40 = vld [vmem:[%s3450_s0 + $0x1c0] sm:$0xff] }
   0xe   :  { %2301 = vmatpush.bf16.msra.mxu2 %v2287_v3  ;;  %2302 = vmatpush.bf16.msra.mxu3 %v2287_v3  ;;  %v2192_v38 = vld [vmem:[%s3450_s0 + $0x38] sm:$0xff]  ;;  %v2266_v41 = vld [vmem:[%s3450_s0 + $0x288] sm:$0xff]  ;;  %v2466_v42 = vld [vmem:[%s3451_s2] ss:$0 sm:$0xff] }
   0xf   :  { %869 = vmatpush.bf16.msra.mxu0 %v2287_v3  ;;  %2300 = vmatpush.bf16.msra.mxu1 %v2287_v3  ;;  %v2216_v39 = vld [vmem:[%s3450_s0 + $0xf8] sm:$0xff]  ;;  %v2193_v43 = vld [vmem:[%s3450_s0 + $0x40] sm:$0xff]  ;;  %v2242_v3 = vld [vmem:[%s3450_s0 + $0x1c8] sm:$0xff] }
  0x10   :  { %v2217_v44 = vld [vmem:[%s3450_s0 + $0x100] sm:$0xff] }
  0x12   :  { %2304 = vmatpush.bf16.msra.mxu2 %v2286_v4  ;;  %2305 = vmatpush.bf16.msra.mxu3 %v2286_v4 }
  0x13   :  { %870 = vmatpush.bf16.msra.mxu0 %v2286_v4  ;;  %2303 = vmatpush.bf16.msra.mxu1 %v2286_v4  ;;  %v2267_v4 = vld [vmem:[%s3450_s0 + $0x290] sm:$0xff] }
  0x16   :  { %2307 = vmatpush.bf16.msra.mxu2 %v2285_v5  ;;  %2308 = vmatpush.bf16.msra.mxu3 %v2285_v5 }
  0x17   :  { %871 = vmatpush.bf16.msra.mxu0 %v2285_v5  ;;  %2306 = vmatpush.bf16.msra.mxu1 %v2285_v5  ;;  %v2194_v5 = vld [vmem:[%s3450_s0 + $0x48] sm:$0xff] }
  0x1a   :  { %2310 = vmatpush.bf16.msra.mxu2 %v2284_v6  ;;  %2311 = vmatpush.bf16.msra.mxu3 %v2284_v6 }
  0x1b   :  { %872 = vmatpush.bf16.msra.mxu0 %v2284_v6  ;;  %2309 = vmatpush.bf16.msra.mxu1 %v2284_v6  ;;  %v2218_v6 = vld [vmem:[%s3450_s0 + $0x108] sm:$0xff] }
  0x1e   :  { %2313 = vmatpush.bf16.msra.mxu2 %v2283_v7  ;;  %2314 = vmatpush.bf16.msra.mxu3 %v2283_v7 }
  0x1f   :  { %873 = vmatpush.bf16.msra.mxu0 %v2283_v7  ;;  %2312 = vmatpush.bf16.msra.mxu1 %v2283_v7 }
  0x21   :  { %1114 = vmatmul.bf16.vlgmr.msra.gmra.mxu2 %v2233_v8  ;;  %1239 = vmatmul.bf16.vlgmr.msra.gmra.mxu3 %v2258_v9 }
  0x22   :  { %874 = vmatmul.bf16.vlgmr.msra.gmra.mxu0 %v2185_v10  ;;  %994 = vmatmul.bf16.vlgmr.msra.gmra.mxu1 %v2209_v11 }
  0x31   :  { %1119 = vmatmul.bf16.gmra.mxu2 %v2234_v12  ;;  %1244 = vmatmul.bf16.gmra.mxu3 %v2259_v13 }
  0x32   :  { %879 = vmatmul.bf16.gmra.mxu0 %v2186_v14  ;;  %999 = vmatmul.bf16.gmra.mxu1 %v2210_v15 }
  0x41   :  { %1124 = vmatmul.bf16.gmra.mxu2 %v2235_v16  ;;  %1249 = vmatmul.bf16.gmra.mxu3 %v2260_v17 }
  0x42   :  { %884 = vmatmul.bf16.gmra.mxu0 %v2187_v18  ;;  %1004 = vmatmul.bf16.gmra.mxu1 %v2211_v19 }
  0x51   :  { %1129 = vmatmul.bf16.gmra.mxu2 %v2236_v20  ;;  %1254 = vmatmul.bf16.gmra.mxu3 %v2261_v21 }
  0x52   :  { %889 = vmatmul.bf16.gmra.mxu0 %v2188_v22  ;;  %1009 = vmatmul.bf16.gmra.mxu1 %v2212_v23 }
  0x61   :  { %1134 = vmatmul.bf16.gmra.mxu2 %v2237_v24  ;;  %1259 = vmatmul.bf16.gmra.mxu3 %v2262_v25 }
  0x62   :  { %894 = vmatmul.bf16.gmra.mxu0 %v2189_v26  ;;  %1014 = vmatmul.bf16.gmra.mxu1 %v2213_v27 }
  0x71   :  { %1139 = vmatmul.bf16.gmra.mxu2 %v2238_v28  ;;  %1264 = vmatmul.bf16.gmra.mxu3 %v2263_v29 }
  0x72   :  { %899 = vmatmul.bf16.gmra.mxu0 %v2190_v30  ;;  %1019 = vmatmul.bf16.gmra.mxu1 %v2214_v31  ;;  %v2243_v31 = vld [vmem:[%s3450_s0 + $0x1d0] sm:$0xff] }
  0x81   :  { %1144 = vmatmul.bf16.gmra.mxu2 %v2239_v32  ;;  %1269 = vmatmul.bf16.gmra.mxu3 %v2264_v33  ;;  %v2268_v32 = vld [vmem:[%s3450_s0 + $0x298] sm:$0xff]  ;;  %v2195_v33 = vld [vmem:[%s3450_s0 + $0x50] sm:$0xff] }
  0x82   :  { %904 = vmatmul.bf16.gmra.mxu0 %v2191_v34  ;;  %1024 = vmatmul.bf16.gmra.mxu1 %v2215_v35  ;;  %v2219_v34 = vld [vmem:[%s3450_s0 + $0x110] sm:$0xff] }
  0x91   :  { %1149 = vmatmul.bf16.gmra.mxu2 %v2240_v36  ;;  %1274 = vmatmul.bf16.gmra.mxu3 %v2265_v37 }
  0x92   :  { %909 = vmatmul.bf16.gmra.mxu0 %v2192_v38  ;;  %1029 = vmatmul.bf16.gmra.mxu1 %v2216_v39 }
  0x9f   :  { %v875_v45 = vpop.f32.mrf.mxu0  ;;  %v995_v46 = vpop.f32.mrf.mxu1 }
  0xa0   :  { %v876_v47 = vadd.f32 %v2466_v42, %v875_v45  ;;  %v996_v48 = vadd.f32 %v2466_v42, %v995_v46 }
  0xa1   :  { %1154 = vmatmul.bf16.gmra.mxu2 %v2241_v40  ;;  %1279 = vmatmul.bf16.gmra.mxu3 %v2266_v41 }
  0xa2   :  { %v1365_v49 = vmax.f32 %v876_v47, 0.0  ;;  %v1413_v50 = vmax.f32 %v996_v48, 0.0  ;;  %914 = vmatmul.bf16.gmra.mxu0 %v2193_v43  ;;  %1034 = vmatmul.bf16.gmra.mxu1 %v2217_v44 }
  0xa4   :  { %v1115_v51 = vpop.f32.mrf.mxu2  ;;  %v1240_v52 = vpop.f32.mrf.mxu3  ;;  %1561 = vst [vmem:[%s3452_s3] sm:$0xff] %v1365_v49 }
  0xa5   :  { %v1116_v53 = vadd.f32 %v2466_v42, %v1115_v51  ;;  %v1241_v54 = vadd.f32 %v2466_v42, %v1240_v52  ;;  %1609 = vst [vmem:[%s3452_s3 + $0x180] sm:$0xff] %v1413_v50 }
  0xa7   :  { %v1461_v55 = vmax.f32 %v1116_v53, 0.0  ;;  %v1511_v56 = vmax.f32 %v1241_v54, 0.0  ;;  %v877_v57 = vpop.f32.mrf.mxu0  ;;  %v997_v58 = vpop.f32.mrf.mxu1 }
  0xa8   :  { %v878_v59 = vadd.f32 %v2466_v42, %v877_v57  ;;  %v998_v60 = vadd.f32 %v2466_v42, %v997_v58 }
  0xa9   :  { %1657 = vst [vmem:[%s3452_s3 + $0x300] sm:$0xff] %v1461_v55 }
  0xaa   :  { %1707 = vst [vmem:[%s3452_s3 + $0x490] sm:$0xff] %v1511_v56  ;;  %v1366_v61 = vmax.f32 %v878_v59, 0.0  ;;  %v1414_v62 = vmax.f32 %v998_v60, 0.0  ;;  %v2244_v60 = vld [vmem:[%s3450_s0 + $0x1d8] sm:$0xff] }
  0xac   :  { %v1117_v63 = vpop.f32.mrf.mxu2  ;;  %v1242_v0 = vpop.f32.mrf.mxu3  ;;  %1562 = vst [vmem:[%s3452_s3 + $0x8] sm:$0xff] %v1366_v61  ;;  %v2269_v61 = vld [vmem:[%s3450_s0 + $0x2a0] sm:$0xff] }
  0xad   :  { %v1118_v1 = vadd.f32 %v2466_v42, %v1117_v63  ;;  %v1243_v2 = vadd.f32 %v2466_v42, %v1242_v0  ;;  %1610 = vst [vmem:[%s3452_s3 + $0x188] sm:$0xff] %v1414_v62  ;;  %v2196_v62 = vld [vmem:[%s3450_s0 + $0x58] sm:$0xff] }
  0xae   :  { %v2220_v63 = vld [vmem:[%s3450_s0 + $0x118] sm:$0xff] }
  0xaf   :  { %v1462_v7 = vmax.f32 %v1118_v1, 0.0  ;;  %v1512_v8 = vmax.f32 %v1243_v2, 0.0  ;;  %v880_v9 = vpop.f32.mrf.mxu0  ;;  %v1000_v10 = vpop.f32.mrf.mxu1 }
  0xb0   :  { %v881_v11 = vadd.f32 %v2466_v42, %v880_v9  ;;  %v1001_v12 = vadd.f32 %v2466_v42, %v1000_v10 }
  0xb1   :  { %1658 = vst [vmem:[%s3452_s3 + $0x308] sm:$0xff] %v1462_v7  ;;  %1159 = vmatmul.bf16.gmra.mxu2 %v2242_v3  ;;  %1284 = vmatmul.bf16.gmra.mxu3 %v2267_v4 }
  0xb2   :  { %1708 = vst [vmem:[%s3452_s3 + $0x498] sm:$0xff] %v1512_v8  ;;  %v1367_v13 = vmax.f32 %v881_v11, 0.0  ;;  %v1415_v14 = vmax.f32 %v1001_v12, 0.0  ;;  %919 = vmatmul.bf16.gmra.mxu0 %v2194_v5  ;;  %1039 = vmatmul.bf16.gmra.mxu1 %v2218_v6 }
  0xb4   :  { %v1120_v15 = vpop.f32.mrf.mxu2  ;;  %v1245_v16 = vpop.f32.mrf.mxu3  ;;  %1563 = vst [vmem:[%s3452_s3 + $0x10] sm:$0xff] %v1367_v13 }
  0xb5   :  { %v1121_v17 = vadd.f32 %v2466_v42, %v1120_v15  ;;  %v1246_v18 = vadd.f32 %v2466_v42, %v1245_v16  ;;  %1611 = vst [vmem:[%s3452_s3 + $0x190] sm:$0xff] %v1415_v14 }
  0xb7   :  { %v1463_v19 = vmax.f32 %v1121_v17, 0.0  ;;  %v1513_v20 = vmax.f32 %v1246_v18, 0.0  ;;  %v882_v21 = vpop.f32.mrf.mxu0  ;;  %v1002_v22 = vpop.f32.mrf.mxu1 }
  0xb8   :  { %v883_v23 = vadd.f32 %v2466_v42, %v882_v21  ;;  %v1003_v24 = vadd.f32 %v2466_v42, %v1002_v22 }
  0xb9   :  { %1659 = vst [vmem:[%s3452_s3 + $0x310] sm:$0xff] %v1463_v19 }
  0xba   :  { %1709 = vst [vmem:[%s3452_s3 + $0x4a0] sm:$0xff] %v1513_v20  ;;  %v1368_v25 = vmax.f32 %v883_v23, 0.0  ;;  %v1416_v26 = vmax.f32 %v1003_v24, 0.0  ;;  %v2245_v24 = vld [vmem:[%s3450_s0 + $0x1e0] sm:$0xff] }
  0xbc   :  { %v1122_v27 = vpop.f32.mrf.mxu2  ;;  %v1247_v28 = vpop.f32.mrf.mxu3  ;;  %1564 = vst [vmem:[%s3452_s3 + $0x18] sm:$0xff] %v1368_v25  ;;  %v2270_v25 = vld [vmem:[%s3450_s0 + $0x2a8] sm:$0xff] }
  0xbd   :  { %v1123_v29 = vadd.f32 %v2466_v42, %v1122_v27  ;;  %v1248_v30 = vadd.f32 %v2466_v42, %v1247_v28  ;;  %1612 = vst [vmem:[%s3452_s3 + $0x198] sm:$0xff] %v1416_v26  ;;  %v2197_v26 = vld [vmem:[%s3450_s0 + $0x60] sm:$0xff] }
  0xbe   :  { %v2221_v27 = vld [vmem:[%s3450_s0 + $0x120] sm:$0xff] }
  0xbf   :  { %v1464_v35 = vmax.f32 %v1123_v29, 0.0  ;;  %v1514_v36 = vmax.f32 %v1248_v30, 0.0  ;;  %v885_v37 = vpop.f32.mrf.mxu0  ;;  %v1005_v38 = vpop.f32.mrf.mxu1 }
  0xc0   :  { %v886_v39 = vadd.f32 %v2466_v42, %v885_v37  ;;  %v1006_v40 = vadd.f32 %v2466_v42, %v1005_v38 }
  0xc1   :  { %1660 = vst [vmem:[%s3452_s3 + $0x318] sm:$0xff] %v1464_v35  ;;  %1164 = vmatmul.bf16.gmra.mxu2 %v2243_v31  ;;  %1289 = vmatmul.bf16.gmra.mxu3 %v2268_v32 }
  0xc2   :  { %1710 = vst [vmem:[%s3452_s3 + $0x4a8] sm:$0xff] %v1514_v36  ;;  %v1369_v41 = vmax.f32 %v886_v39, 0.0  ;;  %v1417_v43 = vmax.f32 %v1006_v40, 0.0  ;;  %924 = vmatmul.bf16.gmra.mxu0 %v2195_v33  ;;  %1044 = vmatmul.bf16.gmra.mxu1 %v2219_v34 }
  0xc4   :  { %v1125_v44 = vpop.f32.mrf.mxu2  ;;  %v1250_v45 = vpop.f32.mrf.mxu3  ;;  %1565 = vst [vmem:[%s3452_s3 + $0x20] sm:$0xff] %v1369_v41 }
  0xc5   :  { %v1126_v46 = vadd.f32 %v2466_v42, %v1125_v44  ;;  %v1251_v47 = vadd.f32 %v2466_v42, %v1250_v45  ;;  %1613 = vst [vmem:[%s3452_s3 + $0x1a0] sm:$0xff] %v1417_v43 }
  0xc7   :  { %v1465_v48 = vmax.f32 %v1126_v46, 0.0  ;;  %v1515_v49 = vmax.f32 %v1251_v47, 0.0  ;;  %v887_v50 = vpop.f32.mrf.mxu0  ;;  %v1007_v51 = vpop.f32.mrf.mxu1 }
  0xc8   :  { %v888_v52 = vadd.f32 %v2466_v42, %v887_v50  ;;  %v1008_v53 = vadd.f32 %v2466_v42, %v1007_v51 }
  0xc9   :  { %1661 = vst [vmem:[%s3452_s3 + $0x320] sm:$0xff] %v1465_v48 }
  0xca   :  { %1711 = vst [vmem:[%s3452_s3 + $0x4b0] sm:$0xff] %v1515_v49  ;;  %v1370_v54 = vmax.f32 %v888_v52, 0.0  ;;  %v1418_v55 = vmax.f32 %v1008_v53, 0.0  ;;  %v2246_v53 = vld [vmem:[%s3450_s0 + $0x1e8] sm:$0xff] }
  0xcc   :  { %v1127_v56 = vpop.f32.mrf.mxu2  ;;  %v1252_v57 = vpop.f32.mrf.mxu3  ;;  %1566 = vst [vmem:[%s3452_s3 + $0x28] sm:$0xff] %v1370_v54  ;;  %v2271_v54 = vld [vmem:[%s3450_s0 + $0x2b0] sm:$0xff] }
  0xcd   :  { %v1128_v58 = vadd.f32 %v2466_v42, %v1127_v56  ;;  %v1253_v59 = vadd.f32 %v2466_v42, %v1252_v57  ;;  %1614 = vst [vmem:[%s3452_s3 + $0x1a8] sm:$0xff] %v1418_v55  ;;  %v2198_v55 = vld [vmem:[%s3450_s0 + $0x68] sm:$0xff] }
  0xce   :  { %v2222_v56 = vld [vmem:[%s3450_s0 + $0x128] sm:$0xff] }
  0xcf   :  { %v1466_v0 = vmax.f32 %v1128_v58, 0.0  ;;  %v1516_v1 = vmax.f32 %v1253_v59, 0.0  ;;  %v890_v2 = vpop.f32.mrf.mxu0  ;;  %v1010_v3 = vpop.f32.mrf.mxu1 }
  0xd0   :  { %v891_v4 = vadd.f32 %v2466_v42, %v890_v2  ;;  %v1011_v5 = vadd.f32 %v2466_v42, %v1010_v3 }
  0xd1   :  { %1662 = vst [vmem:[%s3452_s3 + $0x328] sm:$0xff] %v1466_v0  ;;  %1169 = vmatmul.bf16.gmra.mxu2 %v2244_v60  ;;  %1294 = vmatmul.bf16.gmra.mxu3 %v2269_v61 }
  0xd2   :  { %1712 = vst [vmem:[%s3452_s3 + $0x4b8] sm:$0xff] %v1516_v1  ;;  %v1371_v6 = vmax.f32 %v891_v4, 0.0  ;;  %v1419_v7 = vmax.f32 %v1011_v5, 0.0  ;;  %929 = vmatmul.bf16.gmra.mxu0 %v2196_v62  ;;  %1049 = vmatmul.bf16.gmra.mxu1 %v2220_v63 }
  0xd4   :  { %v1130_v8 = vpop.f32.mrf.mxu2  ;;  %v1255_v9 = vpop.f32.mrf.mxu3  ;;  %1567 = vst [vmem:[%s3452_s3 + $0x30] sm:$0xff] %v1371_v6 }
  0xd5   :  { %v1131_v10 = vadd.f32 %v2466_v42, %v1130_v8  ;;  %v1256_v11 = vadd.f32 %v2466_v42, %v1255_v9  ;;  %1615 = vst [vmem:[%s3452_s3 + $0x1b0] sm:$0xff] %v1419_v7 }
  0xd7   :  { %v1467_v12 = vmax.f32 %v1131_v10, 0.0  ;;  %v1517_v13 = vmax.f32 %v1256_v11, 0.0  ;;  %v892_v14 = vpop.f32.mrf.mxu0  ;;  %v1012_v15 = vpop.f32.mrf.mxu1 }
  0xd8   :  { %v893_v16 = vadd.f32 %v2466_v42, %v892_v14  ;;  %v1013_v17 = vadd.f32 %v2466_v42, %v1012_v15 }
  0xd9   :  { %1663 = vst [vmem:[%s3452_s3 + $0x330] sm:$0xff] %v1467_v12 }
  0xda   :  { %1713 = vst [vmem:[%s3452_s3 + $0x4c0] sm:$0xff] %v1517_v13  ;;  %v1372_v18 = vmax.f32 %v893_v16, 0.0  ;;  %v1420_v19 = vmax.f32 %v1013_v17, 0.0  ;;  %v2247_v17 = vld [vmem:[%s3450_s0 + $0x1f0] sm:$0xff] }
  0xdc   :  { %v1132_v20 = vpop.f32.mrf.mxu2  ;;  %v1257_v21 = vpop.f32.mrf.mxu3  ;;  %1568 = vst [vmem:[%s3452_s3 + $0x38] sm:$0xff] %v1372_v18  ;;  %v2272_v18 = vld [vmem:[%s3450_s0 + $0x2b8] sm:$0xff] }
  0xdd   :  { %v1133_v22 = vadd.f32 %v2466_v42, %v1132_v20  ;;  %v1258_v23 = vadd.f32 %v2466_v42, %v1257_v21  ;;  %1616 = vst [vmem:[%s3452_s3 + $0x1b8] sm:$0xff] %v1420_v19  ;;  %v2199_v19 = vld [vmem:[%s3450_s0 + $0x70] sm:$0xff] }
  0xde   :  { %v2223_v20 = vld [vmem:[%s3450_s0 + $0x130] sm:$0xff] }
  0xdf   :  { %v1468_v28 = vmax.f32 %v1133_v22, 0.0  ;;  %v1518_v29 = vmax.f32 %v1258_v23, 0.0  ;;  %v895_v30 = vpop.f32.mrf.mxu0  ;;  %v1015_v31 = vpop.f32.mrf.mxu1 }
  0xe0   :  { %v896_v32 = vadd.f32 %v2466_v42, %v895_v30  ;;  %v1016_v33 = vadd.f32 %v2466_v42, %v1015_v31 }
  0xe1   :  { %1664 = vst [vmem:[%s3452_s3 + $0x338] sm:$0xff] %v1468_v28  ;;  %1174 = vmatmul.bf16.gmra.mxu2 %v2245_v24  ;;  %1299 = vmatmul.bf16.gmra.mxu3 %v2270_v25 }
  0xe2   :  { %1714 = vst [vmem:[%s3452_s3 + $0x4c8] sm:$0xff] %v1518_v29  ;;  %v1373_v34 = vmax.f32 %v896_v32, 0.0  ;;  %v1421_v35 = vmax.f32 %v1016_v33, 0.0  ;;  %934 = vmatmul.bf16.gmra.mxu0 %v2197_v26  ;;  %1054 = vmatmul.bf16.gmra.mxu1 %v2221_v27 }
  0xe4   :  { %v1135_v36 = vpop.f32.mrf.mxu2  ;;  %v1260_v37 = vpop.f32.mrf.mxu3  ;;  %1569 = vst [vmem:[%s3452_s3 + $0x40] sm:$0xff] %v1373_v34 }
  0xe5   :  { %v1136_v38 = vadd.f32 %v2466_v42, %v1135_v36  ;;  %v1261_v39 = vadd.f32 %v2466_v42, %v1260_v37  ;;  %1617 = vst [vmem:[%s3452_s3 + $0x1c0] sm:$0xff] %v1421_v35 }
  0xe7   :  { %v1469_v40 = vmax.f32 %v1136_v38, 0.0  ;;  %v1519_v41 = vmax.f32 %v1261_v39, 0.0  ;;  %v897_v43 = vpop.f32.mrf.mxu0  ;;  %v1017_v44 = vpop.f32.mrf.mxu1 }
  0xe8   :  { %v898_v45 = vadd.f32 %v2466_v42, %v897_v43  ;;  %v1018_v46 = vadd.f32 %v2466_v42, %v1017_v44 }
  0xe9   :  { %1665 = vst [vmem:[%s3452_s3 + $0x340] sm:$0xff] %v1469_v40 }
  0xea   :  { %1715 = vst [vmem:[%s3452_s3 + $0x4d0] sm:$0xff] %v1519_v41  ;;  %v1374_v47 = vmax.f32 %v898_v45, 0.0  ;;  %v1422_v48 = vmax.f32 %v1018_v46, 0.0  ;;  %v2248_v46 = vld [vmem:[%s3450_s0 + $0x1f8] sm:$0xff] }
  0xec   :  { %v1137_v49 = vpop.f32.mrf.mxu2  ;;  %v1262_v50 = vpop.f32.mrf.mxu3  ;;  %1570 = vst [vmem:[%s3452_s3 + $0x48] sm:$0xff] %v1374_v47  ;;  %v2273_v47 = vld [vmem:[%s3450_s0 + $0x2c0] sm:$0xff] }
  0xed   :  { %v1138_v51 = vadd.f32 %v2466_v42, %v1137_v49  ;;  %v1263_v52 = vadd.f32 %v2466_v42, %v1262_v50  ;;  %1618 = vst [vmem:[%s3452_s3 + $0x1c8] sm:$0xff] %v1422_v48  ;;  %v2200_v48 = vld [vmem:[%s3450_s0 + $0x78] sm:$0xff] }
  0xee   :  { %v2224_v49 = vld [vmem:[%s3450_s0 + $0x138] sm:$0xff] }
  0xef   :  { %v1470_v57 = vmax.f32 %v1138_v51, 0.0  ;;  %v1520_v58 = vmax.f32 %v1263_v52, 0.0  ;;  %v900_v59 = vpop.f32.mrf.mxu0  ;;  %v1020_v60 = vpop.f32.mrf.mxu1 }
  0xf0   :  { %v901_v61 = vadd.f32 %v2466_v42, %v900_v59  ;;  %v1021_v62 = vadd.f32 %v2466_v42, %v1020_v60 }
  0xf1   :  { %1666 = vst [vmem:[%s3452_s3 + $0x348] sm:$0xff] %v1470_v57  ;;  %1179 = vmatmul.bf16.gmra.mxu2 %v2246_v53  ;;  %1304 = vmatmul.bf16.gmra.mxu3 %v2271_v54 }
  0xf2   :  { %1716 = vst [vmem:[%s3452_s3 + $0x4d8] sm:$0xff] %v1520_v58  ;;  %v1375_v63 = vmax.f32 %v901_v61, 0.0  ;;  %v1423_v0 = vmax.f32 %v1021_v62, 0.0  ;;  %939 = vmatmul.bf16.gmra.mxu0 %v2198_v55  ;;  %1059 = vmatmul.bf16.gmra.mxu1 %v2222_v56 }
  0xf4   :  { %v1140_v1 = vpop.f32.mrf.mxu2  ;;  %v1265_v2 = vpop.f32.mrf.mxu3  ;;  %1571 = vst [vmem:[%s3452_s3 + $0x50] sm:$0xff] %v1375_v63 }
  0xf5   :  { %v1141_v3 = vadd.f32 %v2466_v42, %v1140_v1  ;;  %v1266_v4 = vadd.f32 %v2466_v42, %v1265_v2  ;;  %1619 = vst [vmem:[%s3452_s3 + $0x1d0] sm:$0xff] %v1423_v0 }
  0xf7   :  { %v1471_v5 = vmax.f32 %v1141_v3, 0.0  ;;  %v1521_v6 = vmax.f32 %v1266_v4, 0.0  ;;  %v902_v7 = vpop.f32.mrf.mxu0  ;;  %v1022_v8 = vpop.f32.mrf.mxu1 }
  0xf8   :  { %v903_v9 = vadd.f32 %v2466_v42, %v902_v7  ;;  %v1023_v10 = vadd.f32 %v2466_v42, %v1022_v8 }
  0xf9   :  { %1667 = vst [vmem:[%s3452_s3 + $0x350] sm:$0xff] %v1471_v5 }
  0xfa   :  { %1717 = vst [vmem:[%s3452_s3 + $0x4e0] sm:$0xff] %v1521_v6  ;;  %v1376_v11 = vmax.f32 %v903_v9, 0.0  ;;  %v1424_v12 = vmax.f32 %v1023_v10, 0.0  ;;  %v2249_v10 = vld [vmem:[%s3450_s0 + $0x200] sm:$0xff] }
  0xfc   :  { %v1142_v13 = vpop.f32.mrf.mxu2  ;;  %v1267_v14 = vpop.f32.mrf.mxu3  ;;  %1572 = vst [vmem:[%s3452_s3 + $0x58] sm:$0xff] %v1376_v11  ;;  %v2274_v11 = vld [vmem:[%s3450_s0 + $0x2c8] sm:$0xff] }
  0xfd   :  { %v1143_v15 = vadd.f32 %v2466_v42, %v1142_v13  ;;  %v1268_v16 = vadd.f32 %v2466_v42, %v1267_v14  ;;  %1620 = vst [vmem:[%s3452_s3 + $0x1d8] sm:$0xff] %v1424_v12  ;;  %v2201_v12 = vld [vmem:[%s3450_s0 + $0x80] sm:$0xff] }
  0xfe   :  { %v2225_v13 = vld [vmem:[%s3450_s0 + $0x140] sm:$0xff] }
  0xff   :  { %v1472_v21 = vmax.f32 %v1143_v15, 0.0  ;;  %v1522_v22 = vmax.f32 %v1268_v16, 0.0  ;;  %v905_v23 = vpop.f32.mrf.mxu0  ;;  %v1025_v24 = vpop.f32.mrf.mxu1 }
 0x100   :  { %v906_v25 = vadd.f32 %v2466_v42, %v905_v23  ;;  %v1026_v26 = vadd.f32 %v2466_v42, %v1025_v24 }
 0x101   :  { %1668 = vst [vmem:[%s3452_s3 + $0x358] sm:$0xff] %v1472_v21  ;;  %1184 = vmatmul.bf16.gmra.mxu2 %v2247_v17  ;;  %1309 = vmatmul.bf16.gmra.mxu3 %v2272_v18 }
 0x102   :  { %1718 = vst [vmem:[%s3452_s3 + $0x4e8] sm:$0xff] %v1522_v22  ;;  %v1377_v27 = vmax.f32 %v906_v25, 0.0  ;;  %v1425_v28 = vmax.f32 %v1026_v26, 0.0  ;;  %944 = vmatmul.bf16.gmra.mxu0 %v2199_v19  ;;  %1064 = vmatmul.bf16.gmra.mxu1 %v2223_v20 }
 0x104   :  { %v1145_v29 = vpop.f32.mrf.mxu2  ;;  %v1270_v30 = vpop.f32.mrf.mxu3  ;;  %1573 = vst [vmem:[%s3452_s3 + $0x60] sm:$0xff] %v1377_v27 }
 0x105   :  { %v1146_v31 = vadd.f32 %v2466_v42, %v1145_v29  ;;  %v1271_v32 = vadd.f32 %v2466_v42, %v1270_v30  ;;  %1621 = vst [vmem:[%s3452_s3 + $0x1e0] sm:$0xff] %v1425_v28 }
 0x107   :  { %v1473_v33 = vmax.f32 %v1146_v31, 0.0  ;;  %v1523_v34 = vmax.f32 %v1271_v32, 0.0  ;;  %v907_v35 = vpop.f32.mrf.mxu0  ;;  %v1027_v36 = vpop.f32.mrf.mxu1 }
 0x108   :  { %v908_v37 = vadd.f32 %v2466_v42, %v907_v35  ;;  %v1028_v38 = vadd.f32 %v2466_v42, %v1027_v36 }
 0x109   :  { %1669 = vst [vmem:[%s3452_s3 + $0x360] sm:$0xff] %v1473_v33 }
 0x10a   :  { %1719 = vst [vmem:[%s3452_s3 + $0x4f0] sm:$0xff] %v1523_v34  ;;  %v1378_v39 = vmax.f32 %v908_v37, 0.0  ;;  %v1426_v40 = vmax.f32 %v1028_v38, 0.0  ;;  %v2250_v38 = vld [vmem:[%s3450_s0 + $0x208] sm:$0xff] }
 0x10c   :  { %v1147_v41 = vpop.f32.mrf.mxu2  ;;  %v1272_v43 = vpop.f32.mrf.mxu3  ;;  %1574 = vst [vmem:[%s3452_s3 + $0x68] sm:$0xff] %v1378_v39  ;;  %v2275_v39 = vld [vmem:[%s3450_s0 + $0x2d0] sm:$0xff] }
 0x10d   :  { %v1148_v44 = vadd.f32 %v2466_v42, %v1147_v41  ;;  %v1273_v45 = vadd.f32 %v2466_v42, %v1272_v43  ;;  %1622 = vst [vmem:[%s3452_s3 + $0x1e8] sm:$0xff] %v1426_v40  ;;  %v2202_v40 = vld [vmem:[%s3450_s0 + $0x88] sm:$0xff] }
 0x10e   :  { %v2226_v41 = vld [vmem:[%s3450_s0 + $0x148] sm:$0xff] }
 0x10f   :  { %v1474_v50 = vmax.f32 %v1148_v44, 0.0  ;;  %v1524_v51 = vmax.f32 %v1273_v45, 0.0  ;;  %v910_v52 = vpop.f32.mrf.mxu0  ;;  %v1030_v53 = vpop.f32.mrf.mxu1 }
 0x110   :  { %v911_v54 = vadd.f32 %v2466_v42, %v910_v52  ;;  %v1031_v55 = vadd.f32 %v2466_v42, %v1030_v53 }
 0x111   :  { %1670 = vst [vmem:[%s3452_s3 + $0x368] sm:$0xff] %v1474_v50  ;;  %1189 = vmatmul.bf16.gmra.mxu2 %v2248_v46  ;;  %1314 = vmatmul.bf16.gmra.mxu3 %v2273_v47 }
 0x112   :  { %1720 = vst [vmem:[%s3452_s3 + $0x4f8] sm:$0xff] %v1524_v51  ;;  %v1379_v56 = vmax.f32 %v911_v54, 0.0  ;;  %v1427_v57 = vmax.f32 %v1031_v55, 0.0  ;;  %949 = vmatmul.bf16.gmra.mxu0 %v2200_v48  ;;  %1069 = vmatmul.bf16.gmra.mxu1 %v2224_v49 }
 0x114   :  { %v1150_v58 = vpop.f32.mrf.mxu2  ;;  %v1275_v59 = vpop.f32.mrf.mxu3  ;;  %1575 = vst [vmem:[%s3452_s3 + $0x70] sm:$0xff] %v1379_v56 }
 0x115   :  { %v1151_v60 = vadd.f32 %v2466_v42, %v1150_v58  ;;  %v1276_v61 = vadd.f32 %v2466_v42, %v1275_v59  ;;  %1623 = vst [vmem:[%s3452_s3 + $0x1f0] sm:$0xff] %v1427_v57 }
 0x117   :  { %v1475_v62 = vmax.f32 %v1151_v60, 0.0  ;;  %v1525_v63 = vmax.f32 %v1276_v61, 0.0  ;;  %v912_v0 = vpop.f32.mrf.mxu0  ;;  %v1032_v1 = vpop.f32.mrf.mxu1 }
 0x118   :  { %v913_v2 = vadd.f32 %v2466_v42, %v912_v0  ;;  %v1033_v3 = vadd.f32 %v2466_v42, %v1032_v1 }
 0x119   :  { %1671 = vst [vmem:[%s3452_s3 + $0x370] sm:$0xff] %v1475_v62 }
 0x11a   :  { %1721 = vst [vmem:[%s3452_s3 + $0x500] sm:$0xff] %v1525_v63  ;;  %v1380_v4 = vmax.f32 %v913_v2, 0.0  ;;  %v1428_v5 = vmax.f32 %v1033_v3, 0.0  ;;  %v2251_v3 = vld [vmem:[%s3450_s0 + $0x210] sm:$0xff] }
 0x11c   :  { %v1152_v6 = vpop.f32.mrf.mxu2  ;;  %v1277_v7 = vpop.f32.mrf.mxu3  ;;  %1576 = vst [vmem:[%s3452_s3 + $0x78] sm:$0xff] %v1380_v4  ;;  %v2276_v4 = vld [vmem:[%s3450_s0 + $0x2d8] sm:$0xff] }
 0x11d   :  { %v1153_v8 = vadd.f32 %v2466_v42, %v1152_v6  ;;  %v1278_v9 = vadd.f32 %v2466_v42, %v1277_v7  ;;  %1624 = vst [vmem:[%s3452_s3 + $0x1f8] sm:$0xff] %v1428_v5  ;;  %v2203_v5 = vld [vmem:[%s3450_s0 + $0x90] sm:$0xff] }
 0x11e   :  { %v2227_v6 = vld [vmem:[%s3450_s0 + $0x150] sm:$0xff] }
 0x11f   :  { %v1476_v14 = vmax.f32 %v1153_v8, 0.0  ;;  %v1526_v15 = vmax.f32 %v1278_v9, 0.0  ;;  %v915_v16 = vpop.f32.mrf.mxu0  ;;  %v1035_v17 = vpop.f32.mrf.mxu1 }
 0x120   :  { %v916_v18 = vadd.f32 %v2466_v42, %v915_v16  ;;  %v1036_v19 = vadd.f32 %v2466_v42, %v1035_v17 }
 0x121   :  { %1672 = vst [vmem:[%s3452_s3 + $0x378] sm:$0xff] %v1476_v14  ;;  %1194 = vmatmul.bf16.gmra.mxu2 %v2249_v10  ;;  %1319 = vmatmul.bf16.gmra.mxu3 %v2274_v11 }
 0x122   :  { %1722 = vst [vmem:[%s3452_s3 + $0x508] sm:$0xff] %v1526_v15  ;;  %v1381_v20 = vmax.f32 %v916_v18, 0.0  ;;  %v1429_v21 = vmax.f32 %v1036_v19, 0.0  ;;  %954 = vmatmul.bf16.gmra.mxu0 %v2201_v12  ;;  %1074 = vmatmul.bf16.gmra.mxu1 %v2225_v13 }
 0x124   :  { %v1155_v22 = vpop.f32.mrf.mxu2  ;;  %v1280_v23 = vpop.f32.mrf.mxu3  ;;  %1577 = vst [vmem:[%s3452_s3 + $0x80] sm:$0xff] %v1381_v20 }
 0x125   :  { %v1156_v24 = vadd.f32 %v2466_v42, %v1155_v22  ;;  %v1281_v25 = vadd.f32 %v2466_v42, %v1280_v23  ;;  %1625 = vst [vmem:[%s3452_s3 + $0x200] sm:$0xff] %v1429_v21 }
 0x127   :  { %v1477_v26 = vmax.f32 %v1156_v24, 0.0  ;;  %v1527_v27 = vmax.f32 %v1281_v25, 0.0  ;;  %v917_v28 = vpop.f32.mrf.mxu0  ;;  %v1037_v29 = vpop.f32.mrf.mxu1 }
 0x128   :  { %v918_v30 = vadd.f32 %v2466_v42, %v917_v28  ;;  %v1038_v31 = vadd.f32 %v2466_v42, %v1037_v29 }
 0x129   :  { %1673 = vst [vmem:[%s3452_s3 + $0x380] sm:$0xff] %v1477_v26 }
 0x12a   :  { %1723 = vst [vmem:[%s3452_s3 + $0x510] sm:$0xff] %v1527_v27  ;;  %v1382_v32 = vmax.f32 %v918_v30, 0.0  ;;  %v1430_v33 = vmax.f32 %v1038_v31, 0.0  ;;  %v2252_v31 = vld [vmem:[%s3450_s0 + $0x218] sm:$0xff] }
 0x12c   :  { %v1157_v34 = vpop.f32.mrf.mxu2  ;;  %v1282_v35 = vpop.f32.mrf.mxu3  ;;  %1578 = vst [vmem:[%s3452_s3 + $0x88] sm:$0xff] %v1382_v32  ;;  %v2277_v32 = vld [vmem:[%s3450_s0 + $0x2e0] sm:$0xff] }
 0x12d   :  { %v1158_v36 = vadd.f32 %v2466_v42, %v1157_v34  ;;  %v1283_v37 = vadd.f32 %v2466_v42, %v1282_v35  ;;  %1626 = vst [vmem:[%s3452_s3 + $0x208] sm:$0xff] %v1430_v33  ;;  %v2204_v33 = vld [vmem:[%s3450_s0 + $0x98] sm:$0xff] }
 0x12e   :  { %v2228_v34 = vld [vmem:[%s3450_s0 + $0x158] sm:$0xff] }
 0x12f   :  { %v1478_v43 = vmax.f32 %v1158_v36, 0.0  ;;  %v1528_v44 = vmax.f32 %v1283_v37, 0.0  ;;  %v920_v45 = vpop.f32.mrf.mxu0  ;;  %v1040_v46 = vpop.f32.mrf.mxu1 }
 0x130   :  { %v921_v47 = vadd.f32 %v2466_v42, %v920_v45  ;;  %v1041_v48 = vadd.f32 %v2466_v42, %v1040_v46 }
 0x131   :  { %1674 = vst [vmem:[%s3452_s3 + $0x388] sm:$0xff] %v1478_v43  ;;  %1199 = vmatmul.bf16.gmra.mxu2 %v2250_v38  ;;  %1324 = vmatmul.bf16.gmra.mxu3 %v2275_v39 }
 0x132   :  { %1724 = vst [vmem:[%s3452_s3 + $0x518] sm:$0xff] %v1528_v44  ;;  %v1383_v49 = vmax.f32 %v921_v47, 0.0  ;;  %v1431_v50 = vmax.f32 %v1041_v48, 0.0  ;;  %959 = vmatmul.bf16.gmra.mxu0 %v2202_v40  ;;  %1079 = vmatmul.bf16.gmra.mxu1 %v2226_v41 }
 0x134   :  { %v1160_v51 = vpop.f32.mrf.mxu2  ;;  %v1285_v52 = vpop.f32.mrf.mxu3  ;;  %1579 = vst [vmem:[%s3452_s3 + $0x90] sm:$0xff] %v1383_v49 }
 0x135   :  { %v1161_v53 = vadd.f32 %v2466_v42, %v1160_v51  ;;  %v1286_v54 = vadd.f32 %v2466_v42, %v1285_v52  ;;  %1627 = vst [vmem:[%s3452_s3 + $0x210] sm:$0xff] %v1431_v50 }
 0x137   :  { %v1479_v55 = vmax.f32 %v1161_v53, 0.0  ;;  %v1529_v56 = vmax.f32 %v1286_v54, 0.0  ;;  %v922_v57 = vpop.f32.mrf.mxu0  ;;  %v1042_v58 = vpop.f32.mrf.mxu1 }
 0x138   :  { %v923_v59 = vadd.f32 %v2466_v42, %v922_v57  ;;  %v1043_v60 = vadd.f32 %v2466_v42, %v1042_v58 }
 0x139   :  { %1675 = vst [vmem:[%s3452_s3 + $0x390] sm:$0xff] %v1479_v55 }
 0x13a   :  { %1725 = vst [vmem:[%s3452_s3 + $0x520] sm:$0xff] %v1529_v56  ;;  %v1384_v61 = vmax.f32 %v923_v59, 0.0  ;;  %v1432_v62 = vmax.f32 %v1043_v60, 0.0  ;;  %v2253_v60 = vld [vmem:[%s3450_s0 + $0x220] sm:$0xff] }
 0x13c   :  { %v1162_v63 = vpop.f32.mrf.mxu2  ;;  %v1287_v0 = vpop.f32.mrf.mxu3  ;;  %1580 = vst [vmem:[%s3452_s3 + $0x98] sm:$0xff] %v1384_v61  ;;  %v2278_v61 = vld [vmem:[%s3450_s0 + $0x2e8] sm:$0xff] }
 0x13d   :  { %v1163_v1 = vadd.f32 %v2466_v42, %v1162_v63  ;;  %v1288_v2 = vadd.f32 %v2466_v42, %v1287_v0  ;;  %1628 = vst [vmem:[%s3452_s3 + $0x218] sm:$0xff] %v1432_v62  ;;  %v2205_v62 = vld [vmem:[%s3450_s0 + $0xa0] sm:$0xff] }
 0x13e   :  { %v2229_v63 = vld [vmem:[%s3450_s0 + $0x160] sm:$0xff] }
 0x13f   :  { %v1480_v7 = vmax.f32 %v1163_v1, 0.0  ;;  %v1530_v8 = vmax.f32 %v1288_v2, 0.0  ;;  %v925_v9 = vpop.f32.mrf.mxu0  ;;  %v1045_v10 = vpop.f32.mrf.mxu1 }
 0x140   :  { %v926_v11 = vadd.f32 %v2466_v42, %v925_v9  ;;  %v1046_v12 = vadd.f32 %v2466_v42, %v1045_v10 }
 0x141   :  { %1676 = vst [vmem:[%s3452_s3 + $0x398] sm:$0xff] %v1480_v7  ;;  %1204 = vmatmul.bf16.gmra.mxu2 %v2251_v3  ;;  %1329 = vmatmul.bf16.gmra.mxu3 %v2276_v4 }
 0x142   :  { %1726 = vst [vmem:[%s3452_s3 + $0x528] sm:$0xff] %v1530_v8  ;;  %v1385_v13 = vmax.f32 %v926_v11, 0.0  ;;  %v1433_v14 = vmax.f32 %v1046_v12, 0.0  ;;  %964 = vmatmul.bf16.gmra.mxu0 %v2203_v5  ;;  %1084 = vmatmul.bf16.gmra.mxu1 %v2227_v6 }
 0x144   :  { %v1165_v15 = vpop.f32.mrf.mxu2  ;;  %v1290_v16 = vpop.f32.mrf.mxu3  ;;  %1581 = vst [vmem:[%s3452_s3 + $0xa0] sm:$0xff] %v1385_v13 }
 0x145   :  { %v1166_v17 = vadd.f32 %v2466_v42, %v1165_v15  ;;  %v1291_v18 = vadd.f32 %v2466_v42, %v1290_v16  ;;  %1629 = vst [vmem:[%s3452_s3 + $0x220] sm:$0xff] %v1433_v14 }
 0x147   :  { %v1481_v19 = vmax.f32 %v1166_v17, 0.0  ;;  %v1531_v20 = vmax.f32 %v1291_v18, 0.0  ;;  %v927_v21 = vpop.f32.mrf.mxu0  ;;  %v1047_v22 = vpop.f32.mrf.mxu1 }
 0x148   :  { %v928_v23 = vadd.f32 %v2466_v42, %v927_v21  ;;  %v1048_v24 = vadd.f32 %v2466_v42, %v1047_v22 }
 0x149   :  { %1677 = vst [vmem:[%s3452_s3 + $0x3a0] sm:$0xff] %v1481_v19 }
 0x14a   :  { %1727 = vst [vmem:[%s3452_s3 + $0x530] sm:$0xff] %v1531_v20  ;;  %v1386_v25 = vmax.f32 %v928_v23, 0.0  ;;  %v1434_v26 = vmax.f32 %v1048_v24, 0.0  ;;  %v2254_v24 = vld [vmem:[%s3450_s0 + $0x228] sm:$0xff] }
 0x14c   :  { %v1167_v27 = vpop.f32.mrf.mxu2  ;;  %v1292_v28 = vpop.f32.mrf.mxu3  ;;  %1582 = vst [vmem:[%s3452_s3 + $0xa8] sm:$0xff] %v1386_v25  ;;  %v2279_v25 = vld [vmem:[%s3450_s0 + $0x2f0] sm:$0xff] }
 0x14d   :  { %v1168_v29 = vadd.f32 %v2466_v42, %v1167_v27  ;;  %v1293_v30 = vadd.f32 %v2466_v42, %v1292_v28  ;;  %1630 = vst [vmem:[%s3452_s3 + $0x228] sm:$0xff] %v1434_v26  ;;  %v2206_v26 = vld [vmem:[%s3450_s0 + $0xa8] sm:$0xff] }
 0x14e   :  { %v2230_v27 = vld [vmem:[%s3450_s0 + $0x168] sm:$0xff] }
 0x14f   :  { %v1482_v35 = vmax.f32 %v1168_v29, 0.0  ;;  %v1532_v36 = vmax.f32 %v1293_v30, 0.0  ;;  %v930_v37 = vpop.f32.mrf.mxu0  ;;  %v1050_v38 = vpop.f32.mrf.mxu1 }
 0x150   :  { %v931_v39 = vadd.f32 %v2466_v42, %v930_v37  ;;  %v1051_v40 = vadd.f32 %v2466_v42, %v1050_v38 }
 0x151   :  { %1678 = vst [vmem:[%s3452_s3 + $0x3a8] sm:$0xff] %v1482_v35  ;;  %1209 = vmatmul.bf16.gmra.mxu2 %v2252_v31  ;;  %1334 = vmatmul.bf16.gmra.mxu3 %v2277_v32 }
 0x152   :  { %1728 = vst [vmem:[%s3452_s3 + $0x538] sm:$0xff] %v1532_v36  ;;  %v1387_v41 = vmax.f32 %v931_v39, 0.0  ;;  %v1435_v43 = vmax.f32 %v1051_v40, 0.0  ;;  %969 = vmatmul.bf16.gmra.mxu0 %v2204_v33  ;;  %1089 = vmatmul.bf16.gmra.mxu1 %v2228_v34 }
 0x154   :  { %v1170_v44 = vpop.f32.mrf.mxu2  ;;  %v1295_v45 = vpop.f32.mrf.mxu3  ;;  %1583 = vst [vmem:[%s3452_s3 + $0xb0] sm:$0xff] %v1387_v41 }
 0x155   :  { %v1171_v46 = vadd.f32 %v2466_v42, %v1170_v44  ;;  %v1296_v47 = vadd.f32 %v2466_v42, %v1295_v45  ;;  %1631 = vst [vmem:[%s3452_s3 + $0x230] sm:$0xff] %v1435_v43 }
 0x157   :  { %v1483_v48 = vmax.f32 %v1171_v46, 0.0  ;;  %v1533_v49 = vmax.f32 %v1296_v47, 0.0  ;;  %v932_v50 = vpop.f32.mrf.mxu0  ;;  %v1052_v51 = vpop.f32.mrf.mxu1 }
 0x158   :  { %v933_v52 = vadd.f32 %v2466_v42, %v932_v50  ;;  %v1053_v53 = vadd.f32 %v2466_v42, %v1052_v51 }
 0x159   :  { %1679 = vst [vmem:[%s3452_s3 + $0x3b0] sm:$0xff] %v1483_v48 }
 0x15a   :  { %1729 = vst [vmem:[%s3452_s3 + $0x540] sm:$0xff] %v1533_v49  ;;  %v1388_v54 = vmax.f32 %v933_v52, 0.0  ;;  %v1436_v55 = vmax.f32 %v1053_v53, 0.0  ;;  %v2255_v53 = vld [vmem:[%s3450_s0 + $0x230] sm:$0xff] }
 0x15c   :  { %v1172_v56 = vpop.f32.mrf.mxu2  ;;  %v1297_v57 = vpop.f32.mrf.mxu3  ;;  %1584 = vst [vmem:[%s3452_s3 + $0xb8] sm:$0xff] %v1388_v54  ;;  %v2280_v54 = vld [vmem:[%s3450_s0 + $0x2f8] sm:$0xff] }
 0x15d   :  { %v1173_v58 = vadd.f32 %v2466_v42, %v1172_v56  ;;  %v1298_v59 = vadd.f32 %v2466_v42, %v1297_v57  ;;  %1632 = vst [vmem:[%s3452_s3 + $0x238] sm:$0xff] %v1436_v55  ;;  %v2207_v55 = vld [vmem:[%s3450_s0 + $0xb0] sm:$0xff] }
 0x15e   :  { %v2231_v56 = vld [vmem:[%s3450_s0 + $0x170] sm:$0xff] }
 0x15f   :  { %v1484_v0 = vmax.f32 %v1173_v58, 0.0  ;;  %v1534_v1 = vmax.f32 %v1298_v59, 0.0  ;;  %v935_v2 = vpop.f32.mrf.mxu0  ;;  %v1055_v3 = vpop.f32.mrf.mxu1 }
 0x160   :  { %v936_v4 = vadd.f32 %v2466_v42, %v935_v2  ;;  %v1056_v5 = vadd.f32 %v2466_v42, %v1055_v3 }
 0x161   :  { %1680 = vst [vmem:[%s3452_s3 + $0x3b8] sm:$0xff] %v1484_v0  ;;  %1214 = vmatmul.bf16.gmra.mxu2 %v2253_v60  ;;  %1339 = vmatmul.bf16.gmra.mxu3 %v2278_v61 }
 0x162   :  { %1730 = vst [vmem:[%s3452_s3 + $0x548] sm:$0xff] %v1534_v1  ;;  %v1389_v6 = vmax.f32 %v936_v4, 0.0  ;;  %v1437_v7 = vmax.f32 %v1056_v5, 0.0  ;;  %974 = vmatmul.bf16.gmra.mxu0 %v2205_v62  ;;  %1094 = vmatmul.bf16.gmra.mxu1 %v2229_v63 }
 0x164   :  { %v1175_v8 = vpop.f32.mrf.mxu2  ;;  %v1300_v9 = vpop.f32.mrf.mxu3  ;;  %1585 = vst [vmem:[%s3452_s3 + $0xc0] sm:$0xff] %v1389_v6 }
 0x165   :  { %v1176_v10 = vadd.f32 %v2466_v42, %v1175_v8  ;;  %v1301_v11 = vadd.f32 %v2466_v42, %v1300_v9  ;;  %1633 = vst [vmem:[%s3452_s3 + $0x240] sm:$0xff] %v1437_v7 }
 0x167   :  { %v1485_v12 = vmax.f32 %v1176_v10, 0.0  ;;  %v1535_v13 = vmax.f32 %v1301_v11, 0.0  ;;  %v937_v14 = vpop.f32.mrf.mxu0  ;;  %v1057_v15 = vpop.f32.mrf.mxu1 }
 0x168   :  { %v938_v16 = vadd.f32 %v2466_v42, %v937_v14  ;;  %v1058_v17 = vadd.f32 %v2466_v42, %v1057_v15  ;;  %v3026_v42 = vld [vmem:[%s3451_s2] ss:$0 sm:$0xff] }
 0x169   :  { %1681 = vst [vmem:[%s3452_s3 + $0x3c0] sm:$0xff] %v1485_v12 }
 0x16a   :  { %1731 = vst [vmem:[%s3452_s3 + $0x550] sm:$0xff] %v1535_v13  ;;  %v1390_v18 = vmax.f32 %v938_v16, 0.0  ;;  %v1438_v19 = vmax.f32 %v1058_v17, 0.0  ;;  %v2256_v17 = vld [vmem:[%s3450_s0 + $0x238] sm:$0xff] }
 0x16c   :  { %v1177_v20 = vpop.f32.mrf.mxu2  ;;  %v1302_v21 = vpop.f32.mrf.mxu3  ;;  %1586 = vst [vmem:[%s3452_s3 + $0xc8] sm:$0xff] %v1390_v18  ;;  %v2281_v18 = vld [vmem:[%s3450_s0 + $0x300] sm:$0xff] }
 0x16d   :  { %v1178_v22 = vadd.f32 %v3026_v42, %v1177_v20  ;;  %v1303_v23 = vadd.f32 %v3026_v42, %v1302_v21  ;;  %1634 = vst [vmem:[%s3452_s3 + $0x248] sm:$0xff] %v1438_v19  ;;  %v2208_v19 = vld [vmem:[%s3450_s0 + $0xb8] sm:$0xff] }
 0x16e   :  { %v2232_v20 = vld [vmem:[%s3450_s0 + $0x178] sm:$0xff] }
 0x16f   :  { %v1486_v28 = vmax.f32 %v1178_v22, 0.0  ;;  %v1536_v29 = vmax.f32 %v1303_v23, 0.0  ;;  %v940_v30 = vpop.f32.mrf.mxu0  ;;  %v1060_v31 = vpop.f32.mrf.mxu1 }
 0x170   :  { %v941_v32 = vadd.f32 %v3026_v42, %v940_v30  ;;  %v1061_v33 = vadd.f32 %v3026_v42, %v1060_v31 }
 0x171   :  { %1682 = vst [vmem:[%s3452_s3 + $0x3c8] sm:$0xff] %v1486_v28  ;;  %1219 = vmatmul.bf16.gmra.mxu2 %v2254_v24  ;;  %1344 = vmatmul.bf16.gmra.mxu3 %v2279_v25 }
 0x172   :  { %1732 = vst [vmem:[%s3452_s3 + $0x558] sm:$0xff] %v1536_v29  ;;  %v1391_v34 = vmax.f32 %v941_v32, 0.0  ;;  %v1439_v35 = vmax.f32 %v1061_v33, 0.0  ;;  %979 = vmatmul.bf16.gmra.mxu0 %v2206_v26  ;;  %1099 = vmatmul.bf16.gmra.mxu1 %v2230_v27 }
 0x174   :  { %v1180_v36 = vpop.f32.mrf.mxu2  ;;  %v1305_v37 = vpop.f32.mrf.mxu3  ;;  %1587 = vst [vmem:[%s3452_s3 + $0xd0] sm:$0xff] %v1391_v34 }
 0x175   :  { %v1181_v38 = vadd.f32 %v3026_v42, %v1180_v36  ;;  %v1306_v39 = vadd.f32 %v3026_v42, %v1305_v37  ;;  %1635 = vst [vmem:[%s3452_s3 + $0x250] sm:$0xff] %v1439_v35 }
 0x177   :  { %v1487_v40 = vmax.f32 %v1181_v38, 0.0  ;;  %v1537_v41 = vmax.f32 %v1306_v39, 0.0  ;;  %v942_v43 = vpop.f32.mrf.mxu0  ;;  %v1062_v44 = vpop.f32.mrf.mxu1 }
 0x178   :  { %v943_v45 = vadd.f32 %v3026_v42, %v942_v43  ;;  %v1063_v46 = vadd.f32 %v3026_v42, %v1062_v44 }
 0x179   :  { %1683 = vst [vmem:[%s3452_s3 + $0x3d0] sm:$0xff] %v1487_v40 }
 0x17a   :  { %1733 = vst [vmem:[%s3452_s3 + $0x560] sm:$0xff] %v1537_v41  ;;  %v1392_v47 = vmax.f32 %v943_v45, 0.0  ;;  %v1440_v48 = vmax.f32 %v1063_v46, 0.0  ;;  %v2257_v46 = vld [vmem:[%s3450_s0 + $0x240] sm:$0xff] }
 0x17c   :  { %v1182_v49 = vpop.f32.mrf.mxu2  ;;  %v1307_v50 = vpop.f32.mrf.mxu3  ;;  %1588 = vst [vmem:[%s3452_s3 + $0xd8] sm:$0xff] %v1392_v47  ;;  %v2282_v47 = vld [vmem:[%s3450_s0 + $0x308] sm:$0xff] }
 0x17d   :  { %v1183_v51 = vadd.f32 %v3026_v42, %v1182_v49  ;;  %v1308_v52 = vadd.f32 %v3026_v42, %v1307_v50  ;;  %1636 = vst [vmem:[%s3452_s3 + $0x258] sm:$0xff] %v1440_v48 }
 0x17f   :  { %v1488_v57 = vmax.f32 %v1183_v51, 0.0  ;;  %v1538_v58 = vmax.f32 %v1308_v52, 0.0  ;;  %v945_v59 = vpop.f32.mrf.mxu0  ;;  %v1065_v60 = vpop.f32.mrf.mxu1 }
 0x180   :  { %v946_v61 = vadd.f32 %v3026_v42, %v945_v59  ;;  %v1066_v62 = vadd.f32 %v3026_v42, %v1065_v60 }
 0x181   :  { %1684 = vst [vmem:[%s3452_s3 + $0x3d8] sm:$0xff] %v1488_v57  ;;  %1224 = vmatmul.bf16.gmra.mxu2 %v2255_v53  ;;  %1349 = vmatmul.bf16.gmra.mxu3 %v2280_v54 }
 0x182   :  { %1734 = vst [vmem:[%s3452_s3 + $0x568] sm:$0xff] %v1538_v58  ;;  %v1393_v63 = vmax.f32 %v946_v61, 0.0  ;;  %v1441_v0 = vmax.f32 %v1066_v62, 0.0  ;;  %984 = vmatmul.bf16.gmra.mxu0 %v2207_v55  ;;  %1104 = vmatmul.bf16.gmra.mxu1 %v2231_v56 }
 0x184   :  { %v1185_v1 = vpop.f32.mrf.mxu2  ;;  %v1310_v2 = vpop.f32.mrf.mxu3  ;;  %1589 = vst [vmem:[%s3452_s3 + $0xe0] sm:$0xff] %v1393_v63 }
 0x185   :  { %v1186_v3 = vadd.f32 %v3026_v42, %v1185_v1  ;;  %v1311_v4 = vadd.f32 %v3026_v42, %v1310_v2  ;;  %1637 = vst [vmem:[%s3452_s3 + $0x260] sm:$0xff] %v1441_v0 }
 0x187   :  { %v1489_v5 = vmax.f32 %v1186_v3, 0.0  ;;  %v1539_v6 = vmax.f32 %v1311_v4, 0.0  ;;  %v947_v7 = vpop.f32.mrf.mxu0  ;;  %v1067_v8 = vpop.f32.mrf.mxu1 }
 0x188   :  { %v948_v9 = vadd.f32 %v3026_v42, %v947_v7  ;;  %v1068_v10 = vadd.f32 %v3026_v42, %v1067_v8 }
 0x189   :  { %1685 = vst [vmem:[%s3452_s3 + $0x3e0] sm:$0xff] %v1489_v5 }
 0x18a   :  { %1735 = vst [vmem:[%s3452_s3 + $0x570] sm:$0xff] %v1539_v6  ;;  %v1394_v11 = vmax.f32 %v948_v9, 0.0  ;;  %v1442_v12 = vmax.f32 %v1068_v10, 0.0 }
 0x18c   :  { %v1187_v13 = vpop.f32.mrf.mxu2  ;;  %v1312_v14 = vpop.f32.mrf.mxu3  ;;  %1590 = vst [vmem:[%s3452_s3 + $0xe8] sm:$0xff] %v1394_v11 }
 0x18d   :  { %v1188_v15 = vadd.f32 %v3026_v42, %v1187_v13  ;;  %v1313_v16 = vadd.f32 %v3026_v42, %v1312_v14  ;;  %1638 = vst [vmem:[%s3452_s3 + $0x268] sm:$0xff] %v1442_v12 }
 0x18f   :  { %v1490_v21 = vmax.f32 %v1188_v15, 0.0  ;;  %v1540_v22 = vmax.f32 %v1313_v16, 0.0  ;;  %v950_v23 = vpop.f32.mrf.mxu0  ;;  %v1070_v24 = vpop.f32.mrf.mxu1 }
 0x190   :  { %v951_v25 = vadd.f32 %v3026_v42, %v950_v23  ;;  %v1071_v26 = vadd.f32 %v3026_v42, %v1070_v24 }
 0x191   :  { %1686 = vst [vmem:[%s3452_s3 + $0x3e8] sm:$0xff] %v1490_v21  ;;  %1229 = vmatmul.bf16.gmra.mxu2 %v2256_v17  ;;  %1354 = vmatmul.bf16.gmra.mxu3 %v2281_v18 }
 0x192   :  { %1736 = vst [vmem:[%s3452_s3 + $0x578] sm:$0xff] %v1540_v22  ;;  %v1395_v27 = vmax.f32 %v951_v25, 0.0  ;;  %v1443_v28 = vmax.f32 %v1071_v26, 0.0  ;;  %989 = vmatmul.bf16.gmra.mxu0 %v2208_v19  ;;  %1109 = vmatmul.bf16.gmra.mxu1 %v2232_v20 }
 0x194   :  { %v1190_v29 = vpop.f32.mrf.mxu2  ;;  %v1315_v30 = vpop.f32.mrf.mxu3  ;;  %1591 = vst [vmem:[%s3452_s3 + $0xf0] sm:$0xff] %v1395_v27 }
 0x195   :  { %v1191_v31 = vadd.f32 %v3026_v42, %v1190_v29  ;;  %v1316_v32 = vadd.f32 %v3026_v42, %v1315_v30  ;;  %1639 = vst [vmem:[%s3452_s3 + $0x270] sm:$0xff] %v1443_v28 }
 0x197   :  { %v1491_v33 = vmax.f32 %v1191_v31, 0.0  ;;  %v1541_v34 = vmax.f32 %v1316_v32, 0.0  ;;  %v952_v35 = vpop.f32.mrf.mxu0  ;;  %v1072_v36 = vpop.f32.mrf.mxu1 }
 0x198   :  { %v953_v37 = vadd.f32 %v3026_v42, %v952_v35  ;;  %v1073_v38 = vadd.f32 %v3026_v42, %v1072_v36 }
 0x199   :  { %1687 = vst [vmem:[%s3452_s3 + $0x3f0] sm:$0xff] %v1491_v33 }
 0x19a   :  { %1737 = vst [vmem:[%s3452_s3 + $0x580] sm:$0xff] %v1541_v34  ;;  %v1396_v39 = vmax.f32 %v953_v37, 0.0  ;;  %v1444_v40 = vmax.f32 %v1073_v38, 0.0 }
 0x19c   :  { %v1192_v41 = vpop.f32.mrf.mxu2  ;;  %v1317_v43 = vpop.f32.mrf.mxu3  ;;  %1592 = vst [vmem:[%s3452_s3 + $0xf8] sm:$0xff] %v1396_v39 }
 0x19d   :  { %v1193_v44 = vadd.f32 %v3026_v42, %v1192_v41  ;;  %v1318_v45 = vadd.f32 %v3026_v42, %v1317_v43  ;;  %1640 = vst [vmem:[%s3452_s3 + $0x278] sm:$0xff] %v1444_v40 }
 0x19f   :  { %v1492_v48 = vmax.f32 %v1193_v44, 0.0  ;;  %v1542_v49 = vmax.f32 %v1318_v45, 0.0  ;;  %v955_v50 = vpop.f32.mrf.mxu0  ;;  %v1075_v51 = vpop.f32.mrf.mxu1 }
 0x1a0   :  { %v956_v52 = vadd.f32 %v3026_v42, %v955_v50  ;;  %v1076_v53 = vadd.f32 %v3026_v42, %v1075_v51 }
 0x1a1   :  { %1688 = vst [vmem:[%s3452_s3 + $0x3f8] sm:$0xff] %v1492_v48  ;;  %1234 = vmatmul.bf16.gmra.mxu2 %v2257_v46  ;;  %1359 = vmatmul.bf16.gmra.mxu3 %v2282_v47 }
 0x1a2   :  { %1738 = vst [vmem:[%s3452_s3 + $0x588] sm:$0xff] %v1542_v49  ;;  %v1397_v54 = vmax.f32 %v956_v52, 0.0  ;;  %v1445_v55 = vmax.f32 %v1076_v53, 0.0 }
 0x1a4   :  { %v1195_v56 = vpop.f32.mrf.mxu2  ;;  %v1320_v57 = vpop.f32.mrf.mxu3  ;;  %1593 = vst [vmem:[%s3452_s3 + $0x100] sm:$0xff] %v1397_v54 }
 0x1a5   :  { %v1196_v58 = vadd.f32 %v3026_v42, %v1195_v56  ;;  %v1321_v59 = vadd.f32 %v3026_v42, %v1320_v57  ;;  %1641 = vst [vmem:[%s3452_s3 + $0x280] sm:$0xff] %v1445_v55 }
 0x1a7   :  { %v1493_v60 = vmax.f32 %v1196_v58, 0.0  ;;  %v1543_v61 = vmax.f32 %v1321_v59, 0.0  ;;  %v957_v62 = vpop.f32.mrf.mxu0  ;;  %v1077_v63 = vpop.f32.mrf.mxu1 }
 0x1a8   :  { %v958_v0 = vadd.f32 %v3026_v42, %v957_v62  ;;  %v1078_v1 = vadd.f32 %v3026_v42, %v1077_v63 }
 0x1a9   :  { %1689 = vst [vmem:[%s3452_s3 + $0x400] sm:$0xff] %v1493_v60 }
 0x1aa   :  { %1739 = vst [vmem:[%s3452_s3 + $0x590] sm:$0xff] %v1543_v61  ;;  %v1398_v2 = vmax.f32 %v958_v0, 0.0  ;;  %v1446_v3 = vmax.f32 %v1078_v1, 0.0 }
 0x1ac   :  { %v1197_v4 = vpop.f32.mrf.mxu2  ;;  %v1322_v5 = vpop.f32.mrf.mxu3  ;;  %1594 = vst [vmem:[%s3452_s3 + $0x108] sm:$0xff] %v1398_v2 }
 0x1ad   :  { %v1198_v6 = vadd.f32 %v3026_v42, %v1197_v4  ;;  %v1323_v7 = vadd.f32 %v3026_v42, %v1322_v5  ;;  %1642 = vst [vmem:[%s3452_s3 + $0x288] sm:$0xff] %v1446_v3 }
 0x1af   :  { %v1494_v8 = vmax.f32 %v1198_v6, 0.0  ;;  %v1544_v9 = vmax.f32 %v1323_v7, 0.0  ;;  %v960_v10 = vpop.f32.mrf.mxu0  ;;  %v1080_v11 = vpop.f32.mrf.mxu1 }
 0x1b0   :  { %v961_v12 = vadd.f32 %v3026_v42, %v960_v10  ;;  %v1081_v13 = vadd.f32 %v3026_v42, %v1080_v11 }
 0x1b1   :  { %1690 = vst [vmem:[%s3452_s3 + $0x408] sm:$0xff] %v1494_v8 }
 0x1b2   :  { %1740 = vst [vmem:[%s3452_s3 + $0x598] sm:$0xff] %v1544_v9  ;;  %v1399_v14 = vmax.f32 %v961_v12, 0.0  ;;  %v1447_v15 = vmax.f32 %v1081_v13, 0.0 }
 0x1b4   :  { %v1200_v16 = vpop.f32.mrf.mxu2  ;;  %v1325_v17 = vpop.f32.mrf.mxu3  ;;  %1595 = vst [vmem:[%s3452_s3 + $0x110] sm:$0xff] %v1399_v14 }
 0x1b5   :  { %v1201_v18 = vadd.f32 %v3026_v42, %v1200_v16  ;;  %v1326_v19 = vadd.f32 %v3026_v42, %v1325_v17  ;;  %1643 = vst [vmem:[%s3452_s3 + $0x290] sm:$0xff] %v1447_v15 }
 0x1b7   :  { %v1495_v20 = vmax.f32 %v1201_v18, 0.0  ;;  %v1545_v21 = vmax.f32 %v1326_v19, 0.0  ;;  %v962_v22 = vpop.f32.mrf.mxu0  ;;  %v1082_v23 = vpop.f32.mrf.mxu1 }
 0x1b8   :  { %v963_v24 = vadd.f32 %v3026_v42, %v962_v22  ;;  %v1083_v25 = vadd.f32 %v3026_v42, %v1082_v23 }
 0x1b9   :  { %1691 = vst [vmem:[%s3452_s3 + $0x410] sm:$0xff] %v1495_v20 }
 0x1ba   :  { %1741 = vst [vmem:[%s3452_s3 + $0x5a0] sm:$0xff] %v1545_v21  ;;  %v1400_v26 = vmax.f32 %v963_v24, 0.0  ;;  %v1448_v27 = vmax.f32 %v1083_v25, 0.0 }
 0x1bc   :  { %v1202_v28 = vpop.f32.mrf.mxu2  ;;  %v1327_v29 = vpop.f32.mrf.mxu3  ;;  %1596 = vst [vmem:[%s3452_s3 + $0x118] sm:$0xff] %v1400_v26 }
 0x1bd   :  { %v1203_v30 = vadd.f32 %v3026_v42, %v1202_v28  ;;  %v1328_v31 = vadd.f32 %v3026_v42, %v1327_v29  ;;  %1644 = vst [vmem:[%s3452_s3 + $0x298] sm:$0xff] %v1448_v27 }
 0x1bf   :  { %v1496_v32 = vmax.f32 %v1203_v30, 0.0  ;;  %v1546_v33 = vmax.f32 %v1328_v31, 0.0  ;;  %v965_v34 = vpop.f32.mrf.mxu0  ;;  %v1085_v35 = vpop.f32.mrf.mxu1 }
 0x1c0   :  { %v966_v36 = vadd.f32 %v3026_v42, %v965_v34  ;;  %v1086_v37 = vadd.f32 %v3026_v42, %v1085_v35 }
 0x1c1   :  { %1692 = vst [vmem:[%s3452_s3 + $0x418] sm:$0xff] %v1496_v32 }
 0x1c2   :  { %1742 = vst [vmem:[%s3452_s3 + $0x5a8] sm:$0xff] %v1546_v33  ;;  %v1401_v38 = vmax.f32 %v966_v36, 0.0  ;;  %v1449_v39 = vmax.f32 %v1086_v37, 0.0 }
 0x1c4   :  { %v1205_v40 = vpop.f32.mrf.mxu2  ;;  %v1330_v41 = vpop.f32.mrf.mxu3  ;;  %1597 = vst [vmem:[%s3452_s3 + $0x120] sm:$0xff] %v1401_v38 }
 0x1c5   :  { %v1206_v43 = vadd.f32 %v3026_v42, %v1205_v40  ;;  %v1331_v44 = vadd.f32 %v3026_v42, %v1330_v41  ;;  %1645 = vst [vmem:[%s3452_s3 + $0x2a0] sm:$0xff] %v1449_v39 }
 0x1c7   :  { %v1497_v45 = vmax.f32 %v1206_v43, 0.0  ;;  %v1547_v46 = vmax.f32 %v1331_v44, 0.0  ;;  %v967_v47 = vpop.f32.mrf.mxu0  ;;  %v1087_v48 = vpop.f32.mrf.mxu1 }
 0x1c8   :  { %v968_v49 = vadd.f32 %v3026_v42, %v967_v47  ;;  %v1088_v50 = vadd.f32 %v3026_v42, %v1087_v48 }
 0x1c9   :  { %1693 = vst [vmem:[%s3452_s3 + $0x420] sm:$0xff] %v1497_v45 }
 0x1ca   :  { %1743 = vst [vmem:[%s3452_s3 + $0x5b0] sm:$0xff] %v1547_v46  ;;  %v1402_v51 = vmax.f32 %v968_v49, 0.0  ;;  %v1450_v52 = vmax.f32 %v1088_v50, 0.0 }
 0x1cc   :  { %v1207_v53 = vpop.f32.mrf.mxu2  ;;  %v1332_v54 = vpop.f32.mrf.mxu3  ;;  %1598 = vst [vmem:[%s3452_s3 + $0x128] sm:$0xff] %v1402_v51 }
 0x1cd   :  { %v1208_v55 = vadd.f32 %v3026_v42, %v1207_v53  ;;  %v1333_v56 = vadd.f32 %v3026_v42, %v1332_v54  ;;  %1646 = vst [vmem:[%s3452_s3 + $0x2a8] sm:$0xff] %v1450_v52 }
 0x1cf   :  { %v1498_v57 = vmax.f32 %v1208_v55, 0.0  ;;  %v1548_v58 = vmax.f32 %v1333_v56, 0.0  ;;  %v970_v59 = vpop.f32.mrf.mxu0  ;;  %v1090_v60 = vpop.f32.mrf.mxu1 }
 0x1d0   :  { %v971_v61 = vadd.f32 %v3026_v42, %v970_v59  ;;  %v1091_v62 = vadd.f32 %v3026_v42, %v1090_v60 }
 0x1d1   :  { %1694 = vst [vmem:[%s3452_s3 + $0x428] sm:$0xff] %v1498_v57 }
 0x1d2   :  { %1744 = vst [vmem:[%s3452_s3 + $0x5b8] sm:$0xff] %v1548_v58  ;;  %v1403_v63 = vmax.f32 %v971_v61, 0.0  ;;  %v1451_v0 = vmax.f32 %v1091_v62, 0.0 }
 0x1d4   :  { %v1210_v1 = vpop.f32.mrf.mxu2  ;;  %v1335_v2 = vpop.f32.mrf.mxu3  ;;  %1599 = vst [vmem:[%s3452_s3 + $0x130] sm:$0xff] %v1403_v63 }
 0x1d5   :  { %v1211_v3 = vadd.f32 %v3026_v42, %v1210_v1  ;;  %v1336_v4 = vadd.f32 %v3026_v42, %v1335_v2  ;;  %1647 = vst [vmem:[%s3452_s3 + $0x2b0] sm:$0xff] %v1451_v0 }
 0x1d7   :  { %v1499_v5 = vmax.f32 %v1211_v3, 0.0  ;;  %v1549_v6 = vmax.f32 %v1336_v4, 0.0  ;;  %v972_v7 = vpop.f32.mrf.mxu0  ;;  %v1092_v8 = vpop.f32.mrf.mxu1 }
 0x1d8   :  { %v973_v9 = vadd.f32 %v3026_v42, %v972_v7  ;;  %v1093_v10 = vadd.f32 %v3026_v42, %v1092_v8 }
 0x1d9   :  { %1695 = vst [vmem:[%s3452_s3 + $0x430] sm:$0xff] %v1499_v5 }
 0x1da   :  { %1745 = vst [vmem:[%s3452_s3 + $0x5c0] sm:$0xff] %v1549_v6  ;;  %v1404_v11 = vmax.f32 %v973_v9, 0.0  ;;  %v1452_v12 = vmax.f32 %v1093_v10, 0.0 }
 0x1dc   :  { %v1212_v13 = vpop.f32.mrf.mxu2  ;;  %v1337_v14 = vpop.f32.mrf.mxu3  ;;  %1600 = vst [vmem:[%s3452_s3 + $0x138] sm:$0xff] %v1404_v11 }
 0x1dd   :  { %v1213_v15 = vadd.f32 %v3026_v42, %v1212_v13  ;;  %v1338_v16 = vadd.f32 %v3026_v42, %v1337_v14  ;;  %1648 = vst [vmem:[%s3452_s3 + $0x2b8] sm:$0xff] %v1452_v12 }
 0x1df   :  { %v1500_v17 = vmax.f32 %v1213_v15, 0.0  ;;  %v1550_v18 = vmax.f32 %v1338_v16, 0.0  ;;  %v975_v19 = vpop.f32.mrf.mxu0  ;;  %v1095_v20 = vpop.f32.mrf.mxu1 }
 0x1e0   :  { %v976_v21 = vadd.f32 %v3026_v42, %v975_v19  ;;  %v1096_v22 = vadd.f32 %v3026_v42, %v1095_v20 }
 0x1e1   :  { %1696 = vst [vmem:[%s3452_s3 + $0x438] sm:$0xff] %v1500_v17 }
 0x1e2   :  { %1746 = vst [vmem:[%s3452_s3 + $0x5c8] sm:$0xff] %v1550_v18  ;;  %v1405_v23 = vmax.f32 %v976_v21, 0.0  ;;  %v1453_v24 = vmax.f32 %v1096_v22, 0.0 }
 0x1e4   :  { %v1215_v25 = vpop.f32.mrf.mxu2  ;;  %v1340_v26 = vpop.f32.mrf.mxu3  ;;  %1601 = vst [vmem:[%s3452_s3 + $0x140] sm:$0xff] %v1405_v23 }
 0x1e5   :  { %v1216_v27 = vadd.f32 %v3026_v42, %v1215_v25  ;;  %v1341_v28 = vadd.f32 %v3026_v42, %v1340_v26  ;;  %1649 = vst [vmem:[%s3452_s3 + $0x2c0] sm:$0xff] %v1453_v24 }
 0x1e7   :  { %v1501_v29 = vmax.f32 %v1216_v27, 0.0  ;;  %v1551_v30 = vmax.f32 %v1341_v28, 0.0  ;;  %v977_v31 = vpop.f32.mrf.mxu0  ;;  %v1097_v32 = vpop.f32.mrf.mxu1 }
 0x1e8   :  { %v978_v33 = vadd.f32 %v3026_v42, %v977_v31  ;;  %v1098_v34 = vadd.f32 %v3026_v42, %v1097_v32 }
 0x1e9   :  { %1697 = vst [vmem:[%s3452_s3 + $0x440] sm:$0xff] %v1501_v29 }
 0x1ea   :  { %1747 = vst [vmem:[%s3452_s3 + $0x5d0] sm:$0xff] %v1551_v30  ;;  %v1406_v35 = vmax.f32 %v978_v33, 0.0  ;;  %v1454_v36 = vmax.f32 %v1098_v34, 0.0 }
 0x1ec   :  { %v1217_v37 = vpop.f32.mrf.mxu2  ;;  %v1342_v38 = vpop.f32.mrf.mxu3  ;;  %1602 = vst [vmem:[%s3452_s3 + $0x148] sm:$0xff] %v1406_v35 }
 0x1ed   :  { %v1218_v39 = vadd.f32 %v3026_v42, %v1217_v37  ;;  %v1343_v40 = vadd.f32 %v3026_v42, %v1342_v38  ;;  %1650 = vst [vmem:[%s3452_s3 + $0x2c8] sm:$0xff] %v1454_v36 }
 0x1ef   :  { %v1502_v41 = vmax.f32 %v1218_v39, 0.0  ;;  %v1552_v43 = vmax.f32 %v1343_v40, 0.0  ;;  %v980_v44 = vpop.f32.mrf.mxu0  ;;  %v1100_v45 = vpop.f32.mrf.mxu1 }
 0x1f0   :  { %v981_v46 = vadd.f32 %v3026_v42, %v980_v44  ;;  %v1101_v47 = vadd.f32 %v3026_v42, %v1100_v45 }
 0x1f1   :  { %1698 = vst [vmem:[%s3452_s3 + $0x448] sm:$0xff] %v1502_v41 }
 0x1f2   :  { %1748 = vst [vmem:[%s3452_s3 + $0x5d8] sm:$0xff] %v1552_v43  ;;  %v1407_v48 = vmax.f32 %v981_v46, 0.0  ;;  %v1455_v49 = vmax.f32 %v1101_v47, 0.0 }
 0x1f4   :  { %v1220_v50 = vpop.f32.mrf.mxu2  ;;  %v1345_v51 = vpop.f32.mrf.mxu3  ;;  %1603 = vst [vmem:[%s3452_s3 + $0x150] sm:$0xff] %v1407_v48 }
 0x1f5   :  { %v1221_v52 = vadd.f32 %v3026_v42, %v1220_v50  ;;  %v1346_v53 = vadd.f32 %v3026_v42, %v1345_v51  ;;  %1651 = vst [vmem:[%s3452_s3 + $0x2d0] sm:$0xff] %v1455_v49 }
 0x1f7   :  { %v1503_v54 = vmax.f32 %v1221_v52, 0.0  ;;  %v1553_v55 = vmax.f32 %v1346_v53, 0.0  ;;  %v982_v56 = vpop.f32.mrf.mxu0  ;;  %v1102_v57 = vpop.f32.mrf.mxu1 }
 0x1f8   :  { %v983_v58 = vadd.f32 %v3026_v42, %v982_v56  ;;  %v1103_v59 = vadd.f32 %v3026_v42, %v1102_v57 }
 0x1f9   :  { %1699 = vst [vmem:[%s3452_s3 + $0x450] sm:$0xff] %v1503_v54 }
 0x1fa   :  { %1749 = vst [vmem:[%s3452_s3 + $0x5e0] sm:$0xff] %v1553_v55  ;;  %v1408_v60 = vmax.f32 %v983_v58, 0.0  ;;  %v1456_v61 = vmax.f32 %v1103_v59, 0.0 }
 0x1fc   :  { %v1222_v62 = vpop.f32.mrf.mxu2  ;;  %v1347_v63 = vpop.f32.mrf.mxu3  ;;  %1604 = vst [vmem:[%s3452_s3 + $0x158] sm:$0xff] %v1408_v60 }
 0x1fd   :  { %v1223_v0 = vadd.f32 %v3026_v42, %v1222_v62  ;;  %v1348_v1 = vadd.f32 %v3026_v42, %v1347_v63  ;;  %1652 = vst [vmem:[%s3452_s3 + $0x2d8] sm:$0xff] %v1456_v61 }
 0x1ff   :  { %v1504_v2 = vmax.f32 %v1223_v0, 0.0  ;;  %v1554_v3 = vmax.f32 %v1348_v1, 0.0  ;;  %v985_v4 = vpop.f32.mrf.mxu0  ;;  %v1105_v5 = vpop.f32.mrf.mxu1 }
 0x200   :  { %v986_v6 = vadd.f32 %v3026_v42, %v985_v4  ;;  %v1106_v7 = vadd.f32 %v3026_v42, %v1105_v5 }
 0x201   :  { %1700 = vst [vmem:[%s3452_s3 + $0x458] sm:$0xff] %v1504_v2 }
 0x202   :  { %1750 = vst [vmem:[%s3452_s3 + $0x5e8] sm:$0xff] %v1554_v3  ;;  %v1409_v8 = vmax.f32 %v986_v6, 0.0  ;;  %v1457_v9 = vmax.f32 %v1106_v7, 0.0 }
 0x204   :  { %v1225_v10 = vpop.f32.mrf.mxu2  ;;  %v1350_v11 = vpop.f32.mrf.mxu3  ;;  %1605 = vst [vmem:[%s3452_s3 + $0x160] sm:$0xff] %v1409_v8 }
 0x205   :  { %v1226_v12 = vadd.f32 %v3026_v42, %v1225_v10  ;;  %v1351_v13 = vadd.f32 %v3026_v42, %v1350_v11  ;;  %1653 = vst [vmem:[%s3452_s3 + $0x2e0] sm:$0xff] %v1457_v9 }
 0x207   :  { %v1505_v14 = vmax.f32 %v1226_v12, 0.0  ;;  %v1555_v15 = vmax.f32 %v1351_v13, 0.0  ;;  %v987_v16 = vpop.f32.mrf.mxu0  ;;  %v1107_v17 = vpop.f32.mrf.mxu1 }
 0x208   :  { %v988_v18 = vadd.f32 %v3026_v42, %v987_v16  ;;  %v1108_v19 = vadd.f32 %v3026_v42, %v1107_v17 }
 0x209   :  { %1701 = vst [vmem:[%s3452_s3 + $0x460] sm:$0xff] %v1505_v14 }
 0x20a   :  { %1751 = vst [vmem:[%s3452_s3 + $0x5f0] sm:$0xff] %v1555_v15  ;;  %v1410_v20 = vmax.f32 %v988_v18, 0.0  ;;  %v1458_v21 = vmax.f32 %v1108_v19, 0.0 }
 0x20c   :  { %v1227_v22 = vpop.f32.mrf.mxu2  ;;  %v1352_v23 = vpop.f32.mrf.mxu3  ;;  %1606 = vst [vmem:[%s3452_s3 + $0x168] sm:$0xff] %v1410_v20 }
 0x20d   :  { %v1228_v24 = vadd.f32 %v3026_v42, %v1227_v22  ;;  %v1353_v25 = vadd.f32 %v3026_v42, %v1352_v23  ;;  %1654 = vst [vmem:[%s3452_s3 + $0x2e8] sm:$0xff] %v1458_v21 }
 0x20f   :  { %v1506_v26 = vmax.f32 %v1228_v24, 0.0  ;;  %v1556_v27 = vmax.f32 %v1353_v25, 0.0  ;;  %v990_v28 = vpop.f32.mrf.mxu0  ;;  %v1110_v29 = vpop.f32.mrf.mxu1 }
 0x210   :  { %v991_v30 = vadd.f32 %v3026_v42, %v990_v28  ;;  %v1111_v31 = vadd.f32 %v3026_v42, %v1110_v29 }
 0x211   :  { %1702 = vst [vmem:[%s3452_s3 + $0x468] sm:$0xff] %v1506_v26 }
 0x212   :  { %1752 = vst [vmem:[%s3452_s3 + $0x5f8] sm:$0xff] %v1556_v27  ;;  %v1411_v32 = vmax.f32 %v991_v30, 0.0  ;;  %v1459_v33 = vmax.f32 %v1111_v31, 0.0 }
 0x214   :  { %v1230_v34 = vpop.f32.mrf.mxu2  ;;  %v1355_v35 = vpop.f32.mrf.mxu3  ;;  %1607 = vst [vmem:[%s3452_s3 + $0x170] sm:$0xff] %v1411_v32 }
 0x215   :  { %v1231_v36 = vadd.f32 %v3026_v42, %v1230_v34  ;;  %v1356_v37 = vadd.f32 %v3026_v42, %v1355_v35  ;;  %1655 = vst [vmem:[%s3452_s3 + $0x2f0] sm:$0xff] %v1459_v33 }
 0x217   :  { %v1507_v38 = vmax.f32 %v1231_v36, 0.0  ;;  %v1557_v39 = vmax.f32 %v1356_v37, 0.0  ;;  %v992_v40 = vpop.f32.mrf.mxu0  ;;  %v1112_v41 = vpop.f32.mrf.mxu1 }
 0x218   :  { %v993_v43 = vadd.f32 %v3026_v42, %v992_v40  ;;  %v1113_v44 = vadd.f32 %v3026_v42, %v1112_v41 }
 0x219   :  { %1703 = vst [vmem:[%s3452_s3 + $0x470] sm:$0xff] %v1507_v38 }
 0x21a   :  { %1753 = vst [vmem:[%s3452_s3 + $0x600] sm:$0xff] %v1557_v39  ;;  %v1412_v45 = vmax.f32 %v993_v43, 0.0  ;;  %v1460_v46 = vmax.f32 %v1113_v44, 0.0 }
 0x21c   :  { %v1232_v47 = vpop.f32.mrf.mxu2  ;;  %v1357_v48 = vpop.f32.mrf.mxu3  ;;  %1608 = vst [vmem:[%s3452_s3 + $0x178] sm:$0xff] %v1412_v45 }
 0x21d   :  { %v1233_v49 = vadd.f32 %v3026_v42, %v1232_v47  ;;  %v1358_v50 = vadd.f32 %v3026_v42, %v1357_v48  ;;  %1656 = vst [vmem:[%s3452_s3 + $0x2f8] sm:$0xff] %v1460_v46 }
 0x21f   :  { %v1508_v51 = vmax.f32 %v1233_v49, 0.0  ;;  %v1558_v52 = vmax.f32 %v1358_v50, 0.0 }
 0x221   :  { %1704 = vst [vmem:[%s3452_s3 + $0x478] sm:$0xff] %v1508_v51 }
 0x222   :  { %1754 = vst [vmem:[%s3452_s3 + $0x608] sm:$0xff] %v1558_v52 }
 0x224   :  { %v1235_v53 = vpop.f32.mrf.mxu2  ;;  %v1360_v54 = vpop.f32.mrf.mxu3 }
 0x225   :  { %v1236_v55 = vadd.f32 %v3026_v42, %v1235_v53  ;;  %v1361_v56 = vadd.f32 %v3026_v42, %v1360_v54 }
 0x227   :  { %v1509_v57 = vmax.f32 %v1236_v55, 0.0  ;;  %v1559_v58 = vmax.f32 %v1361_v56, 0.0 }
 0x229   :  { %1705 = vst [vmem:[%s3452_s3 + $0x480] sm:$0xff] %v1509_v57 }
 0x22a   :  { %1755 = vst [vmem:[%s3452_s3 + $0x610] sm:$0xff] %v1559_v58 }
 0x22c   :  { %v1237_v59 = vpop.f32.mrf.mxu2  ;;  %v1362_v60 = vpop.f32.mrf.mxu3 }
 0x22d   :  { %v1238_v61 = vadd.f32 %v3026_v42, %v1237_v59  ;;  %v1363_v62 = vadd.f32 %v3026_v42, %v1362_v60 }
 0x22f   :  { %v1510_v63 = vmax.f32 %v1238_v61, 0.0  ;;  %v1560_v0 = vmax.f32 %v1363_v62, 0.0 }
 0x231   :  { %1706 = vst [vmem:[%s3452_s3 + $0x488] sm:$0xff] %v1510_v63 }
 0x232   :  { %1756 = vst [vmem:[%s3452_s3 + $0x618] sm:$0xff] %v1560_v0 }

// kernel: cnn_forward.5
= control target key start
LH: loop header
LB: loop body
LE: loop exit
PB: predicated region body
PF: predicated region fallthrough
CT: control target
= control target key end

     0   :  { %s2549_s1 = inlined_call_operand.vmem [shape: bf16[384,128], index: 1, kind: input, shape index: {}]   ;;  %s2550_s2 = inlined_call_operand.vmem [shape: f32[1,128], index: 2, kind: input, shape index: {}]   ;;  %s2551_s0 = inlined_call_operand.vmem [shape: bf16[392,384], index: 0, kind: input, shape index: {}]   ;;  %s2552_s3 = inlined_call_operand.vmem [shape: f32[392,128], index: 3, kind: output, shape index: {}]  }
   0x1   :  { %v1667_v0 = vld [vmem:[%s2549_s1 + $0x38] sm:$0xff]  ;;  %v1666_v3 = vld [vmem:[%s2549_s1 + $0x30] sm:$0xff]  ;;  %v1665_v6 = vld [vmem:[%s2549_s1 + $0x28] sm:$0xff] }
   0x2   :  { %v1736_v1 = vld [vmem:[%s2549_s1 + $0x78] sm:$0xff]  ;;  %703 = vmatpush.bf16.msra.mxu0 %v1667_v0  ;;  %1684 = vmatpush.bf16.msra.mxu3 %v1667_v0  ;;  %v1751_v4 = vld [vmem:[%s2549_s1 + $0x70] sm:$0xff]  ;;  %v1673_v7 = vld [vmem:[%s2549_s1 + $0x68] sm:$0xff] }
   0x3   :  { %v1741_v2 = vld [vmem:[%s2549_s1 + $0xb8] sm:$0xff]  ;;  %836 = vmatpush.bf16.msra.mxu1 %v1736_v1  ;;  %v1756_v5 = vld [vmem:[%s2549_s1 + $0xb0] sm:$0xff]  ;;  %v1769_v8 = vld [vmem:[%s2549_s1 + $0xa8] sm:$0xff] }
   0x4   :  { %969 = vmatpush.bf16.msra.mxu2 %v1741_v2  ;;  %v1664_v9 = vld [vmem:[%s2549_s1 + $0x20] sm:$0xff]  ;;  %v1663_v12 = vld [vmem:[%s2549_s1 + $0x18] sm:$0xff]  ;;  %v1662_v15 = vld [vmem:[%s2549_s1 + $0x10] sm:$0xff] }
   0x5   :  { %v1672_v10 = vld [vmem:[%s2549_s1 + $0x60] sm:$0xff]  ;;  %v1671_v13 = vld [vmem:[%s2549_s1 + $0x58] sm:$0xff]  ;;  %v1670_v16 = vld [vmem:[%s2549_s1 + $0x50] sm:$0xff] }
   0x6   :  { %704 = vmatpush.bf16.msra.mxu0 %v1666_v3  ;;  %1685 = vmatpush.bf16.msra.mxu3 %v1666_v3  ;;  %v1781_v11 = vld [vmem:[%s2549_s1 + $0xa0] sm:$0xff]  ;;  %v1793_v14 = vld [vmem:[%s2549_s1 + $0x98] sm:$0xff]  ;;  %v1805_v17 = vld [vmem:[%s2549_s1 + $0x90] sm:$0xff] }
   0x7   :  { %837 = vmatpush.bf16.msra.mxu1 %v1751_v4  ;;  %v1661_v18 = vld [vmem:[%s2549_s1 + $0x8] sm:$0xff]  ;;  %v1660_v21 = vld [vmem:[%s2549_s1] sm:$0xff]  ;;  %v1646_v27 = vld [vmem:[%s2551_s0 + $0x1d0] sm:$0xf0] }
   0x8   :  { %970 = vmatpush.bf16.msra.mxu2 %v1756_v5  ;;  %v1669_v19 = vld [vmem:[%s2549_s1 + $0x48] sm:$0xff]  ;;  %v1668_v22 = vld [vmem:[%s2549_s1 + $0x40] sm:$0xff]  ;;  %v1208_v29 = vld [vmem:[%s2551_s0 + $0xc] sm:$0xf0] }
   0x9   :  { %v1817_v20 = vld [vmem:[%s2549_s1 + $0x88] sm:$0xff]  ;;  %v1828_v23 = vld [vmem:[%s2549_s1 + $0x80] sm:$0xff]  ;;  %v1590_v31 = vld [vmem:[%s2551_s0 + $0x10] sm:$0xf0] }
   0xa   :  { %705 = vmatpush.bf16.msra.mxu0 %v1665_v6  ;;  %1686 = vmatpush.bf16.msra.mxu3 %v1665_v6  ;;  %v1206_v24 = vld [vmem:[%s2551_s0] sm:$0xf]  ;;  %v1589_v25 = vld [vmem:[%s2551_s0 + $0x8] sm:$0xf0]  ;;  %v1434_v26 = vld [vmem:[%s2551_s0 + $0x1c8] sm:$0xf] }
   0xb   :  { %838 = vmatpush.bf16.msra.mxu1 %v1673_v7  ;;  %v1588_v28 = vld [vmem:[%s2551_s0 + $0x4] sm:$0xf]  ;;  %v1214_v30 = vld [vmem:[%s2551_s0 + $0x8] sm:$0xf]  ;;  %v1207_v32 = vor.u32 %v1589_v25, %v1206_v24  ;;  %v1435_v33 = vor.u32 %v1646_v27, %v1434_v26  ;;  %v1218_v36 = vld [vmem:[%s2551_s0 + $0x18] sm:$0xf] }
   0xc   :  { %971 = vmatpush.bf16.msra.mxu2 %v1769_v8  ;;  %v1211_v34 = vor.u32 %v1588_v28, %v1208_v29  ;;  %v1215_v35 = vor.u32 %v1590_v31, %v1214_v30  ;;  %v1592_v37 = vld [vmem:[%s2551_s0 + $0x20] sm:$0xf0]  ;;  %v1446_v38 = vld [vmem:[%s2551_s0 + $0x1e0] sm:$0xf]  ;;  %v1649_v39 = vld [vmem:[%s2551_s0 + $0x1e8] sm:$0xf0] }
   0xd   :  { %v1591_v40 = vld [vmem:[%s2551_s0 + $0x1c] sm:$0xf]  ;;  %v1220_v41 = vld [vmem:[%s2551_s0 + $0x24] sm:$0xf0]  ;;  %v1226_v42 = vld [vmem:[%s2551_s0 + $0x20] sm:$0xf]  ;;  %v1219_v44 = vor.u32 %v1592_v37, %v1218_v36  ;;  %v1447_v45 = vor.u32 %v1649_v39, %v1446_v38 }
   0xe   :  { %706 = vmatpush.bf16.msra.mxu0 %v1664_v9  ;;  %1687 = vmatpush.bf16.msra.mxu3 %v1664_v9  ;;  %v1593_v43 = vld [vmem:[%s2551_s0 + $0x28] sm:$0xf0]  ;;  %v1223_v46 = vor.u32 %v1591_v40, %v1220_v41  ;;  %v1230_v48 = vld [vmem:[%s2551_s0 + $0x30] sm:$0xf]  ;;  %v1595_v49 = vld [vmem:[%s2551_s0 + $0x38] sm:$0xf0] }
   0xf   :  { %839 = vmatpush.bf16.msra.mxu1 %v1672_v10  ;;  %v1227_v47 = vor.u32 %v1593_v43, %v1226_v42  ;;  %v1458_v50 = vld [vmem:[%s2551_s0 + $0x1f8] sm:$0xf]  ;;  %v1652_v51 = vld [vmem:[%s2551_s0 + $0x200] sm:$0xf0]  ;;  %v1594_v52 = vld [vmem:[%s2551_s0 + $0x34] sm:$0xf]  ;;  %v1231_v56 = vor.u32 %v1595_v49, %v1230_v48 }
  0x10   :  { %972 = vmatpush.bf16.msra.mxu2 %v1781_v11  ;;  %v1232_v53 = vld [vmem:[%s2551_s0 + $0x3c] sm:$0xf0]  ;;  %v1238_v54 = vld [vmem:[%s2551_s0 + $0x38] sm:$0xf]  ;;  %v1596_v55 = vld [vmem:[%s2551_s0 + $0x40] sm:$0xf0]  ;;  %v1459_v57 = vor.u32 %v1652_v51, %v1458_v50 }
  0x11   :  { %v1235_v58 = vor.u32 %v1594_v52, %v1232_v53  ;;  %v1239_v59 = vor.u32 %v1596_v55, %v1238_v54  ;;  %v1242_v60 = vld [vmem:[%s2551_s0 + $0x48] sm:$0xf]  ;;  %v1598_v61 = vld [vmem:[%s2551_s0 + $0x50] sm:$0xf0]  ;;  %v1470_v62 = vld [vmem:[%s2551_s0 + $0x210] sm:$0xf] }
  0x12   :  { %707 = vmatpush.bf16.msra.mxu0 %v1663_v12  ;;  %1688 = vmatpush.bf16.msra.mxu3 %v1663_v12  ;;  %v1655_v63 = vld [vmem:[%s2551_s0 + $0x218] sm:$0xf0]  ;;  %v1597_v0 = vld [vmem:[%s2551_s0 + $0x4c] sm:$0xf]  ;;  %v1600_v12 = vld [vmem:[%s2551_s0 + $0x64] sm:$0xf] }
  0x13   :  { %840 = vmatpush.bf16.msra.mxu1 %v1671_v13  ;;  %v1599_v3 = vld [vmem:[%s2551_s0 + $0x58] sm:$0xf0]  ;;  %v1601_v9 = vld [vmem:[%s2551_s0 + $0x68] sm:$0xf0]  ;;  %v1268_v25 = vld [vmem:[%s2551_s0 + $0x84] sm:$0xf0] }
  0x14   :  { %973 = vmatpush.bf16.msra.mxu2 %v1793_v14  ;;  %v1603_v24 = vld [vmem:[%s2551_s0 + $0x7c] sm:$0xf]  ;;  %v1274_v26 = vld [vmem:[%s2551_s0 + $0x80] sm:$0xf]  ;;  %v1605_v27 = vld [vmem:[%s2551_s0 + $0x88] sm:$0xf0] }
  0x15   :  { %v1271_v30 = vor.u32 %v1603_v24, %v1268_v25  ;;  %v1275_v31 = vor.u32 %v1605_v27, %v1274_v26  ;;  %v1436_v36 = vld [vmem:[%s2551_s0 + $0x1d4] sm:$0xf0]  ;;  %v1280_v37 = vld [vmem:[%s2551_s0 + $0x9c] sm:$0xf0]  ;;  %v1608_v39 = vld [vmem:[%s2551_s0 + $0xa0] sm:$0xf0] }
  0x16   :  { %708 = vmatpush.bf16.msra.mxu0 %v1662_v15  ;;  %1689 = vmatpush.bf16.msra.mxu3 %v1662_v15  ;;  %v1602_v15 = vld [vmem:[%s2551_s0 + $0x70] sm:$0xf0]  ;;  %v1286_v38 = vld [vmem:[%s2551_s0 + $0x98] sm:$0xf]  ;;  %v1448_v48 = vld [vmem:[%s2551_s0 + $0x1ec] sm:$0xf0] }
  0x17   :  { %841 = vmatpush.bf16.msra.mxu1 %v1670_v16  ;;  %v1287_v43 = vor.u32 %v1608_v39, %v1286_v38  ;;  %v1292_v49 = vld [vmem:[%s2551_s0 + $0xb4] sm:$0xf0]  ;;  %v1298_v50 = vld [vmem:[%s2551_s0 + $0xb0] sm:$0xf]  ;;  %v1611_v51 = vld [vmem:[%s2551_s0 + $0xb8] sm:$0xf0] }
  0x18   :  { %974 = vmatpush.bf16.msra.mxu2 %v1805_v17  ;;  %v1299_v55 = vor.u32 %v1611_v51, %v1298_v50  ;;  %v1617_v24 = vld [vmem:[%s2551_s0 + $0xe8] sm:$0xf0]  ;;  %v1328_v50 = vld [vmem:[%s2551_s0 + $0xfc] sm:$0xf0]  ;;  %v1334_v51 = vld [vmem:[%s2551_s0 + $0xf8] sm:$0xf] }
  0x1a   :  { %709 = vmatpush.bf16.msra.mxu0 %v1661_v18  ;;  %1690 = vmatpush.bf16.msra.mxu3 %v1661_v18 }
  0x1b   :  { %842 = vmatpush.bf16.msra.mxu1 %v1669_v19 }
  0x1c   :  { %975 = vmatpush.bf16.msra.mxu2 %v1817_v20 }
  0x1e   :  { %710 = vmatpush.bf16.msra.mxu0 %v1660_v21  ;;  %1691 = vmatpush.bf16.msra.mxu3 %v1660_v21 }
  0x1f   :  { %843 = vmatpush.bf16.msra.mxu1 %v1668_v22 }
  0x20   :  { %976 = vmatpush.bf16.msra.mxu2 %v1828_v23 }
  0x21   :  { %711 = vmatmul.bf16.vlgmr.msra.gmra.mxu0 %v1207_v32  ;;  %806 = vmatmul.bf16.vlgmr.msra.gmra.mxu3 %v1435_v33  ;;  %v1278_v32 = vld [vmem:[%s2551_s0 + $0x90] sm:$0xf]  ;;  %v1607_v33 = vld [vmem:[%s2551_s0 + $0x98] sm:$0xf0] }
  0x22   :  { %1692 = vmatpush.bf16.msrb.mxu3 %v1736_v1  ;;  %844 = vmatmul.bf16.vlgmr.msra.gmra.mxu1 %v1211_v34  ;;  %v1244_v1 = vld [vmem:[%s2551_s0 + $0x54] sm:$0xf0]  ;;  %v1606_v34 = vld [vmem:[%s2551_s0 + $0x94] sm:$0xf]  ;;  %v1279_v40 = vor.u32 %v1607_v33, %v1278_v32 }
  0x23   :  { %977 = vmatmul.bf16.vlgmr.msra.gmra.mxu2 %v1215_v35  ;;  %v1247_v6 = vor.u32 %v1597_v0, %v1244_v1  ;;  %v1645_v35 = vld [vmem:[%s2551_s0 + $0x1cc] sm:$0xf]  ;;  %v1283_v42 = vor.u32 %v1606_v34, %v1280_v37  ;;  %v1614_v0 = vld [vmem:[%s2551_s0 + $0xd0] sm:$0xf0] }
  0x24   :  { %v1439_v41 = vor.u32 %v1645_v35, %v1436_v36 }
  0x26   :  { %1693 = vmatpush.bf16.msrb.mxu3 %v1751_v4  ;;  %v1243_v4 = vor.u32 %v1598_v61, %v1242_v60  ;;  %v1651_v60 = vld [vmem:[%s2551_s0 + $0x1fc] sm:$0xf]  ;;  %v1460_v61 = vld [vmem:[%s2551_s0 + $0x204] sm:$0xf0] }
  0x2a   :  { %1694 = vmatpush.bf16.msrb.mxu3 %v1673_v7 }
  0x2e   :  { %1695 = vmatpush.bf16.msrb.mxu3 %v1672_v10  ;;  %v1482_v10 = vld [vmem:[%s2551_s0 + $0x228] sm:$0xf] }
  0x31   :  { %716 = vmatmul.bf16.gmra.mxu0 %v1219_v44  ;;  %811 = vmatmul.bf16.gmra.mxu3 %v1447_v45  ;;  %v1290_v44 = vld [vmem:[%s2551_s0 + $0xa8] sm:$0xf]  ;;  %v1610_v45 = vld [vmem:[%s2551_s0 + $0xb0] sm:$0xf0] }
  0x32   :  { %1696 = vmatpush.bf16.msrb.mxu3 %v1671_v13  ;;  %849 = vmatmul.bf16.gmra.mxu1 %v1223_v46  ;;  %v1256_v13 = vld [vmem:[%s2551_s0 + $0x6c] sm:$0xf0]  ;;  %v1609_v46 = vld [vmem:[%s2551_s0 + $0xac] sm:$0xf]  ;;  %v1291_v52 = vor.u32 %v1610_v45, %v1290_v44 }
  0x33   :  { %982 = vmatmul.bf16.gmra.mxu2 %v1227_v47  ;;  %v1259_v18 = vor.u32 %v1600_v12, %v1256_v13  ;;  %v1648_v47 = vld [vmem:[%s2551_s0 + $0x1e4] sm:$0xf]  ;;  %v1295_v54 = vor.u32 %v1609_v46, %v1292_v49  ;;  %v1326_v45 = vld [vmem:[%s2551_s0 + $0xf0] sm:$0xf]  ;;  %v1619_v46 = vld [vmem:[%s2551_s0 + $0xf8] sm:$0xf0] }
  0x34   :  { %v1451_v53 = vor.u32 %v1648_v47, %v1448_v48  ;;  %v1618_v47 = vld [vmem:[%s2551_s0 + $0xf4] sm:$0xf]  ;;  %v1657_v48 = vld [vmem:[%s2551_s0 + $0x22c] sm:$0xf]  ;;  %v1484_v49 = vld [vmem:[%s2551_s0 + $0x234] sm:$0xf0] }
  0x36   :  { %1697 = vmatpush.bf16.msrb.mxu3 %v1670_v16 }
  0x3a   :  { %1698 = vmatpush.bf16.msrb.mxu3 %v1669_v19 }
  0x3e   :  { %1699 = vmatpush.bf16.msrb.mxu3 %v1668_v22  ;;  %v1266_v22 = vld [vmem:[%s2551_s0 + $0x78] sm:$0xf] }
  0x41   :  { %721 = vmatmul.bf16.gmra.mxu0 %v1231_v56  ;;  %816 = vmatmul.bf16.gmra.mxu3 %v1459_v57  ;;  %v2037_v56 = vld [vmem:[%s2550_s2] ss:$0 sm:$0xff] }
  0x42   :  { %1700 = vmatpush.bf16.msra.mxu3 %v1741_v2  ;;  %854 = vmatmul.bf16.gmra.mxu1 %v1235_v58  ;;  %v1250_v2 = vld [vmem:[%s2551_s0 + $0x50] sm:$0xf]  ;;  %v1302_v57 = vld [vmem:[%s2551_s0 + $0xc0] sm:$0xf]  ;;  %v1613_v58 = vld [vmem:[%s2551_s0 + $0xc8] sm:$0xf0] }
  0x43   :  { %987 = vmatmul.bf16.gmra.mxu2 %v1239_v59  ;;  %v1251_v7 = vor.u32 %v1599_v3, %v1250_v2  ;;  %v1612_v59 = vld [vmem:[%s2551_s0 + $0xc4] sm:$0xf]  ;;  %v1303_v1 = vor.u32 %v1613_v58, %v1302_v57  ;;  %v1463_v2 = vor.u32 %v1651_v60, %v1460_v61  ;;  %v1327_v57 = vor.u32 %v1619_v46, %v1326_v45  ;;  %v1352_v45 = vld [vmem:[%s2551_s0 + $0x12c] sm:$0xf0]  ;;  %v1358_v46 = vld [vmem:[%s2551_s0 + $0x128] sm:$0xf] }
  0x44   :  { %v1487_v58 = vor.u32 %v1657_v48, %v1484_v49  ;;  %v1331_v61 = vor.u32 %v1618_v47, %v1328_v50  ;;  %v1626_v47 = vld [vmem:[%s2551_s0 + $0x130] sm:$0xf0] }
  0x46   :  { %1701 = vmatpush.bf16.msra.mxu3 %v1756_v5  ;;  %v1471_v5 = vor.u32 %v1655_v63, %v1470_v62  ;;  %v1304_v62 = vld [vmem:[%s2551_s0 + $0xcc] sm:$0xf0]  ;;  %v1310_v63 = vld [vmem:[%s2551_s0 + $0xc8] sm:$0xf] }
  0x4a   :  { %1702 = vmatpush.bf16.msra.mxu3 %v1769_v8  ;;  %v1254_v8 = vld [vmem:[%s2551_s0 + $0x60] sm:$0xf] }
  0x4b   :  { %v1255_v16 = vor.u32 %v1601_v9, %v1254_v8 }
  0x4e   :  { %1703 = vmatpush.bf16.msra.mxu3 %v1781_v11  ;;  %v1658_v11 = vld [vmem:[%s2551_s0 + $0x230] sm:$0xf0] }
  0x51   :  { %726 = vmatmul.bf16.gmra.mxu0 %v1243_v4  ;;  %821 = vmatmul.bf16.gmra.mxu3 %v1471_v5  ;;  %v1307_v4 = vor.u32 %v1612_v59, %v1304_v62  ;;  %v1311_v5 = vor.u32 %v1614_v0, %v1310_v63 }
  0x52   :  { %1704 = vmatpush.bf16.msra.mxu3 %v1793_v14  ;;  %859 = vmatmul.bf16.gmra.mxu1 %v1247_v6  ;;  %v1262_v14 = vld [vmem:[%s2551_s0 + $0x68] sm:$0xf] }
  0x53   :  { %992 = vmatmul.bf16.gmra.mxu2 %v1251_v7  ;;  %v1263_v19 = vor.u32 %v1602_v15, %v1262_v14 }
  0x56   :  { %1705 = vmatpush.bf16.msra.mxu3 %v1805_v17  ;;  %v1483_v17 = vor.u32 %v1658_v11, %v1482_v10 }
  0x5a   :  { %1706 = vmatpush.bf16.msra.mxu3 %v1817_v20  ;;  %v1965_v20 = vld [vmem:[%s2551_s0 + $0x240] sm:$0xff] }
  0x5b   :  { %v406_v21 = vunpack.c.l.b16 %v1965_v20 }
  0x5d   :  { %v481_v29 = vpack.c.b16 %v406_v21, %v406_v21  ;;  %v1472_v21 = vld [vmem:[%s2551_s0 + $0x21c] sm:$0xf0] }
  0x5e   :  { %1707 = vmatpush.bf16.msra.mxu3 %v1828_v23  ;;  %v1604_v23 = vld [vmem:[%s2551_s0 + $0x80] sm:$0xf0] }
  0x5f   :  { %v1267_v28 = vor.u32 %v1604_v23, %v1266_v22  ;;  %v1316_v22 = vld [vmem:[%s2551_s0 + $0xe4] sm:$0xf0]  ;;  %v1322_v23 = vld [vmem:[%s2551_s0 + $0xe0] sm:$0xf] }
  0x60   :  { %v1323_v33 = vor.u32 %v1617_v24, %v1322_v23 }
  0x61   :  { %731 = vmatmul.bf16.gmra.mxu0 %v1255_v16  ;;  %826 = vmatmul.bf16.gmra.mxu3 %v1483_v17  ;;  %v1314_v16 = vld [vmem:[%s2551_s0 + $0xd8] sm:$0xf]  ;;  %v1616_v17 = vld [vmem:[%s2551_s0 + $0xe0] sm:$0xf0] }
  0x62   :  { %864 = vmatmul.bf16.gmra.mxu1 %v1259_v18  ;;  %v1615_v18 = vld [vmem:[%s2551_s0 + $0xdc] sm:$0xf] }
  0x63   :  { %997 = vmatmul.bf16.gmra.mxu2 %v1263_v19  ;;  %v1654_v19 = vld [vmem:[%s2551_s0 + $0x214] sm:$0xf]  ;;  %v1319_v32 = vor.u32 %v1615_v18, %v1316_v22 }
  0x71   :  { %736 = vmatmul.bf16.gmra.mxu0 %v1267_v28  ;;  %831 = vmatmul.bf16.gmra.mxu3 %v481_v29  ;;  %v1315_v28 = vor.u32 %v1616_v17, %v1314_v16  ;;  %v1475_v29 = vor.u32 %v1654_v19, %v1472_v21  ;;  %v1623_v16 = vld [vmem:[%s2551_s0 + $0x118] sm:$0xf0] }
  0x72   :  { %869 = vmatmul.bf16.gmra.mxu1 %v1271_v30 }
  0x73   :  { %1002 = vmatmul.bf16.gmra.mxu2 %v1275_v31 }
  0x81   :  { %741 = vmatmul.bf16.gmra.mxu0 %v1279_v40  ;;  %939 = vmatmul.bf16.vlgmr.msrb.gmra.mxu3 %v1439_v41 }
  0x82   :  { %874 = vmatmul.bf16.gmra.mxu1 %v1283_v42 }
  0x83   :  { %1007 = vmatmul.bf16.gmra.mxu2 %v1287_v43 }
  0x91   :  { %746 = vmatmul.bf16.gmra.mxu0 %v1291_v52  ;;  %944 = vmatmul.bf16.gmra.mxu3 %v1451_v53  ;;  %v1620_v52 = vld [vmem:[%s2551_s0 + $0x100] sm:$0xf0] }
  0x92   :  { %879 = vmatmul.bf16.gmra.mxu1 %v1295_v54  ;;  %v1335_v62 = vor.u32 %v1620_v52, %v1334_v51 }
  0x93   :  { %1012 = vmatmul.bf16.gmra.mxu2 %v1299_v55 }
  0x9e   :  { %v712_v3 = vpop.f32.mrf.mxu0 }
  0x9f   :  { %v713_v6 = vadd.f32 %v2037_v56, %v712_v3  ;;  %v845_v7 = vpop.f32.mrf.mxu1 }
  0xa1   :  { %751 = vmatmul.bf16.gmra.mxu0 %v1303_v1  ;;  %949 = vmatmul.bf16.gmra.mxu3 %v1463_v2  ;;  %v846_v8 = vadd.f32 %v845_v7, %v713_v6 }
  0xa2   :  { %884 = vmatmul.bf16.gmra.mxu1 %v1307_v4 }
  0xa3   :  { %1017 = vmatmul.bf16.gmra.mxu2 %v1311_v5 }
  0xa4   :  { %v2064_v9 = vpop.f32.mrf.mxu3 }
  0xa6   :  { %v978_v10 = vpop.f32.mrf.mxu2  ;;  %v714_v12 = vpop.f32.mrf.mxu0 }
  0xa7   :  { %v979_v11 = vadd.f32 %v978_v10, %v846_v8  ;;  %v847_v13 = vpop.f32.mrf.mxu1  ;;  %v715_v15 = vadd.f32 %v2037_v56, %v714_v12  ;;  %v407_v12 = vunpack.c.h.b16 %v1965_v20  ;;  %v1346_v20 = vld [vmem:[%s2551_s0 + $0x110] sm:$0xf] }
  0xa9   :  { %v1102_v14 = vmax.f32 %v979_v11, 0.0  ;;  %v848_v25 = vadd.f32 %v847_v13, %v715_v15  ;;  %v1338_v11 = vld [vmem:[%s2551_s0 + $0x108] sm:$0xf]  ;;  %v1622_v13 = vld [vmem:[%s2551_s0 + $0x110] sm:$0xf0]  ;;  %v482_v22 = vpack.c.b16 %v407_v12, %v407_v12 }
  0xaa   :  { %v1340_v15 = vld [vmem:[%s2551_s0 + $0x114] sm:$0xf0]  ;;  %v1339_v21 = vor.u32 %v1622_v13, %v1338_v11  ;;  %v1454_v11 = vld [vmem:[%s2551_s0 + $0x1e8] sm:$0xf]  ;;  %v1650_v12 = vld [vmem:[%s2551_s0 + $0x1f0] sm:$0xf0] }
  0xab   :  { %1151 = vst [vmem:[%s2552_s3] sm:$0xff] %v1102_v14  ;;  %v1621_v14 = vld [vmem:[%s2551_s0 + $0x10c] sm:$0xf]  ;;  %v1364_v13 = vld [vmem:[%s2551_s0 + $0x144] sm:$0xf0] }
  0xac   :  { %v2094_v26 = vpop.f32.mrf.mxu3 }
  0xae   :  { %v980_v27 = vpop.f32.mrf.mxu2  ;;  %v717_v31 = vpop.f32.mrf.mxu0 }
  0xaf   :  { %v981_v30 = vadd.f32 %v980_v27, %v848_v25  ;;  %v718_v34 = vadd.f32 %v2037_v56, %v717_v31  ;;  %v850_v35 = vpop.f32.mrf.mxu1  ;;  %v1343_v25 = vor.u32 %v1621_v14, %v1340_v15  ;;  %v1347_v27 = vor.u32 %v1623_v16, %v1346_v20  ;;  %v1370_v14 = vld [vmem:[%s2551_s0 + $0x140] sm:$0xf]  ;;  %v1629_v15 = vld [vmem:[%s2551_s0 + $0x148] sm:$0xf0] }
  0xb1   :  { %v1103_v36 = vmax.f32 %v981_v30, 0.0  ;;  %756 = vmatmul.bf16.gmra.mxu0 %v1315_v28  ;;  %954 = vmatmul.bf16.gmra.mxu3 %v1475_v29  ;;  %v851_v37 = vadd.f32 %v850_v35, %v718_v34 }
  0xb2   :  { %889 = vmatmul.bf16.gmra.mxu1 %v1319_v32 }
  0xb3   :  { %1152 = vst [vmem:[%s2552_s3 + $0x8] sm:$0xff] %v1103_v36  ;;  %1022 = vmatmul.bf16.gmra.mxu2 %v1323_v33 }
  0xb4   :  { %v2100_v38 = vpop.f32.mrf.mxu3 }
  0xb6   :  { %v983_v39 = vpop.f32.mrf.mxu2  ;;  %v719_v41 = vpop.f32.mrf.mxu0 }
  0xb7   :  { %v984_v40 = vadd.f32 %v983_v39, %v851_v37  ;;  %v852_v42 = vpop.f32.mrf.mxu1  ;;  %v720_v44 = vadd.f32 %v2037_v56, %v719_v41  ;;  %v1625_v41 = vld [vmem:[%s2551_s0 + $0x128] sm:$0xf0] }
  0xb9   :  { %v1104_v43 = vmax.f32 %v984_v40, 0.0  ;;  %v853_v53 = vadd.f32 %v852_v42, %v720_v44  ;;  %v1350_v40 = vld [vmem:[%s2551_s0 + $0x120] sm:$0xf]  ;;  %v1624_v42 = vld [vmem:[%s2551_s0 + $0x124] sm:$0xf] }
  0xba   :  { %v1647_v44 = vld [vmem:[%s2551_s0 + $0x1d8] sm:$0xf0]  ;;  %v1351_v51 = vor.u32 %v1625_v41, %v1350_v40  ;;  %v1374_v40 = vld [vmem:[%s2551_s0 + $0x150] sm:$0xf] }
  0xbb   :  { %1153 = vst [vmem:[%s2552_s3 + $0x10] sm:$0xff] %v1104_v43  ;;  %v1442_v43 = vld [vmem:[%s2551_s0 + $0x1d0] sm:$0xf]  ;;  %v1631_v41 = vld [vmem:[%s2551_s0 + $0x158] sm:$0xf0] }
  0xbc   :  { %v2130_v54 = vpop.f32.mrf.mxu3  ;;  %v1443_v52 = vor.u32 %v1647_v44, %v1442_v43  ;;  %v1466_v43 = vld [vmem:[%s2551_s0 + $0x200] sm:$0xf]  ;;  %v1653_v44 = vld [vmem:[%s2551_s0 + $0x208] sm:$0xf0] }
  0xbe   :  { %v985_v55 = vpop.f32.mrf.mxu2  ;;  %v722_v60 = vpop.f32.mrf.mxu0 }
  0xbf   :  { %v986_v59 = vadd.f32 %v985_v55, %v853_v53  ;;  %v723_v63 = vadd.f32 %v2037_v56, %v722_v60  ;;  %v855_v0 = vpop.f32.mrf.mxu1 }
  0xc1   :  { %v1105_v1 = vmax.f32 %v986_v59, 0.0  ;;  %761 = vmatmul.bf16.gmra.mxu0 %v1327_v57  ;;  %959 = vmatmul.bf16.gmra.mxu3 %v1487_v58  ;;  %v856_v2 = vadd.f32 %v855_v0, %v723_v63  ;;  %v1355_v57 = vor.u32 %v1624_v42, %v1352_v45  ;;  %v1359_v58 = vor.u32 %v1626_v47, %v1358_v46  ;;  %v1630_v42 = vld [vmem:[%s2551_s0 + $0x154] sm:$0xf]  ;;  %v1376_v45 = vld [vmem:[%s2551_s0 + $0x15c] sm:$0xf0] }
  0xc2   :  { %894 = vmatmul.bf16.gmra.mxu1 %v1331_v61  ;;  %v1382_v46 = vld [vmem:[%s2551_s0 + $0x158] sm:$0xf]  ;;  %v1632_v47 = vld [vmem:[%s2551_s0 + $0x160] sm:$0xf0] }
  0xc3   :  { %1154 = vst [vmem:[%s2552_s3 + $0x18] sm:$0xff] %v1105_v1  ;;  %1027 = vmatmul.bf16.gmra.mxu2 %v1335_v62 }
  0xc4   :  { %v2136_v3 = vpop.f32.mrf.mxu3 }
  0xc6   :  { %v988_v4 = vpop.f32.mrf.mxu2  ;;  %v724_v6 = vpop.f32.mrf.mxu0 }
  0xc7   :  { %v989_v5 = vadd.f32 %v988_v4, %v856_v2  ;;  %v857_v7 = vpop.f32.mrf.mxu1  ;;  %v725_v10 = vadd.f32 %v2037_v56, %v724_v6 }
  0xc9   :  { %v1106_v8 = vmax.f32 %v989_v5, 0.0  ;;  %v858_v17 = vadd.f32 %v857_v7, %v725_v10  ;;  %v1362_v7 = vld [vmem:[%s2551_s0 + $0x138] sm:$0xf]  ;;  %v1627_v10 = vld [vmem:[%s2551_s0 + $0x13c] sm:$0xf] }
  0xcb   :  { %1155 = vst [vmem:[%s2552_s3 + $0x20] sm:$0xff] %v1106_v8  ;;  %v1628_v8 = vld [vmem:[%s2551_s0 + $0x140] sm:$0xf0] }
  0xcc   :  { %v2161_v18 = vpop.f32.mrf.mxu3 }
  0xce   :  { %v990_v19 = vpop.f32.mrf.mxu2  ;;  %v727_v24 = vpop.f32.mrf.mxu0 }
  0xcf   :  { %v991_v23 = vadd.f32 %v990_v19, %v858_v17  ;;  %v728_v28 = vadd.f32 %v2037_v56, %v727_v24  ;;  %v860_v29 = vpop.f32.mrf.mxu1  ;;  %v1363_v19 = vor.u32 %v1628_v8, %v1362_v7  ;;  %v1367_v24 = vor.u32 %v1627_v10, %v1364_v13  ;;  %v1634_v13 = vld [vmem:[%s2551_s0 + $0x170] sm:$0xf0] }
  0xd1   :  { %v1107_v30 = vmax.f32 %v991_v23, 0.0  ;;  %766 = vmatmul.bf16.gmra.mxu0 %v1339_v21  ;;  %964 = vmatmul.bf16.gmra.mxu3 %v482_v22  ;;  %v861_v31 = vadd.f32 %v860_v29, %v728_v28  ;;  %v1455_v21 = vor.u32 %v1650_v12, %v1454_v11  ;;  %v1386_v12 = vld [vmem:[%s2551_s0 + $0x168] sm:$0xf] }
  0xd2   :  { %899 = vmatmul.bf16.gmra.mxu1 %v1343_v25  ;;  %v1371_v25 = vor.u32 %v1629_v15, %v1370_v14  ;;  %v1478_v14 = vld [vmem:[%s2551_s0 + $0x218] sm:$0xf]  ;;  %v1656_v15 = vld [vmem:[%s2551_s0 + $0x220] sm:$0xf0] }
  0xd3   :  { %1156 = vst [vmem:[%s2552_s3 + $0x28] sm:$0xff] %v1107_v30  ;;  %1032 = vmatmul.bf16.gmra.mxu2 %v1347_v27 }
  0xd4   :  { %v2167_v32 = vpop.f32.mrf.mxu3 }
  0xd6   :  { %v993_v33 = vpop.f32.mrf.mxu2  ;;  %v729_v35 = vpop.f32.mrf.mxu0 }
  0xd7   :  { %v994_v34 = vadd.f32 %v993_v33, %v861_v31  ;;  %v862_v36 = vpop.f32.mrf.mxu1  ;;  %v730_v39 = vadd.f32 %v2037_v56, %v729_v35 }
  0xd9   :  { %v1108_v37 = vmax.f32 %v994_v34, 0.0  ;;  %v863_v48 = vadd.f32 %v862_v36, %v730_v39 }
  0xdb   :  { %1157 = vst [vmem:[%s2552_s3 + $0x30] sm:$0xff] %v1108_v37 }
  0xdc   :  { %v2197_v49 = vpop.f32.mrf.mxu3 }
  0xde   :  { %v995_v50 = vpop.f32.mrf.mxu2  ;;  %v732_v55 = vpop.f32.mrf.mxu0 }
  0xdf   :  { %v996_v53 = vadd.f32 %v995_v50, %v863_v48  ;;  %v733_v59 = vadd.f32 %v2037_v56, %v732_v55  ;;  %v865_v60 = vpop.f32.mrf.mxu1 }
  0xe1   :  { %v1109_v61 = vmax.f32 %v996_v53, 0.0  ;;  %771 = vmatmul.bf16.gmra.mxu0 %v1351_v51  ;;  %1072 = vmatmul.bf16.vlgmr.msra.gmra.mxu3 %v1443_v52  ;;  %v866_v62 = vadd.f32 %v865_v60, %v733_v59  ;;  %v1375_v52 = vor.u32 %v1631_v41, %v1374_v40  ;;  %v1467_v53 = vor.u32 %v1653_v44, %v1466_v43 }
  0xe2   :  { %904 = vmatmul.bf16.gmra.mxu1 %v1355_v57  ;;  %v1383_v59 = vor.u32 %v1632_v47, %v1382_v46 }
  0xe3   :  { %1158 = vst [vmem:[%s2552_s3 + $0x38] sm:$0xff] %v1109_v61  ;;  %1037 = vmatmul.bf16.gmra.mxu2 %v1359_v58  ;;  %v1379_v58 = vor.u32 %v1630_v42, %v1376_v45 }
  0xe4   :  { %v2203_v63 = vpop.f32.mrf.mxu3 }
  0xe6   :  { %v998_v0 = vpop.f32.mrf.mxu2  ;;  %v734_v2 = vpop.f32.mrf.mxu0 }
  0xe7   :  { %v999_v1 = vadd.f32 %v998_v0, %v866_v62  ;;  %v867_v4 = vpop.f32.mrf.mxu1  ;;  %v735_v6 = vadd.f32 %v2037_v56, %v734_v2 }
  0xe9   :  { %v1110_v5 = vmax.f32 %v999_v1, 0.0  ;;  %v868_v20 = vadd.f32 %v867_v4, %v735_v6  ;;  %v808_v1 = vadd.f32 %v2037_v56, %v2064_v9  ;;  %v1633_v9 = vld [vmem:[%s2551_s0 + $0x16c] sm:$0xf] }
  0xeb   :  { %1159 = vst [vmem:[%s2552_s3 + $0x40] sm:$0xff] %v1110_v5 }
  0xec   :  { %v2233_v16 = vpop.f32.mrf.mxu3 }
  0xee   :  { %v1000_v17 = vpop.f32.mrf.mxu2  ;;  %v737_v23 = vpop.f32.mrf.mxu0 }
  0xef   :  { %v1001_v22 = vadd.f32 %v1000_v17, %v868_v20  ;;  %v738_v27 = vadd.f32 %v2037_v56, %v737_v23  ;;  %v870_v28 = vpop.f32.mrf.mxu1  ;;  %v810_v20 = vadd.f32 %v2037_v56, %v2094_v26  ;;  %v1388_v17 = vld [vmem:[%s2551_s0 + $0x174] sm:$0xf0] }
  0xf1   :  { %v1111_v29 = vmax.f32 %v1001_v22, 0.0  ;;  %776 = vmatmul.bf16.gmra.mxu0 %v1363_v19  ;;  %1077 = vmatmul.bf16.gmra.mxu3 %v1455_v21  ;;  %v871_v30 = vadd.f32 %v870_v28, %v738_v27  ;;  %v1394_v19 = vld [vmem:[%s2551_s0 + $0x170] sm:$0xf]  ;;  %v1635_v21 = vld [vmem:[%s2551_s0 + $0x178] sm:$0xf0]  ;;  %v1387_v27 = vor.u32 %v1634_v13, %v1386_v12  ;;  %v1479_v28 = vor.u32 %v1656_v15, %v1478_v14 }
  0xf2   :  { %909 = vmatmul.bf16.gmra.mxu1 %v1367_v24  ;;  %v818_v12 = vadd.f32 %v2037_v56, %v2136_v3  ;;  %v1640_v3 = vld [vmem:[%s2551_s0 + $0x1a0] sm:$0xf0] }
  0xf3   :  { %1160 = vst [vmem:[%s2552_s3 + $0x48] sm:$0xff] %v1111_v29  ;;  %1042 = vmatmul.bf16.gmra.mxu2 %v1371_v25 }
  0xf4   :  { %v2239_v31 = vpop.f32.mrf.mxu3 }
  0xf6   :  { %v1003_v33 = vpop.f32.mrf.mxu2  ;;  %v739_v35 = vpop.f32.mrf.mxu0 }
  0xf7   :  { %v1004_v34 = vadd.f32 %v1003_v33, %v871_v30  ;;  %v872_v36 = vpop.f32.mrf.mxu1  ;;  %v740_v39 = vadd.f32 %v2037_v56, %v739_v35  ;;  %v1391_v30 = vor.u32 %v1633_v9, %v1388_v17  ;;  %v1395_v33 = vor.u32 %v1635_v21, %v1394_v19  ;;  %v111_v17 = vld [vmem:[%s2551_s0 + $0x248] sm:$0xf] }
  0xf9   :  { %v1112_v37 = vmax.f32 %v1004_v34, 0.0  ;;  %v873_v48 = vadd.f32 %v872_v36, %v740_v39  ;;  %v813_v39 = vadd.f32 %v2037_v56, %v2100_v38  ;;  %v1636_v38 = vld [vmem:[%s2551_s0 + $0x184] sm:$0xf] }
  0xfb   :  { %1161 = vst [vmem:[%s2552_s3 + $0x50] sm:$0xff] %v1112_v37 }
  0xfc   :  { %v834_v50 = vpop.f32.mrf.mxu3 }
  0xfd   :  { %v1637_v50 = vld [vmem:[%s2551_s0 + $0x188] sm:$0xf0] }
  0xfe   :  { %v1005_v51 = vpop.f32.mrf.mxu2  ;;  %v742_v57 = vpop.f32.mrf.mxu0 }
  0xff   :  { %v1006_v55 = vadd.f32 %v1005_v51, %v873_v48  ;;  %v743_v60 = vadd.f32 %v2037_v56, %v742_v57  ;;  %v875_v61 = vpop.f32.mrf.mxu1  ;;  %v1398_v48 = vld [vmem:[%s2551_s0 + $0x180] sm:$0xf]  ;;  %v1490_v51 = vld [vmem:[%s2551_s0 + $0x230] sm:$0xf]  ;;  %v1406_v57 = vld [vmem:[%s2551_s0 + $0x188] sm:$0xf] }
 0x101   :  { %v1113_v62 = vmax.f32 %v1006_v55, 0.0  ;;  %781 = vmatmul.bf16.gmra.mxu0 %v1375_v52  ;;  %1082 = vmatmul.bf16.gmra.mxu3 %v1467_v53  ;;  %v876_v0 = vadd.f32 %v875_v61, %v743_v60  ;;  %v1659_v52 = vld [vmem:[%s2551_s0 + $0x238] sm:$0xf0]  ;;  %v815_v53 = vadd.f32 %v2037_v56, %v2130_v54  ;;  %v1400_v55 = vld [vmem:[%s2551_s0 + $0x18c] sm:$0xf0] }
 0x102   :  { %914 = vmatmul.bf16.gmra.mxu1 %v1379_v58  ;;  %v1638_v58 = vld [vmem:[%s2551_s0 + $0x190] sm:$0xf0] }
 0x103   :  { %1162 = vst [vmem:[%s2552_s3 + $0x58] sm:$0xff] %v1113_v62  ;;  %1047 = vmatmul.bf16.gmra.mxu2 %v1383_v59 }
 0x104   :  { %v940_v2 = vpop.f32.mrf.mxu3 }
 0x105   :  { %v2275_v4 = vadd.f32 %v940_v2, %v808_v1  ;;  %v1491_v1 = vor.u32 %v1659_v52, %v1490_v51 }
 0x106   :  { %v1008_v5 = vpop.f32.mrf.mxu2  ;;  %v744_v7 = vpop.f32.mrf.mxu0 }
 0x107   :  { %v1009_v6 = vadd.f32 %v1008_v5, %v876_v0  ;;  %v877_v8 = vpop.f32.mrf.mxu1  ;;  %v745_v11 = vadd.f32 %v2037_v56, %v744_v7  ;;  %v1399_v0 = vor.u32 %v1637_v50, %v1398_v48  ;;  %v1403_v5 = vor.u32 %v1636_v38, %v1400_v55 }
 0x108   :  { %v823_v48 = vadd.f32 %v2037_v56, %v2167_v32  ;;  %v1643_v32 = vld [vmem:[%s2551_s0 + $0x1b8] sm:$0xf0] }
 0x109   :  { %v1114_v10 = vmax.f32 %v1009_v6, 0.0  ;;  %v878_v22 = vadd.f32 %v877_v8, %v745_v11  ;;  %v1407_v6 = vor.u32 %v1638_v58, %v1406_v57 }
 0x10b   :  { %1163 = vst [vmem:[%s2552_s3 + $0x60] sm:$0xff] %v1114_v10 }
 0x10c   :  { %v942_v23 = vpop.f32.mrf.mxu3 }
 0x10d   :  { %v2307_v24 = vadd.f32 %v942_v23, %v810_v20  ;;  %v1410_v23 = vld [vmem:[%s2551_s0 + $0x198] sm:$0xf] }
 0x10e   :  { %v1010_v25 = vpop.f32.mrf.mxu2  ;;  %v747_v29 = vpop.f32.mrf.mxu0 }
 0x10f   :  { %v1011_v26 = vadd.f32 %v1010_v25, %v878_v22  ;;  %v748_v34 = vadd.f32 %v2037_v56, %v747_v29  ;;  %v880_v35 = vpop.f32.mrf.mxu1  ;;  %v408_v25 = vunpack.c.l.b16 %v111_v17  ;;  %v1418_v29 = vld [vmem:[%s2551_s0 + $0x1a0] sm:$0xf]  ;;  %v828_v17 = vadd.f32 %v2037_v56, %v2203_v63 }
 0x111   :  { %v1115_v36 = vmax.f32 %v1011_v26, 0.0  ;;  %786 = vmatmul.bf16.gmra.mxu0 %v1387_v27  ;;  %1087 = vmatmul.bf16.gmra.mxu3 %v1479_v28  ;;  %v881_v37 = vadd.f32 %v880_v35, %v748_v34  ;;  %v1639_v27 = vld [vmem:[%s2551_s0 + $0x19c] sm:$0xf]  ;;  %v820_v28 = vadd.f32 %v2037_v56, %v2161_v18  ;;  %v1412_v26 = vld [vmem:[%s2551_s0 + $0x1a4] sm:$0xf0] }
 0x112   :  { %919 = vmatmul.bf16.gmra.mxu1 %v1391_v30  ;;  %v1641_v30 = vld [vmem:[%s2551_s0 + $0x1a8] sm:$0xf0] }
 0x113   :  { %1164 = vst [vmem:[%s2552_s3 + $0x68] sm:$0xff] %v1115_v36  ;;  %1052 = vmatmul.bf16.gmra.mxu2 %v1395_v33 }
 0x114   :  { %v945_v40 = vpop.f32.mrf.mxu3 }
 0x115   :  { %v2315_v41 = vadd.f32 %v945_v40, %v813_v39  ;;  %v483_v39 = vpack.c.b16 %v408_v25, %v408_v25 }
 0x116   :  { %v1013_v42 = vpop.f32.mrf.mxu2  ;;  %v749_v44 = vpop.f32.mrf.mxu0 }
 0x117   :  { %v1014_v43 = vadd.f32 %v1013_v42, %v881_v37  ;;  %v882_v45 = vpop.f32.mrf.mxu1  ;;  %v750_v47 = vadd.f32 %v2037_v56, %v749_v44  ;;  %v1411_v37 = vor.u32 %v1640_v3, %v1410_v23  ;;  %v1415_v42 = vor.u32 %v1639_v27, %v1412_v26 }
 0x118   :  { %v830_v26 = vadd.f32 %v2037_v56, %v2233_v16 }
 0x119   :  { %v1116_v46 = vmax.f32 %v1014_v43, 0.0  ;;  %v883_v59 = vadd.f32 %v882_v45, %v750_v47  ;;  %v1419_v43 = vor.u32 %v1641_v30, %v1418_v29 }
 0x11b   :  { %1165 = vst [vmem:[%s2552_s3 + $0x70] sm:$0xff] %v1116_v46 }
 0x11c   :  { %v947_v60 = vpop.f32.mrf.mxu3 }
 0x11d   :  { %v2347_v61 = vadd.f32 %v947_v60, %v815_v53  ;;  %v1642_v60 = vld [vmem:[%s2551_s0 + $0x1b4] sm:$0xf] }
 0x11e   :  { %v1015_v62 = vpop.f32.mrf.mxu2  ;;  %v752_v2 = vpop.f32.mrf.mxu0 }
 0x11f   :  { %v1016_v54 = vadd.f32 %v1015_v62, %v883_v59  ;;  %v753_v7 = vadd.f32 %v2037_v56, %v752_v2  ;;  %v885_v8 = vpop.f32.mrf.mxu1  ;;  %v1422_v59 = vld [vmem:[%s2551_s0 + $0x1b0] sm:$0xf]  ;;  %v825_v62 = vadd.f32 %v2037_v56, %v2197_v49 }
 0x121   :  { %v1117_v10 = vmax.f32 %v1016_v54, 0.0  ;;  %791 = vmatmul.bf16.gmra.mxu0 %v1399_v0  ;;  %1092 = vmatmul.bf16.gmra.mxu3 %v1491_v1  ;;  %v886_v11 = vadd.f32 %v885_v8, %v753_v7  ;;  %v1424_v0 = vld [vmem:[%s2551_s0 + $0x1bc] sm:$0xf0]  ;;  %v1430_v1 = vld [vmem:[%s2551_s0 + $0x1b8] sm:$0xf]  ;;  %v1423_v8 = vor.u32 %v1643_v32, %v1422_v59 }
 0x122   :  { %924 = vmatmul.bf16.gmra.mxu1 %v1403_v5  ;;  %v1644_v54 = vld [vmem:[%s2551_s0 + $0x1c0] sm:$0xf0] }
 0x123   :  { %1166 = vst [vmem:[%s2552_s3 + $0x78] sm:$0xff] %v1117_v10  ;;  %1057 = vmatmul.bf16.gmra.mxu2 %v1407_v6 }
 0x124   :  { %v950_v13 = vpop.f32.mrf.mxu3 }
 0x125   :  { %v2355_v9 = vadd.f32 %v950_v13, %v818_v12  ;;  %v1431_v12 = vor.u32 %v1644_v54, %v1430_v1 }
 0x126   :  { %v1018_v14 = vpop.f32.mrf.mxu2  ;;  %v754_v20 = vpop.f32.mrf.mxu0 }
 0x127   :  { %v1019_v15 = vadd.f32 %v1018_v14, %v886_v11  ;;  %v887_v19 = vpop.f32.mrf.mxu1  ;;  %v755_v22 = vadd.f32 %v2037_v56, %v754_v20  ;;  %v1427_v11 = vor.u32 %v1642_v60, %v1424_v0 }
 0x129   :  { %v1118_v21 = vmax.f32 %v1019_v15, 0.0  ;;  %v888_v33 = vadd.f32 %v887_v19, %v755_v22 }
 0x12b   :  { %1167 = vst [vmem:[%s2552_s3 + $0x80] sm:$0xff] %v1118_v21 }
 0x12c   :  { %v952_v34 = vpop.f32.mrf.mxu3 }
 0x12d   :  { %v2384_v35 = vadd.f32 %v952_v34, %v820_v28 }
 0x12e   :  { %v1020_v36 = vpop.f32.mrf.mxu2  ;;  %v757_v40 = vpop.f32.mrf.mxu0 }
 0x12f   :  { %v1021_v18 = vadd.f32 %v1020_v36, %v888_v33  ;;  %v758_v44 = vadd.f32 %v2037_v56, %v757_v40  ;;  %v890_v45 = vpop.f32.mrf.mxu1 }
 0x131   :  { %v1119_v46 = vmax.f32 %v1021_v18, 0.0  ;;  %796 = vmatmul.bf16.gmra.mxu0 %v1411_v37  ;;  %1097 = vmatmul.bf16.gmra.mxu3 %v483_v39  ;;  %v891_v47 = vadd.f32 %v890_v45, %v758_v44 }
 0x132   :  { %929 = vmatmul.bf16.gmra.mxu1 %v1415_v42  ;;  %v833_v42 = vadd.f32 %v2037_v56, %v2239_v31 }
 0x133   :  { %1168 = vst [vmem:[%s2552_s3 + $0x88] sm:$0xff] %v1119_v46  ;;  %1062 = vmatmul.bf16.gmra.mxu2 %v1419_v43 }
 0x134   :  { %v955_v50 = vpop.f32.mrf.mxu3 }
 0x135   :  { %v2392_v38 = vadd.f32 %v955_v50, %v823_v48 }
 0x136   :  { %v1023_v51 = vpop.f32.mrf.mxu2  ;;  %v759_v53 = vpop.f32.mrf.mxu0 }
 0x137   :  { %v1024_v52 = vadd.f32 %v1023_v51, %v891_v47  ;;  %v892_v55 = vpop.f32.mrf.mxu1  ;;  %v760_v58 = vadd.f32 %v2037_v56, %v759_v53 }
 0x139   :  { %v1120_v57 = vmax.f32 %v1024_v52, 0.0  ;;  %v893_v2 = vadd.f32 %v892_v55, %v760_v58 }
 0x13b   :  { %1169 = vst [vmem:[%s2552_s3 + $0x90] sm:$0xff] %v1120_v57 }
 0x13c   :  { %v957_v5 = vpop.f32.mrf.mxu3 }
 0x13d   :  { %v2418_v6 = vadd.f32 %v957_v5, %v825_v62 }
 0x13e   :  { %v1025_v7 = vpop.f32.mrf.mxu2  ;;  %v762_v49 = vpop.f32.mrf.mxu0 }
 0x13f   :  { %v1026_v10 = vadd.f32 %v1025_v7, %v893_v2  ;;  %v763_v13 = vadd.f32 %v2037_v56, %v762_v49  ;;  %v895_v14 = vpop.f32.mrf.mxu1 }
 0x141   :  { %v1121_v15 = vmax.f32 %v1026_v10, 0.0  ;;  %801 = vmatmul.bf16.gmra.mxu0 %v1423_v8  ;;  %v896_v20 = vadd.f32 %v895_v14, %v763_v13 }
 0x142   :  { %934 = vmatmul.bf16.gmra.mxu1 %v1427_v11 }
 0x143   :  { %1170 = vst [vmem:[%s2552_s3 + $0x98] sm:$0xff] %v1121_v15  ;;  %1067 = vmatmul.bf16.gmra.mxu2 %v1431_v12 }
 0x144   :  { %v960_v19 = vpop.f32.mrf.mxu3 }
 0x145   :  { %v2426_v21 = vadd.f32 %v960_v19, %v828_v17 }
 0x146   :  { %v1028_v22 = vpop.f32.mrf.mxu2  ;;  %v764_v25 = vpop.f32.mrf.mxu0 }
 0x147   :  { %v1029_v23 = vadd.f32 %v1028_v22, %v896_v20  ;;  %v897_v3 = vpop.f32.mrf.mxu1  ;;  %v765_v28 = vadd.f32 %v2037_v56, %v764_v25 }
 0x149   :  { %v1122_v27 = vmax.f32 %v1029_v23, 0.0  ;;  %v898_v29 = vadd.f32 %v897_v3, %v765_v28 }
 0x14b   :  { %1171 = vst [vmem:[%s2552_s3 + $0xa0] sm:$0xff] %v1122_v27 }
 0x14c   :  { %v962_v30 = vpop.f32.mrf.mxu3 }
 0x14d   :  { %v2434_v63 = vadd.f32 %v962_v30, %v830_v26 }
 0x14e   :  { %v1030_v33 = vpop.f32.mrf.mxu2  ;;  %v767_v36 = vpop.f32.mrf.mxu0 }
 0x14f   :  { %v1031_v34 = vadd.f32 %v1030_v33, %v898_v29  ;;  %v768_v37 = vadd.f32 %v2037_v56, %v767_v36  ;;  %v900_v39 = vpop.f32.mrf.mxu1 }
 0x151   :  { %v1123_v18 = vmax.f32 %v1031_v34, 0.0  ;;  %v901_v40 = vadd.f32 %v900_v39, %v768_v37 }
 0x153   :  { %1172 = vst [vmem:[%s2552_s3 + $0xa8] sm:$0xff] %v1123_v18 }
 0x154   :  { %v965_v16 = vpop.f32.mrf.mxu3 }
 0x155   :  { %v2442_v43 = vadd.f32 %v965_v16, %v833_v42 }
 0x156   :  { %v1033_v44 = vpop.f32.mrf.mxu2  ;;  %v769_v46 = vpop.f32.mrf.mxu0 }
 0x157   :  { %v1034_v45 = vadd.f32 %v1033_v44, %v901_v40  ;;  %v902_v47 = vpop.f32.mrf.mxu1  ;;  %v770_v50 = vadd.f32 %v2037_v56, %v769_v46 }
 0x159   :  { %v1124_v48 = vmax.f32 %v1034_v45, 0.0  ;;  %v903_v51 = vadd.f32 %v902_v47, %v770_v50 }
 0x15b   :  { %1173 = vst [vmem:[%s2552_s3 + $0xb0] sm:$0xff] %v1124_v48 }
 0x15c   :  { %v967_v52 = vpop.f32.mrf.mxu3 }
 0x15e   :  { %v1035_v53 = vpop.f32.mrf.mxu2  ;;  %v772_v57 = vpop.f32.mrf.mxu0 }
 0x15f   :  { %v1036_v55 = vadd.f32 %v1035_v53, %v903_v51  ;;  %v773_v31 = vadd.f32 %v2037_v56, %v772_v57  ;;  %v905_v58 = vpop.f32.mrf.mxu1 }
 0x161   :  { %v1125_v59 = vmax.f32 %v1036_v55, 0.0  ;;  %v906_v32 = vadd.f32 %v905_v58, %v773_v31 }
 0x163   :  { %1174 = vst [vmem:[%s2552_s3 + $0xb8] sm:$0xff] %v1125_v59 }
 0x164   :  { %v1073_v60 = vpop.f32.mrf.mxu3 }
 0x165   :  { %v1074_v0 = vadd.f32 %v1073_v60, %v2275_v4 }
 0x166   :  { %v1038_v62 = vpop.f32.mrf.mxu2  ;;  %v774_v54 = vpop.f32.mrf.mxu0 }
 0x167   :  { %v1039_v1 = vadd.f32 %v1038_v62, %v906_v32  ;;  %v1140_v2 = vmax.f32 %v1074_v0, 0.0  ;;  %v907_v5 = vpop.f32.mrf.mxu1  ;;  %v775_v8 = vadd.f32 %v2037_v56, %v774_v54 }
 0x169   :  { %v1126_v7 = vmax.f32 %v1039_v1, 0.0  ;;  %1189 = vst [vmem:[%s2552_s3 + $0x130] sm:$0xff] %v1140_v2  ;;  %v908_v10 = vadd.f32 %v907_v5, %v775_v8 }
 0x16b   :  { %1175 = vst [vmem:[%s2552_s3 + $0xc0] sm:$0xff] %v1126_v7 }
 0x16c   :  { %v1075_v49 = vpop.f32.mrf.mxu3 }
 0x16d   :  { %v1076_v4 = vadd.f32 %v1075_v49, %v2307_v24 }
 0x16e   :  { %v1040_v11 = vpop.f32.mrf.mxu2  ;;  %v777_v13 = vpop.f32.mrf.mxu0 }
 0x16f   :  { %v1041_v12 = vadd.f32 %v1040_v11, %v908_v10  ;;  %v1141_v14 = vmax.f32 %v1076_v4, 0.0  ;;  %v778_v15 = vadd.f32 %v2037_v56, %v777_v13  ;;  %v910_v20 = vpop.f32.mrf.mxu1 }
 0x171   :  { %v1127_v17 = vmax.f32 %v1041_v12, 0.0  ;;  %1190 = vst [vmem:[%s2552_s3 + $0x138] sm:$0xff] %v1141_v14  ;;  %v911_v19 = vadd.f32 %v910_v20, %v778_v15 }
 0x173   :  { %1176 = vst [vmem:[%s2552_s3 + $0xc8] sm:$0xff] %v1127_v17 }
 0x174   :  { %v1078_v22 = vpop.f32.mrf.mxu3 }
 0x175   :  { %v1079_v24 = vadd.f32 %v1078_v22, %v2315_v41 }
 0x176   :  { %v1043_v23 = vpop.f32.mrf.mxu2  ;;  %v779_v3 = vpop.f32.mrf.mxu0 }
 0x177   :  { %v1044_v25 = vadd.f32 %v1043_v23, %v911_v19  ;;  %v1142_v27 = vmax.f32 %v1079_v24, 0.0  ;;  %v912_v28 = vpop.f32.mrf.mxu1  ;;  %v780_v29 = vadd.f32 %v2037_v56, %v779_v3 }
 0x179   :  { %v1128_v26 = vmax.f32 %v1044_v25, 0.0  ;;  %1191 = vst [vmem:[%s2552_s3 + $0x140] sm:$0xff] %v1142_v27  ;;  %v913_v30 = vadd.f32 %v912_v28, %v780_v29 }
 0x17b   :  { %1177 = vst [vmem:[%s2552_s3 + $0xd0] sm:$0xff] %v1128_v26  ;;  %v1709_v26 = vld [vmem:[%s2550_s2] ss:$0 sm:$0xff] }
 0x17c   :  { %v1080_v33 = vpop.f32.mrf.mxu3 }
 0x17d   :  { %v1081_v41 = vadd.f32 %v1080_v33, %v2347_v61 }
 0x17e   :  { %v1045_v34 = vpop.f32.mrf.mxu2  ;;  %v782_v37 = vpop.f32.mrf.mxu0 }
 0x17f   :  { %v1046_v36 = vadd.f32 %v1045_v34, %v913_v30  ;;  %v1143_v39 = vmax.f32 %v1081_v41, 0.0  ;;  %v783_v18 = vadd.f32 %v2037_v56, %v782_v37  ;;  %v915_v40 = vpop.f32.mrf.mxu1 }
 0x181   :  { %v1129_v42 = vmax.f32 %v1046_v36, 0.0  ;;  %1192 = vst [vmem:[%s2552_s3 + $0x148] sm:$0xff] %v1143_v39  ;;  %v916_v16 = vadd.f32 %v915_v40, %v783_v18 }
 0x183   :  { %1178 = vst [vmem:[%s2552_s3 + $0xd8] sm:$0xff] %v1129_v42 }
 0x184   :  { %v1083_v44 = vpop.f32.mrf.mxu3 }
 0x185   :  { %v1084_v61 = vadd.f32 %v1083_v44, %v2355_v9 }
 0x186   :  { %v1048_v45 = vpop.f32.mrf.mxu2  ;;  %v784_v47 = vpop.f32.mrf.mxu0 }
 0x187   :  { %v1049_v46 = vadd.f32 %v1048_v45, %v916_v16  ;;  %v1144_v48 = vmax.f32 %v1084_v61, 0.0  ;;  %v917_v50 = vpop.f32.mrf.mxu1  ;;  %v785_v52 = vadd.f32 %v2037_v56, %v784_v47 }
 0x189   :  { %v1130_v51 = vmax.f32 %v1049_v46, 0.0  ;;  %1193 = vst [vmem:[%s2552_s3 + $0x150] sm:$0xff] %v1144_v48  ;;  %v918_v53 = vadd.f32 %v917_v50, %v785_v52 }
 0x18b   :  { %1179 = vst [vmem:[%s2552_s3 + $0xe0] sm:$0xff] %v1130_v51 }
 0x18c   :  { %v1085_v55 = vpop.f32.mrf.mxu3 }
 0x18d   :  { %v1086_v9 = vadd.f32 %v1085_v55, %v2384_v35 }
 0x18e   :  { %v1050_v57 = vpop.f32.mrf.mxu2  ;;  %v787_v58 = vpop.f32.mrf.mxu0 }
 0x18f   :  { %v1051_v31 = vadd.f32 %v1050_v57, %v918_v53  ;;  %v1145_v59 = vmax.f32 %v1086_v9, 0.0  ;;  %v788_v32 = vadd.f32 %v2037_v56, %v787_v58  ;;  %v920_v60 = vpop.f32.mrf.mxu1 }
 0x191   :  { %v1131_v62 = vmax.f32 %v1051_v31, 0.0  ;;  %1194 = vst [vmem:[%s2552_s3 + $0x158] sm:$0xff] %v1145_v59  ;;  %v921_v0 = vadd.f32 %v920_v60, %v788_v32 }
 0x193   :  { %1180 = vst [vmem:[%s2552_s3 + $0xe8] sm:$0xff] %v1131_v62 }
 0x194   :  { %v1088_v1 = vpop.f32.mrf.mxu3 }
 0x195   :  { %v1089_v35 = vadd.f32 %v1088_v1, %v2392_v38 }
 0x196   :  { %v1053_v54 = vpop.f32.mrf.mxu2  ;;  %v789_v5 = vpop.f32.mrf.mxu0 }
 0x197   :  { %v1054_v2 = vadd.f32 %v1053_v54, %v921_v0  ;;  %v1146_v7 = vmax.f32 %v1089_v35, 0.0  ;;  %v922_v8 = vpop.f32.mrf.mxu1  ;;  %v790_v49 = vadd.f32 %v2037_v56, %v789_v5 }
 0x199   :  { %v1132_v10 = vmax.f32 %v1054_v2, 0.0  ;;  %1195 = vst [vmem:[%s2552_s3 + $0x160] sm:$0xff] %v1146_v7  ;;  %v923_v11 = vadd.f32 %v922_v8, %v790_v49 }
 0x19b   :  { %1181 = vst [vmem:[%s2552_s3 + $0xf0] sm:$0xff] %v1132_v10 }
 0x19c   :  { %v1090_v4 = vpop.f32.mrf.mxu3 }
 0x19d   :  { %v1091_v38 = vadd.f32 %v1090_v4, %v2418_v6 }
 0x19e   :  { %v1055_v12 = vpop.f32.mrf.mxu2  ;;  %v792_v14 = vpop.f32.mrf.mxu0 }
 0x19f   :  { %v1056_v13 = vadd.f32 %v1055_v12, %v923_v11  ;;  %v1147_v15 = vmax.f32 %v1091_v38, 0.0  ;;  %v793_v20 = vadd.f32 %v2037_v56, %v792_v14  ;;  %v925_v17 = vpop.f32.mrf.mxu1 }
 0x1a1   :  { %v1133_v19 = vmax.f32 %v1056_v13, 0.0  ;;  %1196 = vst [vmem:[%s2552_s3 + $0x168] sm:$0xff] %v1147_v15  ;;  %v926_v22 = vadd.f32 %v925_v17, %v793_v20 }
 0x1a3   :  { %1182 = vst [vmem:[%s2552_s3 + $0xf8] sm:$0xff] %v1133_v19 }
 0x1a4   :  { %v1093_v23 = vpop.f32.mrf.mxu3 }
 0x1a5   :  { %v1094_v6 = vadd.f32 %v1093_v23, %v2426_v21 }
 0x1a6   :  { %v1058_v24 = vpop.f32.mrf.mxu2  ;;  %v794_v3 = vpop.f32.mrf.mxu0 }
 0x1a7   :  { %v1059_v25 = vadd.f32 %v1058_v24, %v926_v22  ;;  %v1148_v27 = vmax.f32 %v1094_v6, 0.0  ;;  %v927_v28 = vpop.f32.mrf.mxu1  ;;  %v795_v29 = vadd.f32 %v1709_v26, %v794_v3 }
 0x1a9   :  { %v1134_v56 = vmax.f32 %v1059_v25, 0.0  ;;  %1197 = vst [vmem:[%s2552_s3 + $0x170] sm:$0xff] %v1148_v27  ;;  %v928_v30 = vadd.f32 %v927_v28, %v795_v29 }
 0x1ab   :  { %1183 = vst [vmem:[%s2552_s3 + $0x100] sm:$0xff] %v1134_v56 }
 0x1ac   :  { %v1095_v21 = vpop.f32.mrf.mxu3 }
 0x1ad   :  { %v1096_v34 = vadd.f32 %v1095_v21, %v2434_v63 }
 0x1ae   :  { %v1060_v33 = vpop.f32.mrf.mxu2  ;;  %v797_v36 = vpop.f32.mrf.mxu0 }
 0x1af   :  { %v1061_v41 = vadd.f32 %v1060_v33, %v928_v30  ;;  %v1149_v37 = vmax.f32 %v1096_v34, 0.0  ;;  %v798_v39 = vadd.f32 %v1709_v26, %v797_v36  ;;  %v930_v18 = vpop.f32.mrf.mxu1 }
 0x1b1   :  { %v1135_v40 = vmax.f32 %v1061_v41, 0.0  ;;  %1198 = vst [vmem:[%s2552_s3 + $0x178] sm:$0xff] %v1149_v37  ;;  %v931_v42 = vadd.f32 %v930_v18, %v798_v39 }
 0x1b3   :  { %1184 = vst [vmem:[%s2552_s3 + $0x108] sm:$0xff] %v1135_v40 }
 0x1b4   :  { %v1098_v16 = vpop.f32.mrf.mxu3 }
 0x1b5   :  { %v1099_v45 = vadd.f32 %v1098_v16, %v2442_v43 }
 0x1b6   :  { %v1063_v44 = vpop.f32.mrf.mxu2  ;;  %v799_v61 = vpop.f32.mrf.mxu0 }
 0x1b7   :  { %v1064_v63 = vadd.f32 %v1063_v44, %v931_v42  ;;  %v1150_v46 = vmax.f32 %v1099_v45, 0.0  ;;  %v932_v47 = vpop.f32.mrf.mxu1  ;;  %v800_v50 = vadd.f32 %v1709_v26, %v799_v61 }
 0x1b9   :  { %v1136_v48 = vmax.f32 %v1064_v63, 0.0  ;;  %1199 = vst [vmem:[%s2552_s3 + $0x180] sm:$0xff] %v1150_v46  ;;  %v933_v51 = vadd.f32 %v932_v47, %v800_v50 }
 0x1bb   :  { %1185 = vst [vmem:[%s2552_s3 + $0x110] sm:$0xff] %v1136_v48 }
 0x1bc   :  { %v1100_v52 = vpop.f32.mrf.mxu3 }
 0x1be   :  { %v1065_v53 = vpop.f32.mrf.mxu2  ;;  %v802_v57 = vpop.f32.mrf.mxu0 }
 0x1bf   :  { %v1066_v55 = vadd.f32 %v1065_v53, %v933_v51  ;;  %v803_v43 = vadd.f32 %v1709_v26, %v802_v57  ;;  %v935_v31 = vpop.f32.mrf.mxu1 }
 0x1c1   :  { %v1137_v9 = vmax.f32 %v1066_v55, 0.0  ;;  %v936_v58 = vadd.f32 %v935_v31, %v803_v43 }
 0x1c3   :  { %1186 = vst [vmem:[%s2552_s3 + $0x118] sm:$0xff] %v1137_v9 }
 0x1c6   :  { %v1068_v59 = vpop.f32.mrf.mxu2  ;;  %v804_v60 = vpop.f32.mrf.mxu0 }
 0x1c7   :  { %v1069_v32 = vadd.f32 %v1068_v59, %v936_v58  ;;  %v805_v0 = vadd.f32 %v1709_v26, %v804_v60  ;;  %v937_v1 = vpop.f32.mrf.mxu1 }
 0x1c9   :  { %v1138_v62 = vmax.f32 %v1069_v32, 0.0  ;;  %v938_v54 = vadd.f32 %v937_v1, %v805_v0 }
 0x1cb   :  { %1187 = vst [vmem:[%s2552_s3 + $0x120] sm:$0xff] %v1138_v62 }
 0x1ce   :  { %v1070_v35 = vpop.f32.mrf.mxu2 }
 0x1cf   :  { %v1071_v2 = vadd.f32 %v1070_v35, %v938_v54 }
 0x1d1   :  { %v1139_v5 = vmax.f32 %v1071_v2, 0.0 }
 0x1d3   :  { %1188 = vst [vmem:[%s2552_s3 + $0x128] sm:$0xff] %v1139_v5 }

// kernel: cnn_forward.6
= control target key start
LH: loop header
LB: loop body
LE: loop exit
PB: predicated region body
PF: predicated region fallthrough
CT: control target
= control target key end

     0   :  { %s1588_s1 = inlined_call_operand.vmem [shape: bf16[640,128], index: 1, kind: input, shape index: {}]   ;;  %s1589_s2 = inlined_call_operand.vmem [shape: f32[1,128], index: 2, kind: input, shape index: {}]   ;;  %s1590_s0 = inlined_call_operand.vmem [shape: bf16[98,640], index: 0, kind: input, shape index: {}]   ;;  %s1591_s3 = inlined_call_operand.vmem [shape: f32[98,128], index: 3, kind: output, shape index: {}]  }
   0x1   :  { %v1113_v0 = vld [vmem:[%s1588_s1 + $0x38] sm:$0xff]  ;;  %v1112_v1 = vld [vmem:[%s1588_s1 + $0x30] sm:$0xff]  ;;  %v1111_v2 = vld [vmem:[%s1588_s1 + $0x28] sm:$0xff] }
   0x2   :  { %551 = vmatpush.bf16.msra.mxu0 %v1113_v0  ;;  %1146 = vmatpush.bf16.msra.mxu1 %v1113_v0  ;;  %v1110_v3 = vld [vmem:[%s1588_s1 + $0x20] sm:$0xff]  ;;  %v1109_v4 = vld [vmem:[%s1588_s1 + $0x18] sm:$0xff]  ;;  %v1108_v5 = vld [vmem:[%s1588_s1 + $0x10] sm:$0xff] }
   0x3   :  { %1147 = vmatpush.bf16.msra.mxu2 %v1113_v0  ;;  %1148 = vmatpush.bf16.msra.mxu3 %v1113_v0  ;;  %v1107_v6 = vld [vmem:[%s1588_s1 + $0x8] sm:$0xff]  ;;  %v1215_v7 = vld [vmem:[%s1590_s0 + $0xf0] sm:$0x11]  ;;  %v1106_v8 = vld [vmem:[%s1588_s1] sm:$0xff] }
   0x4   :  { %v798_v9 = vld [vmem:[%s1590_s0] sm:$0xf]  ;;  %v1078_v10 = vld [vmem:[%s1590_s0 + $0x10] sm:$0xf0]  ;;  %v838_v11 = vld [vmem:[%s1590_s0 + $0x50] sm:$0xf]  ;;  %v236_v15 = vunpack.c.l.b16 %v1215_v7 }
   0x5   :  { %v1088_v12 = vld [vmem:[%s1590_s0 + $0x60] sm:$0xf0]  ;;  %v878_v13 = vld [vmem:[%s1590_s0 + $0xa0] sm:$0xf]  ;;  %v1098_v14 = vld [vmem:[%s1590_s0 + $0xb0] sm:$0xf0]  ;;  %v799_v18 = vor.u32 %v1078_v10, %v798_v9 }
   0x6   :  { %552 = vmatpush.bf16.msra.mxu0 %v1112_v1  ;;  %1149 = vmatpush.bf16.msra.mxu1 %v1112_v1  ;;  %v1137_v16 = vld [vmem:[%s1588_s1 + $0xf8] sm:$0xff]  ;;  %v839_v19 = vor.u32 %v1088_v12, %v838_v11  ;;  %v879_v20 = vor.u32 %v1098_v14, %v878_v13  ;;  %v271_v23 = vpack.c.b16 %v236_v15, %v236_v15  ;;  %v1136_v24 = vld [vmem:[%s1588_s1 + $0xf0] sm:$0xff]  ;;  %v1135_v28 = vld [vmem:[%s1588_s1 + $0xe8] sm:$0xff] }
   0x7   :  { %1150 = vmatpush.bf16.msra.mxu2 %v1112_v1  ;;  %1151 = vmatpush.bf16.msra.mxu3 %v1112_v1  ;;  %v1129_v17 = vld [vmem:[%s1588_s1 + $0xb8] sm:$0xff]  ;;  %v1128_v25 = vld [vmem:[%s1588_s1 + $0xb0] sm:$0xff]  ;;  %v1127_v29 = vld [vmem:[%s1588_s1 + $0xa8] sm:$0xff] }
   0x8   :  { %v1121_v21 = vld [vmem:[%s1588_s1 + $0x78] sm:$0xff]  ;;  %v1120_v26 = vld [vmem:[%s1588_s1 + $0x70] sm:$0xff]  ;;  %v1119_v30 = vld [vmem:[%s1588_s1 + $0x68] sm:$0xff] }
   0x9   :  { %v1145_v22 = vld [vmem:[%s1588_s1 + $0x138] sm:$0xff]  ;;  %v1144_v27 = vld [vmem:[%s1588_s1 + $0x130] sm:$0xff]  ;;  %v1143_v31 = vld [vmem:[%s1588_s1 + $0x128] sm:$0xff] }
   0xa   :  { %553 = vmatpush.bf16.msra.mxu0 %v1111_v2  ;;  %1152 = vmatpush.bf16.msra.mxu1 %v1111_v2  ;;  %v1134_v32 = vld [vmem:[%s1588_s1 + $0xe0] sm:$0xff]  ;;  %v818_v35 = vld [vmem:[%s1590_s0 + $0x28] sm:$0xf]  ;;  %v1083_v36 = vld [vmem:[%s1590_s0 + $0x38] sm:$0xf0] }
   0xb   :  { %1153 = vmatpush.bf16.msra.mxu2 %v1111_v2  ;;  %1154 = vmatpush.bf16.msra.mxu3 %v1111_v2  ;;  %v1126_v33 = vld [vmem:[%s1588_s1 + $0xa0] sm:$0xff]  ;;  %v858_v37 = vld [vmem:[%s1590_s0 + $0x78] sm:$0xf]  ;;  %v1093_v38 = vld [vmem:[%s1590_s0 + $0x88] sm:$0xf0]  ;;  %v819_v44 = vor.u32 %v1083_v36, %v818_v35 }
   0xc   :  { %v1118_v34 = vld [vmem:[%s1588_s1 + $0x60] sm:$0xff]  ;;  %v898_v40 = vld [vmem:[%s1590_s0 + $0xc8] sm:$0xf]  ;;  %v1103_v41 = vld [vmem:[%s1590_s0 + $0xd8] sm:$0xf0]  ;;  %v859_v45 = vor.u32 %v1093_v38, %v858_v37 }
   0xd   :  { %v1142_v39 = vld [vmem:[%s1588_s1 + $0x120] sm:$0xff]  ;;  %v1133_v42 = vld [vmem:[%s1588_s1 + $0xd8] sm:$0xff]  ;;  %v899_v46 = vor.u32 %v1103_v41, %v898_v40  ;;  %v1132_v49 = vld [vmem:[%s1588_s1 + $0xd0] sm:$0xff] }
   0xe   :  { %554 = vmatpush.bf16.msra.mxu0 %v1110_v3  ;;  %1155 = vmatpush.bf16.msra.mxu1 %v1110_v3  ;;  %v1125_v43 = vld [vmem:[%s1588_s1 + $0x98] sm:$0xff]  ;;  %v1124_v50 = vld [vmem:[%s1588_s1 + $0x90] sm:$0xff]  ;;  %v1131_v53 = vld [vmem:[%s1588_s1 + $0xc8] sm:$0xff] }
   0xf   :  { %1156 = vmatpush.bf16.msra.mxu2 %v1110_v3  ;;  %1157 = vmatpush.bf16.msra.mxu3 %v1110_v3  ;;  %v1117_v47 = vld [vmem:[%s1588_s1 + $0x58] sm:$0xff]  ;;  %v1116_v51 = vld [vmem:[%s1588_s1 + $0x50] sm:$0xff]  ;;  %v1123_v54 = vld [vmem:[%s1588_s1 + $0x88] sm:$0xff] }
  0x10   :  { %v1141_v48 = vld [vmem:[%s1588_s1 + $0x118] sm:$0xff]  ;;  %v1140_v52 = vld [vmem:[%s1588_s1 + $0x110] sm:$0xff]  ;;  %v1115_v55 = vld [vmem:[%s1588_s1 + $0x48] sm:$0xff] }
  0x11   :  { %v1139_v56 = vld [vmem:[%s1588_s1 + $0x108] sm:$0xff]  ;;  %v1130_v57 = vld [vmem:[%s1588_s1 + $0xc0] sm:$0xff]  ;;  %v800_v0 = vld [vmem:[%s1590_s0 + $0x14] sm:$0xf0] }
  0x12   :  { %555 = vmatpush.bf16.msra.mxu0 %v1109_v4  ;;  %1158 = vmatpush.bf16.msra.mxu1 %v1109_v4  ;;  %v1122_v58 = vld [vmem:[%s1588_s1 + $0x80] sm:$0xff]  ;;  %v1077_v59 = vld [vmem:[%s1590_s0 + $0xc] sm:$0xf]  ;;  %v806_v1 = vld [vmem:[%s1590_s0 + $0x8] sm:$0xf] }
  0x13   :  { %1159 = vmatpush.bf16.msra.mxu2 %v1109_v4  ;;  %1160 = vmatpush.bf16.msra.mxu3 %v1109_v4  ;;  %v808_v60 = vld [vmem:[%s1590_s0 + $0x1c] sm:$0xf0]  ;;  %v1076_v63 = vld [vmem:[%s1590_s0 + $0x4] sm:$0xf]  ;;  %v1079_v3 = vld [vmem:[%s1590_s0 + $0x18] sm:$0xf0] }
  0x14   :  { %v1114_v61 = vld [vmem:[%s1588_s1 + $0x40] sm:$0xff]  ;;  %v811_v2 = vor.u32 %v1077_v59, %v808_v60  ;;  %v814_v4 = vld [vmem:[%s1590_s0 + $0x10] sm:$0xf]  ;;  %v1082_v10 = vld [vmem:[%s1590_s0 + $0x34] sm:$0xf] }
  0x15   :  { %v1138_v62 = vld [vmem:[%s1588_s1 + $0x100] sm:$0xff]  ;;  %v828_v11 = vld [vmem:[%s1590_s0 + $0x44] sm:$0xf0]  ;;  %v1081_v12 = vld [vmem:[%s1590_s0 + $0x2c] sm:$0xf] }
  0x16   :  { %556 = vmatpush.bf16.msra.mxu0 %v1108_v5  ;;  %1161 = vmatpush.bf16.msra.mxu1 %v1108_v5  ;;  %v820_v13 = vld [vmem:[%s1590_s0 + $0x3c] sm:$0xf0]  ;;  %v826_v14 = vld [vmem:[%s1590_s0 + $0x30] sm:$0xf]  ;;  %v831_v15 = vor.u32 %v1082_v10, %v828_v11  ;;  %v868_v35 = vld [vmem:[%s1590_s0 + $0x94] sm:$0xf0]  ;;  %v237_v10 = vunpack.c.h.b16 %v1215_v7 }
  0x17   :  { %1162 = vmatpush.bf16.msra.mxu2 %v1108_v5  ;;  %1163 = vmatpush.bf16.msra.mxu3 %v1108_v5  ;;  %v1080_v5 = vld [vmem:[%s1590_s0 + $0x20] sm:$0xf0]  ;;  %v1091_v36 = vld [vmem:[%s1590_s0 + $0x7c] sm:$0xf]  ;;  %v860_v37 = vld [vmem:[%s1590_s0 + $0x8c] sm:$0xf0] }
  0x18   :  { %v815_v9 = vor.u32 %v1080_v5, %v814_v4  ;;  %v866_v38 = vld [vmem:[%s1590_s0 + $0x80] sm:$0xf]  ;;  %v1094_v40 = vld [vmem:[%s1590_s0 + $0x90] sm:$0xf0]  ;;  %v874_v41 = vld [vmem:[%s1590_s0 + $0x88] sm:$0xf] }
  0x19   :  { %v908_v59 = vld [vmem:[%s1590_s0 + $0xe4] sm:$0xf0]  ;;  %v1101_v60 = vld [vmem:[%s1590_s0 + $0xcc] sm:$0xf] }
  0x1a   :  { %557 = vmatpush.bf16.msra.mxu0 %v1107_v6  ;;  %1164 = vmatpush.bf16.msra.mxu1 %v1107_v6 }
  0x1b   :  { %1165 = vmatpush.bf16.msra.mxu2 %v1107_v6  ;;  %1166 = vmatpush.bf16.msra.mxu3 %v1107_v6  ;;  %v803_v6 = vor.u32 %v1076_v63, %v800_v0  ;;  %v1104_v0 = vld [vmem:[%s1590_s0 + $0xe0] sm:$0xf0] }
  0x1e   :  { %558 = vmatpush.bf16.msra.mxu0 %v1106_v8  ;;  %1167 = vmatpush.bf16.msra.mxu1 %v1106_v8 }
  0x1f   :  { %1168 = vmatpush.bf16.msra.mxu2 %v1106_v8  ;;  %1169 = vmatpush.bf16.msra.mxu3 %v1106_v8  ;;  %v807_v8 = vor.u32 %v1079_v3, %v806_v1  ;;  %v914_v1 = vld [vmem:[%s1590_s0 + $0xd8] sm:$0xf] }
  0x21   :  { %559 = vmatmul.bf16.vlgmr.msra.gmra.mxu0 %v799_v18  ;;  %569 = vmatmul.bf16.vlgmr.msra.gmra.mxu1 %v839_v19  ;;  %v1085_v18 = vld [vmem:[%s1590_s0 + $0x48] sm:$0xf0]  ;;  %v823_v19 = vor.u32 %v1081_v12, %v820_v13 }
  0x22   :  { %579 = vmatmul.bf16.vlgmr.msra.gmra.mxu2 %v879_v20  ;;  %594 = vmatpush.bf16.msrb.mxu1 %v1121_v21 }
  0x23   :  { %680 = vmatpush.bf16.msrb.mxu3 %v1137_v16  ;;  %637 = vmatpush.bf16.msrb.mxu2 %v1129_v17  ;;  %v1084_v16 = vld [vmem:[%s1590_s0 + $0x40] sm:$0xf0]  ;;  %v834_v17 = vld [vmem:[%s1590_s0 + $0x38] sm:$0xf] }
  0x24   :  { %723 = vmatpush.bf16.msrb.mxu0 %v1145_v22  ;;  %589 = vmatmul.bf16.vlgmr.msra.gmra.mxu3 %v271_v23  ;;  %v827_v20 = vor.u32 %v1084_v16, %v826_v14  ;;  %v835_v21 = vor.u32 %v1085_v18, %v834_v17  ;;  %v1087_v22 = vld [vmem:[%s1590_s0 + $0x5c] sm:$0xf]  ;;  %v848_v23 = vld [vmem:[%s1590_s0 + $0x6c] sm:$0xf0]  ;;  %v272_v14 = vpack.c.b16 %v237_v10, %v237_v10 }
  0x26   :  { %595 = vmatpush.bf16.msrb.mxu1 %v1120_v26  ;;  %v846_v26 = vld [vmem:[%s1590_s0 + $0x58] sm:$0xf] }
  0x27   :  { %681 = vmatpush.bf16.msrb.mxu3 %v1136_v24  ;;  %638 = vmatpush.bf16.msrb.mxu2 %v1128_v25  ;;  %v1086_v24 = vld [vmem:[%s1590_s0 + $0x54] sm:$0xf]  ;;  %v840_v25 = vld [vmem:[%s1590_s0 + $0x64] sm:$0xf0] }
  0x28   :  { %724 = vmatpush.bf16.msrb.mxu0 %v1144_v27  ;;  %v851_v27 = vor.u32 %v1087_v22, %v848_v23 }
  0x2a   :  { %596 = vmatpush.bf16.msrb.mxu1 %v1119_v30  ;;  %v1090_v30 = vld [vmem:[%s1590_s0 + $0x70] sm:$0xf0] }
  0x2b   :  { %682 = vmatpush.bf16.msrb.mxu3 %v1135_v28  ;;  %639 = vmatpush.bf16.msrb.mxu2 %v1127_v29  ;;  %v1089_v28 = vld [vmem:[%s1590_s0 + $0x68] sm:$0xf0]  ;;  %v854_v29 = vld [vmem:[%s1590_s0 + $0x60] sm:$0xf] }
  0x2c   :  { %725 = vmatpush.bf16.msrb.mxu0 %v1143_v31  ;;  %v843_v31 = vor.u32 %v1086_v24, %v840_v25 }
  0x2e   :  { %597 = vmatpush.bf16.msrb.mxu1 %v1118_v34  ;;  %v1092_v34 = vld [vmem:[%s1590_s0 + $0x84] sm:$0xf] }
  0x2f   :  { %683 = vmatpush.bf16.msrb.mxu3 %v1134_v32  ;;  %640 = vmatpush.bf16.msrb.mxu2 %v1126_v33  ;;  %v847_v32 = vor.u32 %v1089_v28, %v846_v26  ;;  %v855_v33 = vor.u32 %v1090_v30, %v854_v29 }
  0x30   :  { %726 = vmatpush.bf16.msrb.mxu0 %v1142_v39  ;;  %v871_v39 = vor.u32 %v1092_v34, %v868_v35 }
  0x31   :  { %564 = vmatmul.bf16.gmra.mxu0 %v819_v44  ;;  %574 = vmatmul.bf16.gmra.mxu1 %v859_v45  ;;  %v867_v44 = vor.u32 %v1094_v40, %v866_v38 }
  0x32   :  { %584 = vmatmul.bf16.gmra.mxu2 %v899_v46  ;;  %598 = vmatpush.bf16.msrb.mxu1 %v1117_v47  ;;  %v1097_v46 = vld [vmem:[%s1590_s0 + $0xac] sm:$0xf]  ;;  %v888_v47 = vld [vmem:[%s1590_s0 + $0xbc] sm:$0xf0] }
  0x33   :  { %684 = vmatpush.bf16.msrb.mxu3 %v1133_v42  ;;  %641 = vmatpush.bf16.msrb.mxu2 %v1125_v43  ;;  %v1095_v42 = vld [vmem:[%s1590_s0 + $0x98] sm:$0xf0]  ;;  %v863_v43 = vor.u32 %v1091_v36, %v860_v37 }
  0x34   :  { %727 = vmatpush.bf16.msrb.mxu0 %v1141_v48  ;;  %v875_v45 = vor.u32 %v1095_v42, %v874_v41  ;;  %v1096_v48 = vld [vmem:[%s1590_s0 + $0xa4] sm:$0xf] }
  0x36   :  { %599 = vmatpush.bf16.msrb.mxu1 %v1116_v51  ;;  %v891_v51 = vor.u32 %v1097_v46, %v888_v47 }
  0x37   :  { %685 = vmatpush.bf16.msrb.mxu3 %v1132_v49  ;;  %642 = vmatpush.bf16.msrb.mxu2 %v1124_v50  ;;  %v880_v49 = vld [vmem:[%s1590_s0 + $0xb4] sm:$0xf0]  ;;  %v886_v50 = vld [vmem:[%s1590_s0 + $0xa8] sm:$0xf] }
  0x38   :  { %728 = vmatpush.bf16.msrb.mxu0 %v1140_v52  ;;  %v1099_v52 = vld [vmem:[%s1590_s0 + $0xb8] sm:$0xf0] }
  0x3a   :  { %600 = vmatpush.bf16.msrb.mxu1 %v1115_v55  ;;  %v883_v55 = vor.u32 %v1096_v48, %v880_v49 }
  0x3b   :  { %686 = vmatpush.bf16.msrb.mxu3 %v1131_v53  ;;  %643 = vmatpush.bf16.msrb.mxu2 %v1123_v54  ;;  %v894_v53 = vld [vmem:[%s1590_s0 + $0xb0] sm:$0xf]  ;;  %v1100_v54 = vld [vmem:[%s1590_s0 + $0xc0] sm:$0xf0] }
  0x3c   :  { %729 = vmatpush.bf16.msrb.mxu0 %v1139_v56  ;;  %v887_v56 = vor.u32 %v1099_v52, %v886_v50 }
  0x3e   :  { %601 = vmatpush.bf16.msrb.mxu1 %v1114_v61  ;;  %v900_v61 = vld [vmem:[%s1590_s0 + $0xdc] sm:$0xf0] }
  0x3f   :  { %687 = vmatpush.bf16.msrb.mxu3 %v1130_v57  ;;  %644 = vmatpush.bf16.msrb.mxu2 %v1122_v58  ;;  %v895_v57 = vor.u32 %v1100_v54, %v894_v53  ;;  %v1102_v58 = vld [vmem:[%s1590_s0 + $0xd4] sm:$0xf]  ;;  %v903_v3 = vor.u32 %v1101_v60, %v900_v61 }
  0x40   :  { %730 = vmatpush.bf16.msrb.mxu0 %v1138_v62  ;;  %v906_v62 = vld [vmem:[%s1590_s0 + $0xd0] sm:$0xf]  ;;  %v911_v63 = vor.u32 %v1102_v58, %v908_v59 }
  0x41   :  { %602 = vmatmul.bf16.vlgmr.msrb.gmra.mxu1 %v803_v6  ;;  %v907_v4 = vor.u32 %v1104_v0, %v906_v62  ;;  %v51_v6 = vld [vmem:[%s1590_s0 + $0xf8] sm:$0x11] }
  0x42   :  { %688 = vmatmul.bf16.vlgmr.msrb.gmra.mxu3 %v811_v2  ;;  %645 = vmatmul.bf16.vlgmr.msrb.gmra.mxu2 %v807_v8  ;;  %v1105_v2 = vld [vmem:[%s1590_s0 + $0xe8] sm:$0xf0]  ;;  %v239_v8 = vunpack.c.h.b16 %v51_v6  ;;  %v238_v11 = vunpack.c.l.b16 %v51_v6 }
  0x43   :  { %731 = vmatmul.bf16.vlgmr.msrb.gmra.mxu0 %v815_v9  ;;  %v915_v5 = vor.u32 %v1105_v2, %v914_v1  ;;  %v52_v9 = vld [vmem:[%s1590_s0 + $0x100] sm:$0x1] }
  0x44   :  { %v240_v12 = vunpack.c.l.b16 %v52_v9  ;;  %v274_v13 = vpack.c.b16 %v239_v8, %v239_v8  ;;  %v273_v17 = vpack.c.b16 %v238_v11, %v238_v11 }
  0x46   :  { %v275_v18 = vpack.c.b16 %v240_v12, %v240_v12 }
  0x51   :  { %607 = vmatmul.bf16.gmra.mxu1 %v823_v19  ;;  %v1509_v19 = vld [vmem:[%s1589_s2] ss:$0 sm:$0xff] }
  0x52   :  { %693 = vmatmul.bf16.gmra.mxu3 %v831_v15  ;;  %650 = vmatmul.bf16.gmra.mxu2 %v827_v20 }
  0x53   :  { %736 = vmatmul.bf16.gmra.mxu0 %v835_v21 }
  0x61   :  { %612 = vmatmul.bf16.gmra.mxu1 %v843_v31 }
  0x62   :  { %698 = vmatmul.bf16.gmra.mxu3 %v851_v27  ;;  %655 = vmatmul.bf16.gmra.mxu2 %v847_v32 }
  0x63   :  { %741 = vmatmul.bf16.gmra.mxu0 %v855_v33 }
  0x71   :  { %617 = vmatmul.bf16.gmra.mxu1 %v863_v43 }
  0x72   :  { %703 = vmatmul.bf16.gmra.mxu3 %v871_v39  ;;  %660 = vmatmul.bf16.gmra.mxu2 %v867_v44 }
  0x73   :  { %746 = vmatmul.bf16.gmra.mxu0 %v875_v45 }
  0x81   :  { %622 = vmatmul.bf16.gmra.mxu1 %v883_v55 }
  0x82   :  { %708 = vmatmul.bf16.gmra.mxu3 %v891_v51  ;;  %665 = vmatmul.bf16.gmra.mxu2 %v887_v56 }
  0x83   :  { %751 = vmatmul.bf16.gmra.mxu0 %v895_v57 }
  0x91   :  { %627 = vmatmul.bf16.gmra.mxu1 %v903_v3 }
  0x92   :  { %713 = vmatmul.bf16.gmra.mxu3 %v911_v63  ;;  %670 = vmatmul.bf16.gmra.mxu2 %v907_v4 }
  0x93   :  { %756 = vmatmul.bf16.gmra.mxu0 %v915_v5 }
  0x9e   :  { %v560_v15 = vpop.f32.mrf.mxu0  ;;  %v1504_v16 = vpop.f32.mrf.mxu1 }
  0x9f   :  { %v561_v38 = vadd.f32 %v1509_v19, %v560_v15 }
  0xa1   :  { %632 = vmatmul.bf16.gmra.mxu1 %v272_v14 }
  0xa2   :  { %718 = vmatmul.bf16.gmra.mxu3 %v274_v13  ;;  %675 = vmatmul.bf16.gmra.mxu2 %v273_v17  ;;  %v571_v13 = vadd.f32 %v1509_v19, %v1504_v16 }
  0xa3   :  { %761 = vmatmul.bf16.gmra.mxu0 %v275_v18 }
  0xa5   :  { %v580_v20 = vpop.f32.mrf.mxu2 }
  0xa6   :  { %v1512_v7 = vadd.f32 %v1509_v19, %v580_v20  ;;  %v562_v21 = vpop.f32.mrf.mxu0  ;;  %v1514_v22 = vpop.f32.mrf.mxu1 }
  0xa7   :  { %v590_v23 = vpop.f32.mrf.mxu3  ;;  %v563_v46 = vadd.f32 %v1509_v19, %v562_v21 }
  0xa8   :  { %v1517_v24 = vadd.f32 %v1509_v19, %v590_v23 }
  0xad   :  { %v582_v25 = vpop.f32.mrf.mxu2 }
  0xae   :  { %v1520_v26 = vadd.f32 %v1509_v19, %v582_v25  ;;  %v565_v27 = vpop.f32.mrf.mxu0  ;;  %v1522_v28 = vpop.f32.mrf.mxu1 }
  0xaf   :  { %v592_v29 = vpop.f32.mrf.mxu3  ;;  %v566_v56 = vadd.f32 %v1509_v19, %v565_v27 }
  0xb0   :  { %v573_v29 = vadd.f32 %v1509_v19, %v1514_v22 }
  0xb5   :  { %v585_v30 = vpop.f32.mrf.mxu2 }
  0xb6   :  { %v1525_v31 = vadd.f32 %v1509_v19, %v585_v30  ;;  %v567_v32 = vpop.f32.mrf.mxu0  ;;  %v1527_v33 = vpop.f32.mrf.mxu1 }
  0xb7   :  { %v568_v2 = vadd.f32 %v1509_v19, %v567_v32 }
  0xbd   :  { %v587_v34 = vpop.f32.mrf.mxu2 }
  0xbe   :  { %v1530_v35 = vadd.f32 %v1509_v19, %v587_v34  ;;  %v603_v36 = vpop.f32.mrf.mxu1 }
  0xbf   :  { %v604_v40 = vadd.f32 %v603_v36, %v561_v38 }
  0xc0   :  { %v732_v37 = vpop.f32.mrf.mxu0 }
  0xc5   :  { %v689_v39 = vpop.f32.mrf.mxu3  ;;  %v646_v41 = vpop.f32.mrf.mxu2 }
  0xc6   :  { %v647_v42 = vadd.f32 %v646_v41, %v604_v40  ;;  %v605_v43 = vpop.f32.mrf.mxu1  ;;  %v576_v41 = vadd.f32 %v1509_v19, %v1522_v28 }
  0xc7   :  { %v606_v50 = vadd.f32 %v605_v43, %v563_v46 }
  0xc8   :  { %v734_v44 = vpop.f32.mrf.mxu0  ;;  %v690_v45 = vadd.f32 %v689_v39, %v647_v42 }
  0xca   :  { %v733_v47 = vadd.f32 %v732_v37, %v690_v45 }
  0xcc   :  { %v766_v49 = vmax.f32 %v733_v47, 0.0 }
  0xcd   :  { %v691_v48 = vpop.f32.mrf.mxu3  ;;  %v648_v51 = vpop.f32.mrf.mxu2 }
  0xce   :  { %779 = vst [vmem:[%s1591_s3] sm:$0xff] %v766_v49  ;;  %v649_v52 = vadd.f32 %v648_v51, %v606_v50  ;;  %v608_v53 = vpop.f32.mrf.mxu1  ;;  %v578_v50 = vadd.f32 %v1509_v19, %v1527_v33 }
  0xcf   :  { %v609_v60 = vadd.f32 %v608_v53, %v566_v56 }
  0xd0   :  { %v737_v54 = vpop.f32.mrf.mxu0  ;;  %v692_v55 = vadd.f32 %v691_v48, %v649_v52 }
  0xd2   :  { %v735_v57 = vadd.f32 %v734_v44, %v692_v55 }
  0xd4   :  { %v767_v59 = vmax.f32 %v735_v57, 0.0 }
  0xd5   :  { %v694_v58 = vpop.f32.mrf.mxu3  ;;  %v651_v61 = vpop.f32.mrf.mxu2 }
  0xd6   :  { %780 = vst [vmem:[%s1591_s3 + $0x8] sm:$0xff] %v767_v59  ;;  %v652_v62 = vadd.f32 %v651_v61, %v609_v60  ;;  %v610_v63 = vpop.f32.mrf.mxu1 }
  0xd7   :  { %v611_v6 = vadd.f32 %v610_v63, %v568_v2 }
  0xd8   :  { %v739_v0 = vpop.f32.mrf.mxu0  ;;  %v695_v1 = vadd.f32 %v694_v58, %v652_v62 }
  0xda   :  { %v738_v3 = vadd.f32 %v737_v54, %v695_v1 }
  0xdc   :  { %v768_v5 = vmax.f32 %v738_v3, 0.0 }
  0xdd   :  { %v696_v4 = vpop.f32.mrf.mxu3  ;;  %v653_v8 = vpop.f32.mrf.mxu2 }
  0xde   :  { %781 = vst [vmem:[%s1591_s3 + $0x10] sm:$0xff] %v768_v5  ;;  %v654_v9 = vadd.f32 %v653_v8, %v611_v6  ;;  %v613_v10 = vpop.f32.mrf.mxu1 }
  0xdf   :  { %v614_v18 = vadd.f32 %v613_v10, %v571_v13 }
  0xe0   :  { %v742_v11 = vpop.f32.mrf.mxu0  ;;  %v697_v12 = vadd.f32 %v696_v4, %v654_v9 }
  0xe2   :  { %v740_v14 = vadd.f32 %v739_v0, %v697_v12 }
  0xe4   :  { %v769_v17 = vmax.f32 %v740_v14, 0.0 }
  0xe5   :  { %v699_v15 = vpop.f32.mrf.mxu3  ;;  %v656_v20 = vpop.f32.mrf.mxu2 }
  0xe6   :  { %782 = vst [vmem:[%s1591_s3 + $0x18] sm:$0xff] %v769_v17  ;;  %v657_v21 = vadd.f32 %v656_v20, %v614_v18  ;;  %v615_v23 = vpop.f32.mrf.mxu1 }
  0xe7   :  { %v616_v16 = vadd.f32 %v615_v23, %v573_v29 }
  0xe8   :  { %v744_v25 = vpop.f32.mrf.mxu0  ;;  %v700_v27 = vadd.f32 %v699_v15, %v657_v21 }
  0xea   :  { %v743_v30 = vadd.f32 %v742_v11, %v700_v27 }
  0xec   :  { %v770_v34 = vmax.f32 %v743_v30, 0.0 }
  0xed   :  { %v701_v32 = vpop.f32.mrf.mxu3  ;;  %v658_v36 = vpop.f32.mrf.mxu2 }
  0xee   :  { %783 = vst [vmem:[%s1591_s3 + $0x20] sm:$0xff] %v770_v34  ;;  %v659_v37 = vadd.f32 %v658_v36, %v616_v16  ;;  %v618_v38 = vpop.f32.mrf.mxu1 }
  0xef   :  { %v619_v22 = vadd.f32 %v618_v38, %v576_v41 }
  0xf0   :  { %v747_v39 = vpop.f32.mrf.mxu0  ;;  %v702_v40 = vadd.f32 %v701_v32, %v659_v37 }
  0xf2   :  { %v745_v42 = vadd.f32 %v744_v25, %v702_v40 }
  0xf4   :  { %v771_v44 = vmax.f32 %v745_v42, 0.0 }
  0xf5   :  { %v704_v43 = vpop.f32.mrf.mxu3  ;;  %v661_v45 = vpop.f32.mrf.mxu2 }
  0xf6   :  { %784 = vst [vmem:[%s1591_s3 + $0x28] sm:$0xff] %v771_v44  ;;  %v662_v46 = vadd.f32 %v661_v45, %v619_v22  ;;  %v620_v47 = vpop.f32.mrf.mxu1 }
  0xf7   :  { %v621_v28 = vadd.f32 %v620_v47, %v578_v50 }
  0xf8   :  { %v749_v48 = vpop.f32.mrf.mxu0  ;;  %v705_v49 = vadd.f32 %v704_v43, %v662_v46 }
  0xfa   :  { %v748_v51 = vadd.f32 %v747_v39, %v705_v49 }
  0xfc   :  { %v772_v53 = vmax.f32 %v748_v51, 0.0 }
  0xfd   :  { %v706_v52 = vpop.f32.mrf.mxu3  ;;  %v663_v54 = vpop.f32.mrf.mxu2 }
  0xfe   :  { %785 = vst [vmem:[%s1591_s3 + $0x30] sm:$0xff] %v772_v53  ;;  %v664_v55 = vadd.f32 %v663_v54, %v621_v28  ;;  %v623_v56 = vpop.f32.mrf.mxu1 }
  0xff   :  { %v624_v62 = vadd.f32 %v623_v56, %v1512_v7 }
 0x100   :  { %v752_v57 = vpop.f32.mrf.mxu0  ;;  %v707_v58 = vadd.f32 %v706_v52, %v664_v55 }
 0x102   :  { %v750_v59 = vadd.f32 %v749_v48, %v707_v58 }
 0x104   :  { %v773_v61 = vmax.f32 %v750_v59, 0.0 }
 0x105   :  { %v709_v60 = vpop.f32.mrf.mxu3  ;;  %v666_v63 = vpop.f32.mrf.mxu2 }
 0x106   :  { %786 = vst [vmem:[%s1591_s3 + $0x38] sm:$0xff] %v773_v61  ;;  %v667_v19 = vadd.f32 %v666_v63, %v624_v62  ;;  %v625_v33 = vpop.f32.mrf.mxu1 }
 0x107   :  { %v626_v5 = vadd.f32 %v625_v33, %v1520_v26 }
 0x108   :  { %v754_v0 = vpop.f32.mrf.mxu0  ;;  %v710_v1 = vadd.f32 %v709_v60, %v667_v19 }
 0x10a   :  { %v753_v2 = vadd.f32 %v752_v57, %v710_v1 }
 0x10c   :  { %v774_v4 = vmax.f32 %v753_v2, 0.0 }
 0x10d   :  { %v711_v3 = vpop.f32.mrf.mxu3  ;;  %v668_v6 = vpop.f32.mrf.mxu2 }
 0x10e   :  { %787 = vst [vmem:[%s1591_s3 + $0x40] sm:$0xff] %v774_v4  ;;  %v669_v7 = vadd.f32 %v668_v6, %v626_v5  ;;  %v628_v8 = vpop.f32.mrf.mxu1 }
 0x10f   :  { %v629_v14 = vadd.f32 %v628_v8, %v1525_v31 }
 0x110   :  { %v757_v9 = vpop.f32.mrf.mxu0  ;;  %v712_v10 = vadd.f32 %v711_v3, %v669_v7 }
 0x112   :  { %v755_v11 = vadd.f32 %v754_v0, %v712_v10 }
 0x114   :  { %v775_v13 = vmax.f32 %v755_v11, 0.0 }
 0x115   :  { %v714_v12 = vpop.f32.mrf.mxu3  ;;  %v671_v15 = vpop.f32.mrf.mxu2 }
 0x116   :  { %788 = vst [vmem:[%s1591_s3 + $0x48] sm:$0xff] %v775_v13  ;;  %v672_v26 = vadd.f32 %v671_v15, %v629_v14  ;;  %v630_v17 = vpop.f32.mrf.mxu1 }
 0x117   :  { %v631_v27 = vadd.f32 %v630_v17, %v1530_v35 }
 0x118   :  { %v759_v18 = vpop.f32.mrf.mxu0  ;;  %v715_v20 = vadd.f32 %v714_v12, %v672_v26 }
 0x11a   :  { %v758_v21 = vadd.f32 %v757_v9, %v715_v20 }
 0x11c   :  { %v776_v25 = vmax.f32 %v758_v21, 0.0 }
 0x11d   :  { %v716_v23 = vpop.f32.mrf.mxu3  ;;  %v673_v29 = vpop.f32.mrf.mxu2 }
 0x11e   :  { %789 = vst [vmem:[%s1591_s3 + $0x50] sm:$0xff] %v776_v25  ;;  %v674_v31 = vadd.f32 %v673_v29, %v631_v27  ;;  %v633_v30 = vpop.f32.mrf.mxu1 }
 0x11f   :  { %v634_v38 = vadd.f32 %v633_v30, %v1517_v24 }
 0x120   :  { %v762_v32 = vpop.f32.mrf.mxu0  ;;  %v717_v34 = vadd.f32 %v716_v23, %v674_v31 }
 0x122   :  { %v760_v16 = vadd.f32 %v759_v18, %v717_v34 }
 0x124   :  { %v777_v37 = vmax.f32 %v760_v16, 0.0 }
 0x125   :  { %v719_v36 = vpop.f32.mrf.mxu3  ;;  %v676_v39 = vpop.f32.mrf.mxu2 }
 0x126   :  { %790 = vst [vmem:[%s1591_s3 + $0x58] sm:$0xff] %v777_v37  ;;  %v677_v35 = vadd.f32 %v676_v39, %v634_v38  ;;  %v635_v40 = vpop.f32.mrf.mxu1 }
 0x128   :  { %v764_v41 = vpop.f32.mrf.mxu0  ;;  %v720_v42 = vadd.f32 %v719_v36, %v677_v35 }
 0x12a   :  { %v763_v43 = vadd.f32 %v762_v32, %v720_v42 }
 0x12c   :  { %v778_v22 = vmax.f32 %v763_v43, 0.0 }
 0x12d   :  { %v721_v44 = vpop.f32.mrf.mxu3  ;;  %v678_v45 = vpop.f32.mrf.mxu2 }
 0x12e   :  { %791 = vst [vmem:[%s1591_s3 + $0x60] sm:$0x3] %v778_v22 }

// kernel: cnn_forward.7
= control target key start
LH: loop header
LB: loop body
LE: loop exit
PB: predicated region body
PF: predicated region fallthrough
CT: control target
= control target key end

     0   :  { %s3870_s0 = inlined_call_operand.vmem [shape: bf16[2,3200], index: 0, kind: input, shape index: {}]   ;;  %s3871_s1 = inlined_call_operand.vmem [shape: bf16[3200,128], index: 1, kind: input, shape index: {}]   ;;  %s3872_s2 = inlined_call_operand.vmem [shape: f32[1,128], index: 2, kind: input, shape index: {}]   ;;  %s3873_s3 = inlined_call_operand.vmem [shape: bf16[128,128], index: 3, kind: input, shape index: {}]   ;;  %s3874_s4 = inlined_call_operand.vmem [shape: f32[1,128], index: 4, kind: input, shape index: {}]   ;;  %s3875_s5 = inlined_call_operand.hbm [shape: f32[2,128], index: 5, kind: output, shape index: {}]  }
   0x1   :  { %v2952_v0 = vld [vmem:[%s3871_s1 + $0x38] sm:$0xff]  ;;  %v2951_v4 = vld [vmem:[%s3871_s1 + $0x30] sm:$0xff]  ;;  %v2950_v8 = vld [vmem:[%s3871_s1 + $0x28] sm:$0xff] }
   0x2   :  { %v2968_v1 = vld [vmem:[%s3871_s1 + $0xb8] sm:$0xff]  ;;  %1687 = vmatpush.bf16.msra.mxu0 %v2952_v0  ;;  %v2967_v5 = vld [vmem:[%s3871_s1 + $0xb0] sm:$0xff]  ;;  %v2966_v9 = vld [vmem:[%s3871_s1 + $0xa8] sm:$0xff] }
   0x3   :  { %v2960_v2 = vld [vmem:[%s3871_s1 + $0x78] sm:$0xff]  ;;  %1713 = vmatpush.bf16.msra.mxu2 %v2968_v1  ;;  %v2959_v6 = vld [vmem:[%s3871_s1 + $0x70] sm:$0xff]  ;;  %v2958_v10 = vld [vmem:[%s3871_s1 + $0x68] sm:$0xff] }
   0x4   :  { %v2976_v3 = vld [vmem:[%s3871_s1 + $0xf8] sm:$0xff]  ;;  %1700 = vmatpush.bf16.msra.mxu1 %v2960_v2  ;;  %v2975_v7 = vld [vmem:[%s3871_s1 + $0xf0] sm:$0xff]  ;;  %v2974_v11 = vld [vmem:[%s3871_s1 + $0xe8] sm:$0xff] }
   0x5   :  { %1726 = vmatpush.bf16.msra.mxu3 %v2976_v3  ;;  %v2949_v12 = vld [vmem:[%s3871_s1 + $0x20] sm:$0xff]  ;;  %v2948_v16 = vld [vmem:[%s3871_s1 + $0x18] sm:$0xff]  ;;  %v2947_v21 = vld [vmem:[%s3871_s1 + $0x10] sm:$0xff] }
   0x6   :  { %1688 = vmatpush.bf16.msra.mxu0 %v2951_v4  ;;  %v2965_v13 = vld [vmem:[%s3871_s1 + $0xa0] sm:$0xff]  ;;  %v2964_v17 = vld [vmem:[%s3871_s1 + $0x98] sm:$0xff]  ;;  %v2963_v22 = vld [vmem:[%s3871_s1 + $0x90] sm:$0xff] }
   0x7   :  { %1714 = vmatpush.bf16.msra.mxu2 %v2967_v5  ;;  %v2957_v14 = vld [vmem:[%s3871_s1 + $0x60] sm:$0xff]  ;;  %v2956_v18 = vld [vmem:[%s3871_s1 + $0x58] sm:$0xff]  ;;  %v2955_v23 = vld [vmem:[%s3871_s1 + $0x50] sm:$0xff] }
   0x8   :  { %1701 = vmatpush.bf16.msra.mxu1 %v2959_v6  ;;  %v2973_v15 = vld [vmem:[%s3871_s1 + $0xe0] sm:$0xff]  ;;  %v2972_v19 = vld [vmem:[%s3871_s1 + $0xd8] sm:$0xff]  ;;  %v2971_v24 = vld [vmem:[%s3871_s1 + $0xd0] sm:$0xff] }
   0x9   :  { %1727 = vmatpush.bf16.msra.mxu3 %v2975_v7  ;;  %v21_v20 = vld [vmem:[%s3870_s0] sm:$0xff] }
   0xa   :  { %1689 = vmatpush.bf16.msra.mxu0 %v2950_v8  ;;  %430 = vst [vmem:[#allocation1] ss:$9 sm:$0xff] %v21_v20 }
   0xb   :  { %1715 = vmatpush.bf16.msra.mxu2 %v2966_v9 }
   0xc   :  { %1702 = vmatpush.bf16.msra.mxu1 %v2958_v10 }
   0xd   :  { %1728 = vmatpush.bf16.msra.mxu3 %v2974_v11 }
   0xe   :  { %1690 = vmatpush.bf16.msra.mxu0 %v2949_v12 }
   0xf   :  { %1716 = vmatpush.bf16.msra.mxu2 %v2965_v13 }
  0x10   :  { %1703 = vmatpush.bf16.msra.mxu1 %v2957_v14 }
  0x11   :  { %1729 = vmatpush.bf16.msra.mxu3 %v2973_v15 }
  0x12   :  { %1691 = vmatpush.bf16.msra.mxu0 %v2948_v16 }
  0x13   :  { %1717 = vmatpush.bf16.msra.mxu2 %v2964_v17 }
  0x14   :  { %1704 = vmatpush.bf16.msra.mxu1 %v2956_v18 }
  0x15   :  { %1730 = vmatpush.bf16.msra.mxu3 %v2972_v19 }
  0x16   :  { %10 = vsyncpa [#allocation3], 0  ;;  %1692 = vmatpush.bf16.msra.mxu0 %v2947_v21  ;;  %v2946_v25 = vld [vmem:[%s3871_s1 + $0x8] sm:$0xff]  ;;  %v2945_v29 = vld [vmem:[%s3871_s1] sm:$0xff]  ;;  %s3182_s14 = smov [#allocation2]   ;;  %s2104_s18 = sshll.u32 %s3875_s5, 4  ;;  %s2105_s18 = int_to_ptr.hbm [resolvable:$true] %s2104_s18 }
  0x17   :  { %1718 = vmatpush.bf16.msra.mxu2 %v2963_v22  ;;  %v2962_v26 = vld [vmem:[%s3871_s1 + $0x88] sm:$0xff]  ;;  %v2961_v30 = vld [vmem:[%s3871_s1 + $0x80] sm:$0xff]  ;;  %v2984_v31 = vld [vmem:[%s3871_s1 + $0x138] sm:$0xff]  ;;  %s2102_s15 = sshll.u32 %s3182_s14, 4  ;;  %s2103_s15 = int_to_ptr.vmem [resolvable:$true] %s2102_s15 }
  0x18   :  { %1705 = vmatpush.bf16.msra.mxu1 %v2955_v23  ;;  %v2954_v27 = vld [vmem:[%s3871_s1 + $0x48] sm:$0xff]  ;;  %v3000_v32 = vld [vmem:[%s3871_s1 + $0x1b8] sm:$0xff]  ;;  %v2953_v33 = vld [vmem:[%s3871_s1 + $0x40] sm:$0xff] }
  0x19   :  { %1731 = vmatpush.bf16.msra.mxu3 %v2971_v24  ;;  %v2970_v28 = vld [vmem:[%s3871_s1 + $0xc8] sm:$0xff]  ;;  %v2969_v34 = vld [vmem:[%s3871_s1 + $0xc0] sm:$0xff]  ;;  %v2992_v35 = vld [vmem:[%s3871_s1 + $0x178] sm:$0xff] }
  0x1a   :  { %1693 = vmatpush.bf16.msra.mxu0 %v2946_v25  ;;  %v3008_v36 = vld [vmem:[%s3871_s1 + $0x1f8] sm:$0xff]  ;;  %v2983_v37 = vld [vmem:[%s3871_s1 + $0x130] sm:$0xff]  ;;  %v431_v40 = vld [vmem:[#allocation1] sm:$0xff] }
  0x1b   :  { %1719 = vmatpush.bf16.msra.mxu2 %v2962_v26  ;;  %v2999_v38 = vld [vmem:[%s3871_s1 + $0x1b0] sm:$0xff]  ;;  %v434_v43 = vld [vmem:[#allocation1 + $0x1b] sm:$0xff]  ;;  %v2982_v45 = vld [vmem:[%s3871_s1 + $0x128] sm:$0xff] }
  0x1c   :  { %1706 = vmatpush.bf16.msra.mxu1 %v2954_v27  ;;  %v433_v39 = vld [vmem:[#allocation1 + $0x12] sm:$0xff]  ;;  %v432_v44 = vld [vmem:[#allocation1 + $0x9] sm:$0xff]  ;;  %v3346_v49 = vld [vmem:[#allocation1 + $0x3f] sm:$0xff] }
  0x1d   :  { %1732 = vmatpush.bf16.msra.mxu3 %v2970_v28  ;;  %v2991_v41 = vld [vmem:[%s3871_s1 + $0x170] sm:$0xff]  ;;  %v2998_v46 = vld [vmem:[%s3871_s1 + $0x1a8] sm:$0xff]  ;;  %v2981_v54 = vld [vmem:[%s3871_s1 + $0x120] sm:$0xff] }
  0x1e   :  { %1694 = vmatpush.bf16.msra.mxu0 %v2945_v29  ;;  %v3007_v42 = vld [vmem:[%s3871_s1 + $0x1f0] sm:$0xff]  ;;  %v3344_v48 = vld [vmem:[#allocation1 + $0x24] sm:$0xff]  ;;  %v2980_v58 = vld [vmem:[%s3871_s1 + $0x118] sm:$0xff] }
  0x1f   :  { %1720 = vmatpush.bf16.msra.mxu2 %v2961_v30  ;;  %v3342_v47 = vld [vmem:[#allocation1 + $0x36] sm:$0xff]  ;;  %v22_v50 = vld [vmem:[%s3870_s0 + $0x8] sm:$0xff]  ;;  %v2997_v55 = vld [vmem:[%s3871_s1 + $0x1a0] sm:$0xff] }
  0x20   :  { %1707 = vmatpush.bf16.msra.mxu1 %v2953_v33  ;;  %v3351_v51 = vld [vmem:[#allocation1 + $0x2d] sm:$0xff]  ;;  %v2989_v56 = vld [vmem:[%s3871_s1 + $0x160] sm:$0xff]  ;;  %v2996_v59 = vld [vmem:[%s3871_s1 + $0x198] sm:$0xff] }
  0x21   :  { %1733 = vmatpush.bf16.msra.mxu3 %v2969_v34  ;;  %1695 = vmatmul.bf16.vlgmr.msra.gmra.mxu0 %v431_v40  ;;  %v2990_v52 = vld [vmem:[%s3871_s1 + $0x168] sm:$0xff]  ;;  %440 = vst [vmem:[#allocation1] ss:$9 sm:$0xff] %v22_v50  ;;  %v3005_v57 = vld [vmem:[%s3871_s1 + $0x1e0] sm:$0xff]  ;;  %v2988_v60 = vld [vmem:[%s3871_s1 + $0x158] sm:$0xff] }
  0x22   :  { %1739 = vmatpush.bf16.msrb.mxu0 %v2984_v31  ;;  %1721 = vmatmul.bf16.vlgmr.msra.gmra.mxu2 %v433_v39  ;;  %v3006_v53 = vld [vmem:[%s3871_s1 + $0x1e8] sm:$0xff]  ;;  %v3004_v61 = vld [vmem:[%s3871_s1 + $0x1d8] sm:$0xff]  ;;  %v2979_v62 = vld [vmem:[%s3871_s1 + $0x110] sm:$0xff] }
  0x23   :  { %1765 = vmatpush.bf16.msrb.mxu2 %v3000_v32  ;;  %1708 = vmatmul.bf16.vlgmr.msra.gmra.mxu1 %v432_v44  ;;  %v2995_v63 = vld [vmem:[%s3871_s1 + $0x190] sm:$0xff]  ;;  %v2978_v2 = vld [vmem:[%s3871_s1 + $0x108] sm:$0xff]  ;;  %v2977_v6 = vld [vmem:[%s3871_s1 + $0x100] sm:$0xff] }
  0x24   :  { %1752 = vmatpush.bf16.msrb.mxu1 %v2992_v35  ;;  %1734 = vmatmul.bf16.vlgmr.msra.gmra.mxu3 %v434_v43  ;;  %v2987_v0 = vld [vmem:[%s3871_s1 + $0x150] sm:$0xff]  ;;  %v2994_v3 = vld [vmem:[%s3871_s1 + $0x188] sm:$0xff]  ;;  %v2993_v7 = vld [vmem:[%s3871_s1 + $0x180] sm:$0xff] }
  0x25   :  { %1778 = vmatpush.bf16.msrb.mxu3 %v3008_v36  ;;  %v3003_v1 = vld [vmem:[%s3871_s1 + $0x1d0] sm:$0xff]  ;;  %v2986_v4 = vld [vmem:[%s3871_s1 + $0x148] sm:$0xff]  ;;  %v3016_v8 = vld [vmem:[%s3871_s1 + $0x238] sm:$0xff] }
  0x26   :  { %1740 = vmatpush.bf16.msrb.mxu0 %v2983_v37  ;;  %v3002_v5 = vld [vmem:[%s3871_s1 + $0x1c8] sm:$0xff]  ;;  %v3032_v9 = vld [vmem:[%s3871_s1 + $0x2b8] sm:$0xff]  ;;  %v2985_v10 = vld [vmem:[%s3871_s1 + $0x140] sm:$0xff] }
  0x27   :  { %1766 = vmatpush.bf16.msrb.mxu2 %v2999_v38  ;;  %v3001_v11 = vld [vmem:[%s3871_s1 + $0x1c0] sm:$0xff]  ;;  %v3024_v12 = vld [vmem:[%s3871_s1 + $0x278] sm:$0xff]  ;;  %v3015_v14 = vld [vmem:[%s3871_s1 + $0x230] sm:$0xff] }
  0x28   :  { %1753 = vmatpush.bf16.msrb.mxu1 %v2991_v41  ;;  %v3040_v13 = vld [vmem:[%s3871_s1 + $0x2f8] sm:$0xff]  ;;  %v3031_v15 = vld [vmem:[%s3871_s1 + $0x2b0] sm:$0xff]  ;;  %v3014_v18 = vld [vmem:[%s3871_s1 + $0x228] sm:$0xff] }
  0x29   :  { %1779 = vmatpush.bf16.msrb.mxu3 %v3007_v42  ;;  %v3023_v16 = vld [vmem:[%s3871_s1 + $0x270] sm:$0xff]  ;;  %v3030_v19 = vld [vmem:[%s3871_s1 + $0x2a8] sm:$0xff]  ;;  %v3013_v22 = vld [vmem:[%s3871_s1 + $0x220] sm:$0xff] }
  0x2a   :  { %1741 = vmatpush.bf16.msrb.mxu0 %v2982_v45  ;;  %v3039_v17 = vld [vmem:[%s3871_s1 + $0x2f0] sm:$0xff]  ;;  %v3022_v20 = vld [vmem:[%s3871_s1 + $0x268] sm:$0xff]  ;;  %v3029_v23 = vld [vmem:[%s3871_s1 + $0x2a0] sm:$0xff] }
  0x2b   :  { %1767 = vmatpush.bf16.msrb.mxu2 %v2998_v46  ;;  %v3038_v21 = vld [vmem:[%s3871_s1 + $0x2e8] sm:$0xff]  ;;  %v3021_v24 = vld [vmem:[%s3871_s1 + $0x260] sm:$0xff]  ;;  %v3012_v26 = vld [vmem:[%s3871_s1 + $0x218] sm:$0xff] }
  0x2c   :  { %1754 = vmatpush.bf16.msrb.mxu1 %v2990_v52  ;;  %v3037_v25 = vld [vmem:[%s3871_s1 + $0x2e0] sm:$0xff]  ;;  %v3028_v27 = vld [vmem:[%s3871_s1 + $0x298] sm:$0xff]  ;;  %v3011_v30 = vld [vmem:[%s3871_s1 + $0x210] sm:$0xff] }
  0x2d   :  { %1780 = vmatpush.bf16.msrb.mxu3 %v3006_v53  ;;  %v3020_v28 = vld [vmem:[%s3871_s1 + $0x258] sm:$0xff]  ;;  %v3027_v31 = vld [vmem:[%s3871_s1 + $0x290] sm:$0xff]  ;;  %v3010_v34 = vld [vmem:[%s3871_s1 + $0x208] sm:$0xff] }
  0x2e   :  { %1742 = vmatpush.bf16.msrb.mxu0 %v2981_v54  ;;  %v3036_v29 = vld [vmem:[%s3871_s1 + $0x2d8] sm:$0xff]  ;;  %v3019_v32 = vld [vmem:[%s3871_s1 + $0x250] sm:$0xff]  ;;  %v3026_v35 = vld [vmem:[%s3871_s1 + $0x288] sm:$0xff] }
  0x2f   :  { %1768 = vmatpush.bf16.msrb.mxu2 %v2997_v55  ;;  %v3035_v33 = vld [vmem:[%s3871_s1 + $0x2d0] sm:$0xff]  ;;  %v3018_v36 = vld [vmem:[%s3871_s1 + $0x248] sm:$0xff]  ;;  %v3009_v38 = vld [vmem:[%s3871_s1 + $0x200] sm:$0xff] }
  0x30   :  { %1755 = vmatpush.bf16.msrb.mxu1 %v2989_v56  ;;  %v3034_v37 = vld [vmem:[%s3871_s1 + $0x2c8] sm:$0xff]  ;;  %v3025_v39 = vld [vmem:[%s3871_s1 + $0x280] sm:$0xff]  ;;  %v3048_v40 = vld [vmem:[%s3871_s1 + $0x338] sm:$0xff] }
  0x31   :  { %1781 = vmatpush.bf16.msrb.mxu3 %v3005_v57  ;;  %v3064_v41 = vld [vmem:[%s3871_s1 + $0x3b8] sm:$0xff]  ;;  %v3017_v42 = vld [vmem:[%s3871_s1 + $0x240] sm:$0xff]  ;;  %v3047_v50 = vld [vmem:[%s3871_s1 + $0x330] sm:$0xff] }
  0x32   :  { %1743 = vmatpush.bf16.msrb.mxu0 %v2980_v58  ;;  %v3033_v43 = vld [vmem:[%s3871_s1 + $0x2c0] sm:$0xff]  ;;  %v3056_v44 = vld [vmem:[%s3871_s1 + $0x378] sm:$0xff]  ;;  %v3055_v52 = vld [vmem:[%s3871_s1 + $0x370] sm:$0xff] }
  0x33   :  { %1769 = vmatpush.bf16.msrb.mxu2 %v2996_v59  ;;  %v441_v45 = vld [vmem:[#allocation1] sm:$0xff]  ;;  %v443_v46 = vld [vmem:[#allocation1 + $0x12] sm:$0xff]  ;;  %v3046_v54 = vld [vmem:[%s3871_s1 + $0x328] sm:$0xff] }
  0x34   :  { %1756 = vmatpush.bf16.msrb.mxu1 %v2988_v60  ;;  %v3071_v53 = vld [vmem:[%s3871_s1 + $0x3f0] sm:$0xff]  ;;  %v3062_v55 = vld [vmem:[%s3871_s1 + $0x3a8] sm:$0xff]  ;;  %v3045_v58 = vld [vmem:[%s3871_s1 + $0x320] sm:$0xff] }
  0x35   :  { %1782 = vmatpush.bf16.msrb.mxu3 %v3004_v61  ;;  %v3054_v56 = vld [vmem:[%s3871_s1 + $0x368] sm:$0xff]  ;;  %v3061_v59 = vld [vmem:[%s3871_s1 + $0x3a0] sm:$0xff] }
  0x36   :  { %1744 = vmatpush.bf16.msrb.mxu0 %v2979_v62  ;;  %v3070_v57 = vld [vmem:[%s3871_s1 + $0x3e8] sm:$0xff]  ;;  %v3053_v60 = vld [vmem:[%s3871_s1 + $0x360] sm:$0xff]  ;;  %v3044_v62 = vld [vmem:[%s3871_s1 + $0x318] sm:$0xff] }
  0x37   :  { %1770 = vmatpush.bf16.msrb.mxu2 %v2995_v63  ;;  %v3069_v61 = vld [vmem:[%s3871_s1 + $0x3e0] sm:$0xff]  ;;  %v3060_v63 = vld [vmem:[%s3871_s1 + $0x398] sm:$0xff] }
  0x38   :  { %1757 = vmatpush.bf16.msrb.mxu1 %v2987_v0  ;;  %v3052_v0 = vld [vmem:[%s3871_s1 + $0x358] sm:$0xff] }
  0x39   :  { %1783 = vmatpush.bf16.msrb.mxu3 %v3003_v1  ;;  %v3068_v1 = vld [vmem:[%s3871_s1 + $0x3d8] sm:$0xff] }
  0x3a   :  { %1745 = vmatpush.bf16.msrb.mxu0 %v2978_v2  ;;  %v3043_v2 = vld [vmem:[%s3871_s1 + $0x310] sm:$0xff] }
  0x3b   :  { %1771 = vmatpush.bf16.msrb.mxu2 %v2994_v3  ;;  %v3059_v3 = vld [vmem:[%s3871_s1 + $0x390] sm:$0xff] }
  0x3c   :  { %1758 = vmatpush.bf16.msrb.mxu1 %v2986_v4  ;;  %v3051_v4 = vld [vmem:[%s3871_s1 + $0x350] sm:$0xff] }
  0x3d   :  { %1784 = vmatpush.bf16.msrb.mxu3 %v3002_v5  ;;  %v3067_v5 = vld [vmem:[%s3871_s1 + $0x3d0] sm:$0xff] }
  0x3e   :  { %1746 = vmatpush.bf16.msrb.mxu0 %v2977_v6  ;;  %v3042_v6 = vld [vmem:[%s3871_s1 + $0x308] sm:$0xff] }
  0x3f   :  { %1772 = vmatpush.bf16.msrb.mxu2 %v2993_v7  ;;  %v3058_v7 = vld [vmem:[%s3871_s1 + $0x388] sm:$0xff] }
  0x40   :  { %1759 = vmatpush.bf16.msrb.mxu1 %v2985_v10  ;;  %v446_v10 = vld [vmem:[#allocation1 + $0x2d] sm:$0xff] }
  0x41   :  { %1785 = vmatpush.bf16.msrb.mxu3 %v3001_v11  ;;  %1747 = vmatmul.bf16.vlgmr.msrb.gmra.mxu0 %v3344_v48  ;;  %v442_v48 = vld [vmem:[#allocation1 + $0x9] sm:$0xff]  ;;  %v448_v11 = vld [vmem:[#allocation1 + $0x3f] sm:$0xff] }
  0x42   :  { %1791 = vmatpush.bf16.msra.mxu0 %v3016_v8  ;;  %1773 = vmatmul.bf16.vlgmr.msrb.gmra.mxu2 %v3342_v47  ;;  %v3072_v47 = vld [vmem:[%s3871_s1 + $0x3f8] sm:$0xff]  ;;  %v445_v8 = vld [vmem:[#allocation1 + $0x24] sm:$0xff] }
  0x43   :  { %1817 = vmatpush.bf16.msra.mxu2 %v3032_v9  ;;  %1760 = vmatmul.bf16.vlgmr.msrb.gmra.mxu1 %v3351_v51  ;;  %v3063_v51 = vld [vmem:[%s3871_s1 + $0x3b0] sm:$0xff] }
  0x44   :  { %1804 = vmatpush.bf16.msra.mxu1 %v3024_v12  ;;  %1786 = vmatmul.bf16.vlgmr.msrb.gmra.mxu3 %v3346_v49  ;;  %v444_v49 = vld [vmem:[#allocation1 + $0x1b] sm:$0xff]  ;;  %v23_v12 = vld [vmem:[%s3870_s0 + $0x10] sm:$0xff] }
  0x45   :  { %1830 = vmatpush.bf16.msra.mxu3 %v3040_v13  ;;  %v447_v9 = vld [vmem:[#allocation1 + $0x36] sm:$0xff]  ;;  %v3050_v13 = vld [vmem:[%s3871_s1 + $0x348] sm:$0xff] }
  0x46   :  { %1792 = vmatpush.bf16.msra.mxu0 %v3015_v14  ;;  %450 = vst [vmem:[#allocation1] ss:$9 sm:$0xff] %v23_v12  ;;  %v3066_v14 = vld [vmem:[%s3871_s1 + $0x3c8] sm:$0xff]  ;;  %v3124_v12 = vld [vmem:[%s3871_s1 + $0x598] sm:$0xff] }
  0x47   :  { %1818 = vmatpush.bf16.msra.mxu2 %v3031_v15  ;;  %v3041_v15 = vld [vmem:[%s3871_s1 + $0x300] sm:$0xff] }
  0x48   :  { %1805 = vmatpush.bf16.msra.mxu1 %v3023_v16  ;;  %v3057_v16 = vld [vmem:[%s3871_s1 + $0x380] sm:$0xff] }
  0x49   :  { %1831 = vmatpush.bf16.msra.mxu3 %v3039_v17  ;;  %v3080_v17 = vld [vmem:[%s3871_s1 + $0x438] sm:$0xff] }
  0x4a   :  { %1793 = vmatpush.bf16.msra.mxu0 %v3014_v18  ;;  %v3096_v18 = vld [vmem:[%s3871_s1 + $0x4b8] sm:$0xff] }
  0x4b   :  { %1819 = vmatpush.bf16.msra.mxu2 %v3030_v19  ;;  %v3049_v19 = vld [vmem:[%s3871_s1 + $0x340] sm:$0xff] }
  0x4c   :  { %1806 = vmatpush.bf16.msra.mxu1 %v3022_v20  ;;  %v3065_v20 = vld [vmem:[%s3871_s1 + $0x3c0] sm:$0xff] }
  0x4d   :  { %1832 = vmatpush.bf16.msra.mxu3 %v3038_v21  ;;  %v3088_v21 = vld [vmem:[%s3871_s1 + $0x478] sm:$0xff] }
  0x4e   :  { %1794 = vmatpush.bf16.msra.mxu0 %v3013_v22  ;;  %v3104_v22 = vld [vmem:[%s3871_s1 + $0x4f8] sm:$0xff] }
  0x4f   :  { %1820 = vmatpush.bf16.msra.mxu2 %v3029_v23  ;;  %v3079_v23 = vld [vmem:[%s3871_s1 + $0x430] sm:$0xff] }
  0x50   :  { %1807 = vmatpush.bf16.msra.mxu1 %v3021_v24  ;;  %v3095_v24 = vld [vmem:[%s3871_s1 + $0x4b0] sm:$0xff] }
  0x51   :  { %1833 = vmatpush.bf16.msra.mxu3 %v3037_v25  ;;  %v3087_v25 = vld [vmem:[%s3871_s1 + $0x470] sm:$0xff] }
  0x52   :  { %1795 = vmatpush.bf16.msra.mxu0 %v3012_v26  ;;  %v3103_v26 = vld [vmem:[%s3871_s1 + $0x4f0] sm:$0xff] }
  0x53   :  { %1821 = vmatpush.bf16.msra.mxu2 %v3028_v27  ;;  %v3078_v27 = vld [vmem:[%s3871_s1 + $0x428] sm:$0xff] }
  0x54   :  { %1808 = vmatpush.bf16.msra.mxu1 %v3020_v28  ;;  %v3094_v28 = vld [vmem:[%s3871_s1 + $0x4a8] sm:$0xff] }
  0x55   :  { %1834 = vmatpush.bf16.msra.mxu3 %v3036_v29  ;;  %v3086_v29 = vld [vmem:[%s3871_s1 + $0x468] sm:$0xff] }
  0x56   :  { %1796 = vmatpush.bf16.msra.mxu0 %v3011_v30  ;;  %v3102_v30 = vld [vmem:[%s3871_s1 + $0x4e8] sm:$0xff] }
  0x57   :  { %1822 = vmatpush.bf16.msra.mxu2 %v3027_v31  ;;  %v3077_v31 = vld [vmem:[%s3871_s1 + $0x420] sm:$0xff] }
  0x58   :  { %1809 = vmatpush.bf16.msra.mxu1 %v3019_v32  ;;  %v3093_v32 = vld [vmem:[%s3871_s1 + $0x4a0] sm:$0xff] }
  0x59   :  { %1835 = vmatpush.bf16.msra.mxu3 %v3035_v33  ;;  %v3085_v33 = vld [vmem:[%s3871_s1 + $0x460] sm:$0xff] }
  0x5a   :  { %1797 = vmatpush.bf16.msra.mxu0 %v3010_v34  ;;  %v3101_v34 = vld [vmem:[%s3871_s1 + $0x4e0] sm:$0xff] }
  0x5b   :  { %1823 = vmatpush.bf16.msra.mxu2 %v3026_v35  ;;  %v3076_v35 = vld [vmem:[%s3871_s1 + $0x418] sm:$0xff] }
  0x5c   :  { %1810 = vmatpush.bf16.msra.mxu1 %v3018_v36  ;;  %v3092_v36 = vld [vmem:[%s3871_s1 + $0x498] sm:$0xff] }
  0x5d   :  { %1836 = vmatpush.bf16.msra.mxu3 %v3034_v37  ;;  %v3084_v37 = vld [vmem:[%s3871_s1 + $0x458] sm:$0xff] }
  0x5e   :  { %1798 = vmatpush.bf16.msra.mxu0 %v3009_v38  ;;  %v3100_v38 = vld [vmem:[%s3871_s1 + $0x4d8] sm:$0xff] }
  0x5f   :  { %1824 = vmatpush.bf16.msra.mxu2 %v3025_v39  ;;  %v3075_v39 = vld [vmem:[%s3871_s1 + $0x410] sm:$0xff] }
  0x60   :  { %1811 = vmatpush.bf16.msra.mxu1 %v3017_v42  ;;  %v3099_v42 = vld [vmem:[%s3871_s1 + $0x4d0] sm:$0xff] }
  0x61   :  { %1837 = vmatpush.bf16.msra.mxu3 %v3033_v43  ;;  %1799 = vmatmul.bf16.vlgmr.msra.gmra.mxu0 %v441_v45  ;;  %v3074_v43 = vld [vmem:[%s3871_s1 + $0x408] sm:$0xff] }
  0x62   :  { %1843 = vmatpush.bf16.msrb.mxu0 %v3048_v40  ;;  %1825 = vmatmul.bf16.vlgmr.msra.gmra.mxu2 %v443_v46  ;;  %v3091_v40 = vld [vmem:[%s3871_s1 + $0x490] sm:$0xff]  ;;  %v3082_v45 = vld [vmem:[%s3871_s1 + $0x448] sm:$0xff] }
  0x63   :  { %1869 = vmatpush.bf16.msrb.mxu2 %v3064_v41  ;;  %1812 = vmatmul.bf16.vlgmr.msra.gmra.mxu1 %v442_v48  ;;  %v3083_v41 = vld [vmem:[%s3871_s1 + $0x450] sm:$0xff]  ;;  %v3098_v46 = vld [vmem:[%s3871_s1 + $0x4c8] sm:$0xff]  ;;  %v3089_v48 = vld [vmem:[%s3871_s1 + $0x480] sm:$0xff] }
  0x64   :  { %1856 = vmatpush.bf16.msrb.mxu1 %v3056_v44  ;;  %1838 = vmatmul.bf16.vlgmr.msra.gmra.mxu3 %v444_v49  ;;  %v3090_v44 = vld [vmem:[%s3871_s1 + $0x488] sm:$0xff]  ;;  %v3112_v49 = vld [vmem:[%s3871_s1 + $0x538] sm:$0xff] }
  0x65   :  { %1882 = vmatpush.bf16.msrb.mxu3 %v3072_v47  ;;  %v3073_v47 = vld [vmem:[%s3871_s1 + $0x400] sm:$0xff] }
  0x66   :  { %1844 = vmatpush.bf16.msrb.mxu0 %v3047_v50  ;;  %v3128_v50 = vld [vmem:[%s3871_s1 + $0x5b8] sm:$0xff] }
  0x67   :  { %1870 = vmatpush.bf16.msrb.mxu2 %v3063_v51  ;;  %v3081_v51 = vld [vmem:[%s3871_s1 + $0x440] sm:$0xff] }
  0x68   :  { %1857 = vmatpush.bf16.msrb.mxu1 %v3055_v52  ;;  %v3097_v52 = vld [vmem:[%s3871_s1 + $0x4c0] sm:$0xff] }
  0x69   :  { %1883 = vmatpush.bf16.msrb.mxu3 %v3071_v53  ;;  %v3120_v53 = vld [vmem:[%s3871_s1 + $0x578] sm:$0xff] }
  0x6a   :  { %1845 = vmatpush.bf16.msrb.mxu0 %v3046_v54  ;;  %v451_v54 = vld [vmem:[#allocation1] sm:$0xff] }
  0x6b   :  { %1871 = vmatpush.bf16.msrb.mxu2 %v3062_v55  ;;  %v453_v55 = vld [vmem:[#allocation1 + $0x12] sm:$0xff] }
  0x6c   :  { %1858 = vmatpush.bf16.msrb.mxu1 %v3054_v56  ;;  %v3136_v56 = vld [vmem:[%s3871_s1 + $0x5f8] sm:$0xff] }
  0x6d   :  { %1884 = vmatpush.bf16.msrb.mxu3 %v3070_v57  ;;  %v452_v57 = vld [vmem:[#allocation1 + $0x9] sm:$0xff] }
  0x6e   :  { %1846 = vmatpush.bf16.msrb.mxu0 %v3045_v58  ;;  %v454_v58 = vld [vmem:[#allocation1 + $0x1b] sm:$0xff] }
  0x6f   :  { %1872 = vmatpush.bf16.msrb.mxu2 %v3061_v59  ;;  %v3111_v59 = vld [vmem:[%s3871_s1 + $0x530] sm:$0xff] }
  0x70   :  { %1859 = vmatpush.bf16.msrb.mxu1 %v3053_v60  ;;  %v3127_v60 = vld [vmem:[%s3871_s1 + $0x5b0] sm:$0xff] }
  0x71   :  { %1885 = vmatpush.bf16.msrb.mxu3 %v3069_v61  ;;  %v3119_v61 = vld [vmem:[%s3871_s1 + $0x570] sm:$0xff] }
  0x72   :  { %1847 = vmatpush.bf16.msrb.mxu0 %v3044_v62  ;;  %v3135_v62 = vld [vmem:[%s3871_s1 + $0x5f0] sm:$0xff] }
  0x73   :  { %1873 = vmatpush.bf16.msrb.mxu2 %v3060_v63  ;;  %v3110_v63 = vld [vmem:[%s3871_s1 + $0x528] sm:$0xff] }
  0x74   :  { %1860 = vmatpush.bf16.msrb.mxu1 %v3052_v0  ;;  %v3126_v0 = vld [vmem:[%s3871_s1 + $0x5a8] sm:$0xff] }
  0x75   :  { %1886 = vmatpush.bf16.msrb.mxu3 %v3068_v1  ;;  %v3118_v1 = vld [vmem:[%s3871_s1 + $0x568] sm:$0xff] }
  0x76   :  { %1848 = vmatpush.bf16.msrb.mxu0 %v3043_v2  ;;  %v3134_v2 = vld [vmem:[%s3871_s1 + $0x5e8] sm:$0xff] }
  0x77   :  { %1874 = vmatpush.bf16.msrb.mxu2 %v3059_v3  ;;  %v3154_v3 = vld [vmem:[%s3872_s2] ss:$0 sm:$0xff] }
  0x78   :  { %1861 = vmatpush.bf16.msrb.mxu1 %v3051_v4  ;;  %v3109_v4 = vld [vmem:[%s3871_s1 + $0x520] sm:$0xff] }
  0x79   :  { %1887 = vmatpush.bf16.msrb.mxu3 %v3067_v5  ;;  %v3125_v5 = vld [vmem:[%s3871_s1 + $0x5a0] sm:$0xff] }
  0x7a   :  { %1849 = vmatpush.bf16.msrb.mxu0 %v3042_v6 }
  0x7b   :  { %1875 = vmatpush.bf16.msrb.mxu2 %v3058_v7  ;;  %v3117_v7 = vld [vmem:[%s3871_s1 + $0x560] sm:$0xff] }
  0x7c   :  { %1862 = vmatpush.bf16.msrb.mxu1 %v3050_v13 }
  0x7d   :  { %1888 = vmatpush.bf16.msrb.mxu3 %v3066_v14  ;;  %v3116_v14 = vld [vmem:[%s3871_s1 + $0x558] sm:$0xff] }
  0x7e   :  { %1850 = vmatpush.bf16.msrb.mxu0 %v3041_v15  ;;  %v3132_v15 = vld [vmem:[%s3871_s1 + $0x5d8] sm:$0xff] }
  0x7f   :  { %1876 = vmatpush.bf16.msrb.mxu2 %v3057_v16 }
  0x80   :  { %1863 = vmatpush.bf16.msrb.mxu1 %v3049_v19 }
  0x81   :  { %1889 = vmatpush.bf16.msrb.mxu3 %v3065_v20  ;;  %1851 = vmatmul.bf16.vlgmr.msrb.gmra.mxu0 %v445_v8  ;;  %v3133_v8 = vld [vmem:[%s3871_s1 + $0x5e0] sm:$0xff] }
  0x82   :  { %1895 = vmatpush.bf16.msra.mxu0 %v3080_v17  ;;  %1877 = vmatmul.bf16.vlgmr.msrb.gmra.mxu2 %v447_v9  ;;  %v3107_v17 = vld [vmem:[%s3871_s1 + $0x510] sm:$0xff] }
  0x83   :  { %1921 = vmatpush.bf16.msra.mxu2 %v3096_v18  ;;  %1864 = vmatmul.bf16.vlgmr.msrb.gmra.mxu1 %v446_v10  ;;  %v3123_v18 = vld [vmem:[%s3871_s1 + $0x590] sm:$0xff] }
  0x84   :  { %1908 = vmatpush.bf16.msra.mxu1 %v3088_v21  ;;  %1890 = vmatmul.bf16.vlgmr.msrb.gmra.mxu3 %v448_v11  ;;  %v3108_v11 = vld [vmem:[%s3871_s1 + $0x518] sm:$0xff] }
  0x85   :  { %1934 = vmatpush.bf16.msra.mxu3 %v3104_v22  ;;  %v3115_v22 = vld [vmem:[%s3871_s1 + $0x550] sm:$0xff] }
  0x86   :  { %1896 = vmatpush.bf16.msra.mxu0 %v3079_v23  ;;  %v3131_v23 = vld [vmem:[%s3871_s1 + $0x5d0] sm:$0xff] }
  0x87   :  { %1922 = vmatpush.bf16.msra.mxu2 %v3095_v24  ;;  %v3106_v24 = vld [vmem:[%s3871_s1 + $0x508] sm:$0xff] }
  0x88   :  { %1909 = vmatpush.bf16.msra.mxu1 %v3087_v25 }
  0x89   :  { %1935 = vmatpush.bf16.msra.mxu3 %v3103_v26  ;;  %v3122_v26 = vld [vmem:[%s3871_s1 + $0x588] sm:$0xff] }
  0x8a   :  { %1897 = vmatpush.bf16.msra.mxu0 %v3078_v27  ;;  %v455_v27 = vld [vmem:[#allocation1 + $0x24] sm:$0xff] }
  0x8b   :  { %1923 = vmatpush.bf16.msra.mxu2 %v3094_v28  ;;  %v457_v28 = vld [vmem:[#allocation1 + $0x36] sm:$0xff] }
  0x8c   :  { %1910 = vmatpush.bf16.msra.mxu1 %v3086_v29 }
  0x8d   :  { %1936 = vmatpush.bf16.msra.mxu3 %v3102_v30  ;;  %v456_v30 = vld [vmem:[#allocation1 + $0x2d] sm:$0xff] }
  0x8e   :  { %1898 = vmatpush.bf16.msra.mxu0 %v3077_v31  ;;  %v458_v31 = vld [vmem:[#allocation1 + $0x3f] sm:$0xff] }
  0x8f   :  { %1924 = vmatpush.bf16.msra.mxu2 %v3093_v32  ;;  %v24_v32 = vld [vmem:[%s3870_s0 + $0x18] sm:$0x1] }
  0x90   :  { %1911 = vmatpush.bf16.msra.mxu1 %v3085_v33  ;;  %460 = vst [vmem:[#allocation1] ss:$9 sm:$0xff] %v24_v32  ;;  %v3114_v33 = vld [vmem:[%s3871_s1 + $0x548] sm:$0xff] }
  0x91   :  { %1937 = vmatpush.bf16.msra.mxu3 %v3101_v34  ;;  %v3130_v34 = vld [vmem:[%s3871_s1 + $0x5c8] sm:$0xff] }
  0x92   :  { %1899 = vmatpush.bf16.msra.mxu0 %v3076_v35 }
  0x93   :  { %1925 = vmatpush.bf16.msra.mxu2 %v3092_v36  ;;  %v3105_v36 = vld [vmem:[%s3871_s1 + $0x500] sm:$0xff] }
  0x94   :  { %1912 = vmatpush.bf16.msra.mxu1 %v3084_v37  ;;  %v3121_v37 = vld [vmem:[%s3871_s1 + $0x580] sm:$0xff] }
  0x95   :  { %1938 = vmatpush.bf16.msra.mxu3 %v3100_v38  ;;  %v3144_v38 = vld [vmem:[%s3871_s1 + $0x638] sm:$0xff] }
  0x96   :  { %1900 = vmatpush.bf16.msra.mxu0 %v3075_v39 }
  0x97   :  { %1926 = vmatpush.bf16.msra.mxu2 %v3091_v40  ;;  %v3113_v40 = vld [vmem:[%s3871_s1 + $0x540] sm:$0xff] }
  0x98   :  { %1913 = vmatpush.bf16.msra.mxu1 %v3083_v41  ;;  %v3129_v41 = vld [vmem:[%s3871_s1 + $0x5c0] sm:$0xff] }
  0x99   :  { %1939 = vmatpush.bf16.msra.mxu3 %v3099_v42  ;;  %v3143_v42 = vld [vmem:[%s3871_s1 + $0x630] sm:$0xff] }
  0x9a   :  { %1901 = vmatpush.bf16.msra.mxu0 %v3074_v43  ;;  %v3142_v43 = vld [vmem:[%s3871_s1 + $0x628] sm:$0xff] }
  0x9b   :  { %1927 = vmatpush.bf16.msra.mxu2 %v3090_v44  ;;  %v3141_v44 = vld [vmem:[%s3871_s1 + $0x620] sm:$0xff] }
  0x9c   :  { %1914 = vmatpush.bf16.msra.mxu1 %v3082_v45 }
  0x9d   :  { %1940 = vmatpush.bf16.msra.mxu3 %v3098_v46 }
  0x9e   :  { %1902 = vmatpush.bf16.msra.mxu0 %v3073_v47  ;;  %v1696_v6 = vpop.f32.mrf.mxu0 }
  0x9f   :  { %1928 = vmatpush.bf16.msra.mxu2 %v3089_v48  ;;  %v1697_v9 = vadd.f32 %v3154_v3, %v1696_v6 }
  0xa0   :  { %1915 = vmatpush.bf16.msra.mxu1 %v3081_v51  ;;  %v1709_v10 = vpop.f32.mrf.mxu1 }
  0xa1   :  { %1941 = vmatpush.bf16.msra.mxu3 %v3097_v52  ;;  %1903 = vmatmul.bf16.vlgmr.msra.gmra.mxu0 %v451_v54  ;;  %v1710_v13 = vadd.f32 %v1709_v10, %v1697_v9  ;;  %v3139_v52 = vld [vmem:[%s3871_s1 + $0x610] sm:$0xff] }
  0xa2   :  { %1947 = vmatpush.bf16.msrb.mxu0 %v3112_v49  ;;  %1929 = vmatmul.bf16.vlgmr.msra.gmra.mxu2 %v453_v55  ;;  %v3140_v49 = vld [vmem:[%s3871_s1 + $0x618] sm:$0xff] }
  0xa3   :  { %1973 = vmatpush.bf16.msrb.mxu2 %v3128_v50  ;;  %1916 = vmatmul.bf16.vlgmr.msra.gmra.mxu1 %v452_v57  ;;  %v3138_v57 = vld [vmem:[%s3871_s1 + $0x608] sm:$0xff] }
  0xa4   :  { %1960 = vmatpush.bf16.msrb.mxu1 %v3120_v53  ;;  %1942 = vmatmul.bf16.vlgmr.msra.gmra.mxu3 %v454_v58 }
  0xa5   :  { %1986 = vmatpush.bf16.msrb.mxu3 %v3136_v56  ;;  %v1722_v16 = vpop.f32.mrf.mxu2 }
  0xa6   :  { %1948 = vmatpush.bf16.msrb.mxu0 %v3111_v59  ;;  %v1723_v19 = vadd.f32 %v1722_v16, %v1710_v13  ;;  %v1698_v21 = vpop.f32.mrf.mxu0  ;;  %v3137_v59 = vld [vmem:[%s3871_s1 + $0x600] sm:$0xff] }
  0xa7   :  { %1974 = vmatpush.bf16.msrb.mxu2 %v3127_v60  ;;  %v1735_v20 = vpop.f32.mrf.mxu3 }
  0xa8   :  { %1961 = vmatpush.bf16.msrb.mxu1 %v3119_v61  ;;  %v1736_v25 = vadd.f32 %v1735_v20, %v1723_v19  ;;  %v1711_v29 = vpop.f32.mrf.mxu1  ;;  %v461_v61 = vld [vmem:[#allocation1] sm:$0xff] }
  0xa9   :  { %1987 = vmatpush.bf16.msrb.mxu3 %v3135_v62  ;;  %v3150_v29 = vld [vmem:[%s3873_s3 + $0x28] sm:$0xff] }
  0xaa   :  { %1949 = vmatpush.bf16.msrb.mxu0 %v3110_v63 }
  0xab   :  { %1975 = vmatpush.bf16.msrb.mxu2 %v3126_v0 }
  0xac   :  { %1962 = vmatpush.bf16.msrb.mxu1 %v3118_v1 }
  0xad   :  { %1988 = vmatpush.bf16.msrb.mxu3 %v3134_v2  ;;  %v1724_v35 = vpop.f32.mrf.mxu2 }
  0xae   :  { %1950 = vmatpush.bf16.msrb.mxu0 %v3109_v4  ;;  %v3147_v35 = vld [vmem:[%s3873_s3 + $0x10] sm:$0xff] }
  0xaf   :  { %1976 = vmatpush.bf16.msrb.mxu2 %v3125_v5  ;;  %v1737_v39 = vpop.f32.mrf.mxu3 }
  0xb0   :  { %1963 = vmatpush.bf16.msrb.mxu1 %v3117_v7 }
  0xb1   :  { %1989 = vmatpush.bf16.msrb.mxu3 %v3133_v8 }
  0xb2   :  { %1951 = vmatpush.bf16.msrb.mxu0 %v3108_v11 }
  0xb3   :  { %1977 = vmatpush.bf16.msrb.mxu2 %v3124_v12 }
  0xb4   :  { %1964 = vmatpush.bf16.msrb.mxu1 %v3116_v14 }
  0xb5   :  { %1990 = vmatpush.bf16.msrb.mxu3 %v3132_v15 }
  0xb6   :  { %1952 = vmatpush.bf16.msrb.mxu0 %v3107_v17 }
  0xb7   :  { %1978 = vmatpush.bf16.msrb.mxu2 %v3123_v18 }
  0xb8   :  { %1965 = vmatpush.bf16.msrb.mxu1 %v3115_v22 }
  0xb9   :  { %1991 = vmatpush.bf16.msrb.mxu3 %v3131_v23  ;;  %v3152_v23 = vld [vmem:[%s3873_s3 + $0x38] sm:$0xff] }
  0xba   :  { %1953 = vmatpush.bf16.msrb.mxu0 %v3106_v24 }
  0xbb   :  { %1979 = vmatpush.bf16.msrb.mxu2 %v3122_v26  ;;  %v3151_v26 = vld [vmem:[%s3873_s3 + $0x30] sm:$0xff] }
  0xbc   :  { %1966 = vmatpush.bf16.msrb.mxu1 %v3114_v33 }
  0xbd   :  { %1992 = vmatpush.bf16.msrb.mxu3 %v3130_v34  ;;  %v3148_v34 = vld [vmem:[%s3873_s3 + $0x18] sm:$0xff] }
  0xbe   :  { %1954 = vmatpush.bf16.msrb.mxu0 %v3105_v36  ;;  %v1748_v45 = vpop.f32.mrf.mxu0  ;;  %v3146_v36 = vld [vmem:[%s3873_s3 + $0x8] sm:$0xff] }
  0xbf   :  { %1980 = vmatpush.bf16.msrb.mxu2 %v3121_v37  ;;  %v1749_v46 = vadd.f32 %v1748_v45, %v1736_v25 }
  0xc0   :  { %1967 = vmatpush.bf16.msrb.mxu1 %v3113_v40  ;;  %v1761_v47 = vpop.f32.mrf.mxu1 }
  0xc1   :  { %1993 = vmatpush.bf16.msrb.mxu3 %v3129_v41  ;;  %1955 = vmatmul.bf16.vlgmr.msrb.gmra.mxu0 %v455_v27  ;;  %v1762_v48 = vadd.f32 %v1761_v47, %v1749_v46 }
  0xc2   :  { %1999 = vmatpush.bf16.msra.mxu0 %v3144_v38  ;;  %1981 = vmatmul.bf16.vlgmr.msrb.gmra.mxu2 %v457_v28  ;;  %v3145_v38 = vld [vmem:[%s3873_s3] sm:$0xff] }
  0xc3   :  { %1968 = vmatmul.bf16.vlgmr.msrb.gmra.mxu1 %v456_v30 }
  0xc4   :  { %1994 = vmatmul.bf16.vlgmr.msrb.gmra.mxu3 %v458_v31  ;;  %2082 = vmatpush.bf16.msra.mxu1 %v3152_v23  ;;  %v3149_v31 = vld [vmem:[%s3873_s3 + $0x20] sm:$0xff] }
  0xc5   :  { %v1774_v50 = vpop.f32.mrf.mxu2 }
  0xc6   :  { %2000 = vmatpush.bf16.msra.mxu0 %v3143_v42  ;;  %v1775_v51 = vadd.f32 %v1774_v50, %v1762_v48  ;;  %v1750_v54 = vpop.f32.mrf.mxu0 }
  0xc7   :  { %v1787_v53 = vpop.f32.mrf.mxu3 }
  0xc8   :  { %v1788_v55 = vadd.f32 %v1787_v53, %v1775_v51  ;;  %v1763_v56 = vpop.f32.mrf.mxu1  ;;  %2083 = vmatpush.bf16.msra.mxu1 %v3151_v26 }
  0xca   :  { %2001 = vmatpush.bf16.msra.mxu0 %v3142_v43 }
  0xcc   :  { %2084 = vmatpush.bf16.msra.mxu1 %v3150_v29 }
  0xcd   :  { %v1776_v58 = vpop.f32.mrf.mxu2 }
  0xce   :  { %2002 = vmatpush.bf16.msra.mxu0 %v3141_v44 }
  0xcf   :  { %v1789_v60 = vpop.f32.mrf.mxu3 }
  0xd0   :  { %2085 = vmatpush.bf16.msra.mxu1 %v3149_v31 }
  0xd2   :  { %2003 = vmatpush.bf16.msra.mxu0 %v3140_v49 }
  0xd4   :  { %2086 = vmatpush.bf16.msra.mxu1 %v3148_v34 }
  0xd6   :  { %2004 = vmatpush.bf16.msra.mxu0 %v3139_v52 }
  0xd8   :  { %2087 = vmatpush.bf16.msra.mxu1 %v3147_v35 }
  0xda   :  { %2005 = vmatpush.bf16.msra.mxu0 %v3138_v57 }
  0xdc   :  { %2088 = vmatpush.bf16.msra.mxu1 %v3146_v36 }
  0xde   :  { %2006 = vmatpush.bf16.msra.mxu0 %v3137_v59  ;;  %v1800_v62 = vpop.f32.mrf.mxu0  ;;  %v3155_v59 = vld [vmem:[%s3874_s4] ss:$0 sm:$0xff] }
  0xdf   :  { %v1801_v63 = vadd.f32 %v1800_v62, %v1788_v55 }
  0xe0   :  { %v1813_v0 = vpop.f32.mrf.mxu1  ;;  %2089 = vmatpush.bf16.msra.mxu1 %v3145_v38 }
  0xe1   :  { %2007 = vmatmul.bf16.vlgmr.msra.gmra.mxu0 %v461_v61  ;;  %v1814_v1 = vadd.f32 %v1813_v0, %v1801_v63 }
  0xe5   :  { %v1826_v2 = vpop.f32.mrf.mxu2 }
  0xe6   :  { %v1827_v3 = vadd.f32 %v1826_v2, %v1814_v1  ;;  %v1802_v5 = vpop.f32.mrf.mxu0 }
  0xe7   :  { %v1839_v4 = vpop.f32.mrf.mxu3 }
  0xe8   :  { %v1840_v6 = vadd.f32 %v1839_v4, %v1827_v3  ;;  %v1815_v7 = vpop.f32.mrf.mxu1 }
  0xed   :  { %v1828_v8 = vpop.f32.mrf.mxu2 }
  0xef   :  { %v1841_v9 = vpop.f32.mrf.mxu3 }
  0xfe   :  { %v1852_v10 = vpop.f32.mrf.mxu0 }
  0xff   :  { %v1853_v11 = vadd.f32 %v1852_v10, %v1840_v6 }
 0x100   :  { %v1865_v12 = vpop.f32.mrf.mxu1 }
 0x101   :  { %v1866_v13 = vadd.f32 %v1865_v12, %v1853_v11 }
 0x105   :  { %v1878_v14 = vpop.f32.mrf.mxu2 }
 0x106   :  { %v1879_v15 = vadd.f32 %v1878_v14, %v1866_v13  ;;  %v1854_v17 = vpop.f32.mrf.mxu0 }
 0x107   :  { %v1891_v16 = vpop.f32.mrf.mxu3 }
 0x108   :  { %v1892_v18 = vadd.f32 %v1891_v16, %v1879_v15  ;;  %v1867_v19 = vpop.f32.mrf.mxu1 }
 0x10d   :  { %v1880_v20 = vpop.f32.mrf.mxu2 }
 0x10f   :  { %v1893_v21 = vpop.f32.mrf.mxu3 }
 0x11e   :  { %v1904_v22 = vpop.f32.mrf.mxu0 }
 0x11f   :  { %v1905_v41 = vadd.f32 %v1904_v22, %v1892_v18 }
 0x120   :  { %v1917_v24 = vpop.f32.mrf.mxu1 }
 0x121   :  { %v1918_v45 = vadd.f32 %v1917_v24, %v1905_v41 }
 0x125   :  { %v1930_v25 = vpop.f32.mrf.mxu2 }
 0x126   :  { %v1906_v28 = vpop.f32.mrf.mxu0  ;;  %v1931_v46 = vadd.f32 %v1930_v25, %v1918_v45 }
 0x127   :  { %v1943_v27 = vpop.f32.mrf.mxu3 }
 0x128   :  { %v1919_v30 = vpop.f32.mrf.mxu1  ;;  %v1944_v49 = vadd.f32 %v1943_v27, %v1931_v46 }
 0x12d   :  { %v1932_v32 = vpop.f32.mrf.mxu2 }
 0x12f   :  { %v1945_v33 = vpop.f32.mrf.mxu3 }
 0x13e   :  { %v1956_v37 = vpop.f32.mrf.mxu0 }
 0x13f   :  { %v1957_v50 = vadd.f32 %v1956_v37, %v1944_v49 }
 0x140   :  { %v1969_v39 = vpop.f32.mrf.mxu1 }
 0x141   :  { %v1970_v51 = vadd.f32 %v1969_v39, %v1957_v50 }
 0x145   :  { %v1982_v40 = vpop.f32.mrf.mxu2 }
 0x146   :  { %v1958_v43 = vpop.f32.mrf.mxu0  ;;  %v1983_v52 = vadd.f32 %v1982_v40, %v1970_v51 }
 0x147   :  { %v1995_v42 = vpop.f32.mrf.mxu3 }
 0x148   :  { %v1971_v44 = vpop.f32.mrf.mxu1  ;;  %v1996_v53 = vadd.f32 %v1995_v42, %v1983_v52 }
 0x14d   :  { %v1984_v47 = vpop.f32.mrf.mxu2 }
 0x14f   :  { %v1997_v48 = vpop.f32.mrf.mxu3 }
 0x15e   :  { %v2008_v54 = vpop.f32.mrf.mxu0 }
 0x15f   :  { %v2009_v55 = vadd.f32 %v2008_v54, %v1996_v53 }
 0x161   :  { %v2012_v56 = vmax.f32 %v2009_v55, 0.0 }
 0x163   :  { %v2013_v57 = vpack.c.bf16 %v2012_v56, %v2012_v56 }
 0x165   :  { %2090 = vmatmul.bf16.vlgmr.msra.gmra.mxu1 %v2013_v57 }
 0x166   :  { %v2010_v58 = vpop.f32.mrf.mxu0 }
 0x1e2   :  { %v2091_v60 = vpop.f32.mrf.mxu1 }
 0x1e3   :  { %v2092_v61 = vadd.f32 %v3155_v59, %v2091_v60 }
 0x1e5   :  { %v2095_v62 = vmax.f32 %v2092_v61, 0.0 }
 0x1e7   :  { %2096 = vst [vmem:[#allocation2] sm:$0x3] %v2095_v62 }
 0x1e8   :  { %2107 = dma.vmem_to_hbm [thread:$0]  %s2103_s15, 32, %s2105_s18, [#allocation3]  }
 0x1ea   :  { %v2093_v63 = vpop.f32.mrf.mxu1 }
 0x1eb   :  { %3180 = dma.done.wait [#allocation3], 32  }
 0x1ec   :  { %3181 = vsyncadd [#allocation3], 4294967264 }
 0x1ed   :  { %2112 = vsyncpa [#allocation3], 1 }

</bundles_post_ra>
